<compile_context>
chip_gen: v7x
topology: tpu7x:2x2x1
jax: 0.10.0
libtpu: 0.0.40
codegen_flags: <defaults>
</compile_context>

<pallas_src>
import functools

import jax
import jax.numpy as jnp
from jax import lax
from jax.experimental import pallas as pl
from jax.experimental.pallas import tpu as pltpu


def _attn_kernel(q_ref, k_ref, v_ref, o_ref, *, heads):
    # Blocks: (1, heads, dim_head, n); n (lanes) is the spatial axis.
    for h in range(heads):                      # static unroll (heads = 4)
        q = q_ref[0, h]                         # (dh, n)
        k = k_ref[0, h]                         # (dh, n)
        v = v_ref[0, h]                         # (dh, n)

        # sim[i, j] = sum_d q[d, i] * k[d, j]  -- transposed contraction fed
        # straight to the MXU, no k.T relayout.
        sim = lax.dot_general(
            q, k, (((0,), (0,)), ((), ())),
            preferred_element_type=jnp.float32)              # (n, n)

        sim = sim - jnp.max(sim, axis=-1, keepdims=True)
        e = jnp.exp(sim)
        inv = pl.reciprocal(jnp.sum(e, axis=-1, keepdims=True), approx=True)
        attn = e * inv                                        # (n, n)

        # out_t[d, i] = sum_j v[d, j] * attn[i, j]
        out_t = lax.dot_general(
            v, attn, (((1,), (1,)), ((), ())),
            preferred_element_type=jnp.float32)               # (dh, n)

        o_ref[0, h] = out_t.astype(o_ref.dtype)               # lane-dense store


@functools.partial(jax.jit, static_argnames=("heads", "dim_head"))
def attention_forward(x, w_qkv, w_out, b_out, *, heads, dim_head):
    """x: (b, c, H, W) NCHW (PyTorch convention). Returns (b, c, H, W)."""
    b, c, H, W = x.shape
    n = H * W
    hidden = heads * dim_head
    scale = dim_head ** (-0.5)

    x_flat = x.reshape(b, c, n)                               # (b, c, n)

    # to_qkv weight: (3*hidden, c, 1, 1) -> (3*hidden, c); fold q-scale in.
    w = w_qkv.reshape(3 * hidden, c)
    w = w.at[:hidden].multiply(scale)

    # qkv projection in the wrapper (K = c = 4 is too small for the MXU).
    qkv = jnp.einsum("oc,bcn->bon", w, x_flat,
                     preferred_element_type=jnp.float32)      # (b, 3*hidden, n)
    q = qkv[:, :hidden].reshape(b, heads, dim_head, n)
    k = qkv[:, hidden:2 * hidden].reshape(b, heads, dim_head, n)
    v = qkv[:, 2 * hidden:].reshape(b, heads, dim_head, n)

    kernel = functools.partial(_attn_kernel, heads=heads)
    block = (1, heads, dim_head, n)
    spec = pl.BlockSpec(block, lambda bi: (bi, 0, 0, 0))

    out = pl.pallas_call(
        kernel,
        out_shape=jax.ShapeDtypeStruct((b, heads, dim_head, n), jnp.float32),
        grid_spec=pltpu.PrefetchScalarGridSpec(
            num_scalar_prefetch=0,
            grid=(b,),
            in_specs=[spec, spec, spec],
            out_specs=pl.BlockSpec(block, lambda bi: (bi, 0, 0, 0)),
        ),
        compiler_params=pltpu.CompilerParams(
            dimension_semantics=("parallel",)),
    )(q, k, v)                                                # (b, heads, dh, n)

    # Channel order (h d) matches torch's 'b h (x y) d -> b (h d) x y'.
    out_flat = out.reshape(b, hidden, n)                      # (b, hidden, n)

    # to_out 1x1 conv (hidden -> c) + bias in the wrapper.
    wo = w_out.reshape(c, hidden)
    o = jnp.einsum("ck,bkn->bcn", wo, out_flat,
                   preferred_element_type=jnp.float32) + b_out[None, :, None]
    return o.reshape(b, c, H, W)


if __name__ == "__main__":
    # Module config (small, consistent with the PyTorch module defaults)
    dim = 4
    heads = 4
    dim_head = 32
    hidden = heads * dim_head

    B, C, H, W = 2, dim, 16, 16

    key = jax.random.PRNGKey(0)
    kx, kqkv, kout, kb = jax.random.split(key, 4)

    x = jax.random.normal(kx, (B, C, H, W), dtype=jnp.float32)
    # Deterministic synthetic parameters (shapes from nn.Conv2d in __init__)
    w_qkv = 0.1 * jax.random.normal(kqkv, (hidden * 3, dim, 1, 1), dtype=jnp.float32)
    w_out = 0.1 * jax.random.normal(kout, (dim, hidden, 1, 1), dtype=jnp.float32)
    b_out = 0.1 * jax.random.normal(kb, (dim,), dtype=jnp.float32)

    out = attention_forward(x, w_qkv, w_out, b_out, heads=heads, dim_head=dim_head)
    jax.block_until_ready(out)
    assert out.shape == (B, C, H, W)
    print("KERNEL_OK")
</pallas_src>

<mosaic_0001>
module attributes {stable_mosaic.version = 11 : i64} {
  func.func @_attn_kernel(%arg0: i32, %arg1: memref<1x4x32x256xf32, #tpu.memory_space<vmem>>, %arg2: memref<1x4x32x256xf32, #tpu.memory_space<vmem>>, %arg3: memref<1x4x32x256xf32, #tpu.memory_space<vmem>>, %arg4: memref<1x4x32x256xf32, #tpu.memory_space<vmem>>) attributes {dimension_semantics = [#tpu.dimension_semantics<parallel>], iteration_bounds = array<i64: 2>, scalar_prefetch = 0 : i64, scratch_operands = 0 : i64, tpu.core_type = #tpu.core_type<tc>, window_params = [{transform_indices = @transform_0, window_bounds = array<i64: 1, 4, 32, 256>}, {transform_indices = @transform_1, window_bounds = array<i64: 1, 4, 32, 256>}, {transform_indices = @transform_2, window_bounds = array<i64: 1, 4, 32, 256>}, {transform_indices = @transform_3, window_bounds = array<i64: 1, 4, 32, 256>}]} {
    %c0 = arith.constant 0 : index
    %c0_0 = arith.constant 0 : index
    %c0_1 = arith.constant 0 : index
    %c0_2 = arith.constant 0 : index
    %0 = vector.load %arg1[%c0, %c0_0, %c0_1, %c0_2] : memref<1x4x32x256xf32, #tpu.memory_space<vmem>>, vector<1x1x32x256xf32>
    %1 = vector.shape_cast %0 : vector<1x1x32x256xf32> to vector<32x256xf32>
    %c0_3 = arith.constant 0 : index
    %c0_4 = arith.constant 0 : index
    %c0_5 = arith.constant 0 : index
    %c0_6 = arith.constant 0 : index
    %2 = vector.load %arg2[%c0_3, %c0_4, %c0_5, %c0_6] : memref<1x4x32x256xf32, #tpu.memory_space<vmem>>, vector<1x1x32x256xf32>
    %3 = vector.shape_cast %2 : vector<1x1x32x256xf32> to vector<32x256xf32>
    %c0_7 = arith.constant 0 : index
    %c0_8 = arith.constant 0 : index
    %c0_9 = arith.constant 0 : index
    %c0_10 = arith.constant 0 : index
    %4 = vector.load %arg3[%c0_7, %c0_8, %c0_9, %c0_10] : memref<1x4x32x256xf32, #tpu.memory_space<vmem>>, vector<1x1x32x256xf32>
    %5 = vector.shape_cast %4 : vector<1x1x32x256xf32> to vector<32x256xf32>
    %cst = arith.constant dense<0.000000e+00> : vector<256x256xf32>
    %6 = tpu.matmul %1, %3, %cst {dimension_numbers = #tpu.dot_dimension_numbers<[0], [0], [1], [1], [0, 1, 1, 1], [], []>} : vector<32x256xf32>, vector<32x256xf32>, vector<256x256xf32> -> vector<256x256xf32>
    %cst_11 = arith.constant dense<0xFF800000> : vector<256xf32>
    %7 = vector.multi_reduction <maximumf>, %6, %cst_11 [1] : vector<256x256xf32> to vector<256xf32>
    %8 = vector.shape_cast %7 : vector<256xf32> to vector<256x1xf32>
    %9 = vector.broadcast %8 : vector<256x1xf32> to vector<256x256xf32>
    %10 = arith.subf %6, %9 : vector<256x256xf32>
    %11 = math.exp %10 : vector<256x256xf32>
    %cst_12 = arith.constant dense<0.000000e+00> : vector<256xf32>
    %12 = vector.multi_reduction <add>, %11, %cst_12 [1] : vector<256x256xf32> to vector<256xf32>
    %13 = vector.shape_cast %12 : vector<256xf32> to vector<256x1xf32>
    %14 = tpu.reciprocal %13 {approx = true} : vector<256x1xf32> -> vector<256x1xf32>
    %15 = vector.broadcast %14 : vector<256x1xf32> to vector<256x256xf32>
    %16 = arith.mulf %11, %15 : vector<256x256xf32>
    %cst_13 = arith.constant dense<0.000000e+00> : vector<32x256xf32>
    %17 = tpu.matmul %5, %16, %cst_13 {dimension_numbers = #tpu.dot_dimension_numbers<[1], [1], [0], [0], [0, 0, 1, 0], [], []>} : vector<32x256xf32>, vector<256x256xf32>, vector<32x256xf32> -> vector<32x256xf32>
    %c0_14 = arith.constant 0 : index
    %c0_15 = arith.constant 0 : index
    %c0_16 = arith.constant 0 : index
    %c0_17 = arith.constant 0 : index
    %18 = vector.load %arg4[%c0_14, %c0_15, %c0_16, %c0_17] : memref<1x4x32x256xf32, #tpu.memory_space<vmem>>, vector<1x1x32x256xf32>
    %19 = vector.shape_cast %18 : vector<1x1x32x256xf32> to vector<32x256xf32>
    %20 = vector.shape_cast %17 : vector<32x256xf32> to vector<1x1x32x256xf32>
    tpu.vector_store %arg4[%c0_14, %c0_15, %c0_16, %c0_17], %20 {strides = array<i32>} : memref<1x4x32x256xf32, #tpu.memory_space<vmem>>, vector<1x1x32x256xf32>,
    %c0_18 = arith.constant 0 : index
    %c1 = arith.constant 1 : index
    %c0_19 = arith.constant 0 : index
    %c0_20 = arith.constant 0 : index
    %21 = vector.load %arg1[%c0_18, %c1, %c0_19, %c0_20] : memref<1x4x32x256xf32, #tpu.memory_space<vmem>>, vector<1x1x32x256xf32>
    %22 = vector.shape_cast %21 : vector<1x1x32x256xf32> to vector<32x256xf32>
    %c0_21 = arith.constant 0 : index
    %c1_22 = arith.constant 1 : index
    %c0_23 = arith.constant 0 : index
    %c0_24 = arith.constant 0 : index
    %23 = vector.load %arg2[%c0_21, %c1_22, %c0_23, %c0_24] : memref<1x4x32x256xf32, #tpu.memory_space<vmem>>, vector<1x1x32x256xf32>
    %24 = vector.shape_cast %23 : vector<1x1x32x256xf32> to vector<32x256xf32>
    %c0_25 = arith.constant 0 : index
    %c1_26 = arith.constant 1 : index
    %c0_27 = arith.constant 0 : index
    %c0_28 = arith.constant 0 : index
    %25 = vector.load %arg3[%c0_25, %c1_26, %c0_27, %c0_28] : memref<1x4x32x256xf32, #tpu.memory_space<vmem>>, vector<1x1x32x256xf32>
    %26 = vector.shape_cast %25 : vector<1x1x32x256xf32> to vector<32x256xf32>
    %cst_29 = arith.constant dense<0.000000e+00> : vector<256x256xf32>
    %27 = tpu.matmul %22, %24, %cst_29 {dimension_numbers = #tpu.dot_dimension_numbers<[0], [0], [1], [1], [0, 1, 1, 1], [], []>} : vector<32x256xf32>, vector<32x256xf32>, vector<256x256xf32> -> vector<256x256xf32>
    %cst_30 = arith.constant dense<0xFF800000> : vector<256xf32>
    %28 = vector.multi_reduction <maximumf>, %27, %cst_30 [1] : vector<256x256xf32> to vector<256xf32>
    %29 = vector.shape_cast %28 : vector<256xf32> to vector<256x1xf32>
    %30 = vector.broadcast %29 : vector<256x1xf32> to vector<256x256xf32>
    %31 = arith.subf %27, %30 : vector<256x256xf32>
    %32 = math.exp %31 : vector<256x256xf32>
    %cst_31 = arith.constant dense<0.000000e+00> : vector<256xf32>
    %33 = vector.multi_reduction <add>, %32, %cst_31 [1] : vector<256x256xf32> to vector<256xf32>
    %34 = vector.shape_cast %33 : vector<256xf32> to vector<256x1xf32>
    %35 = tpu.reciprocal %34 {approx = true} : vector<256x1xf32> -> vector<256x1xf32>
    %36 = vector.broadcast %35 : vector<256x1xf32> to vector<256x256xf32>
    %37 = arith.mulf %32, %36 : vector<256x256xf32>
    %cst_32 = arith.constant dense<0.000000e+00> : vector<32x256xf32>
    %38 = tpu.matmul %26, %37, %cst_32 {dimension_numbers = #tpu.dot_dimension_numbers<[1], [1], [0], [0], [0, 0, 1, 0], [], []>} : vector<32x256xf32>, vector<256x256xf32>, vector<32x256xf32> -> vector<32x256xf32>
    %c0_33 = arith.constant 0 : index
    %c1_34 = arith.constant 1 : index
    %c0_35 = arith.constant 0 : index
    %c0_36 = arith.constant 0 : index
    %39 = vector.load %arg4[%c0_33, %c1_34, %c0_35, %c0_36] : memref<1x4x32x256xf32, #tpu.memory_space<vmem>>, vector<1x1x32x256xf32>
    %40 = vector.shape_cast %39 : vector<1x1x32x256xf32> to vector<32x256xf32>
    %41 = vector.shape_cast %38 : vector<32x256xf32> to vector<1x1x32x256xf32>
    tpu.vector_store %arg4[%c0_33, %c1_34, %c0_35, %c0_36], %41 {strides = array<i32>} : memref<1x4x32x256xf32, #tpu.memory_space<vmem>>, vector<1x1x32x256xf32>,
    %c0_37 = arith.constant 0 : index
    %c2 = arith.constant 2 : index
    %c0_38 = arith.constant 0 : index
    %c0_39 = arith.constant 0 : index
    %42 = vector.load %arg1[%c0_37, %c2, %c0_38, %c0_39] : memref<1x4x32x256xf32, #tpu.memory_space<vmem>>, vector<1x1x32x256xf32>
    %43 = vector.shape_cast %42 : vector<1x1x32x256xf32> to vector<32x256xf32>
    %c0_40 = arith.constant 0 : index
    %c2_41 = arith.constant 2 : index
    %c0_42 = arith.constant 0 : index
    %c0_43 = arith.constant 0 : index
    %44 = vector.load %arg2[%c0_40, %c2_41, %c0_42, %c0_43] : memref<1x4x32x256xf32, #tpu.memory_space<vmem>>, vector<1x1x32x256xf32>
    %45 = vector.shape_cast %44 : vector<1x1x32x256xf32> to vector<32x256xf32>
    %c0_44 = arith.constant 0 : index
    %c2_45 = arith.constant 2 : index
    %c0_46 = arith.constant 0 : index
    %c0_47 = arith.constant 0 : index
    %46 = vector.load %arg3[%c0_44, %c2_45, %c0_46, %c0_47] : memref<1x4x32x256xf32, #tpu.memory_space<vmem>>, vector<1x1x32x256xf32>
    %47 = vector.shape_cast %46 : vector<1x1x32x256xf32> to vector<32x256xf32>
    %cst_48 = arith.constant dense<0.000000e+00> : vector<256x256xf32>
    %48 = tpu.matmul %43, %45, %cst_48 {dimension_numbers = #tpu.dot_dimension_numbers<[0], [0], [1], [1], [0, 1, 1, 1], [], []>} : vector<32x256xf32>, vector<32x256xf32>, vector<256x256xf32> -> vector<256x256xf32>
    %cst_49 = arith.constant dense<0xFF800000> : vector<256xf32>
    %49 = vector.multi_reduction <maximumf>, %48, %cst_49 [1] : vector<256x256xf32> to vector<256xf32>
    %50 = vector.shape_cast %49 : vector<256xf32> to vector<256x1xf32>
    %51 = vector.broadcast %50 : vector<256x1xf32> to vector<256x256xf32>
    %52 = arith.subf %48, %51 : vector<256x256xf32>
    %53 = math.exp %52 : vector<256x256xf32>
    %cst_50 = arith.constant dense<0.000000e+00> : vector<256xf32>
    %54 = vector.multi_reduction <add>, %53, %cst_50 [1] : vector<256x256xf32> to vector<256xf32>
    %55 = vector.shape_cast %54 : vector<256xf32> to vector<256x1xf32>
    %56 = tpu.reciprocal %55 {approx = true} : vector<256x1xf32> -> vector<256x1xf32>
    %57 = vector.broadcast %56 : vector<256x1xf32> to vector<256x256xf32>
    %58 = arith.mulf %53, %57 : vector<256x256xf32>
    %cst_51 = arith.constant dense<0.000000e+00> : vector<32x256xf32>
    %59 = tpu.matmul %47, %58, %cst_51 {dimension_numbers = #tpu.dot_dimension_numbers<[1], [1], [0], [0], [0, 0, 1, 0], [], []>} : vector<32x256xf32>, vector<256x256xf32>, vector<32x256xf32> -> vector<32x256xf32>
    %c0_52 = arith.constant 0 : index
    %c2_53 = arith.constant 2 : index
    %c0_54 = arith.constant 0 : index
    %c0_55 = arith.constant 0 : index
    %60 = vector.load %arg4[%c0_52, %c2_53, %c0_54, %c0_55] : memref<1x4x32x256xf32, #tpu.memory_space<vmem>>, vector<1x1x32x256xf32>
    %61 = vector.shape_cast %60 : vector<1x1x32x256xf32> to vector<32x256xf32>
    %62 = vector.shape_cast %59 : vector<32x256xf32> to vector<1x1x32x256xf32>
    tpu.vector_store %arg4[%c0_52, %c2_53, %c0_54, %c0_55], %62 {strides = array<i32>} : memref<1x4x32x256xf32, #tpu.memory_space<vmem>>, vector<1x1x32x256xf32>,
    %c0_56 = arith.constant 0 : index
    %c3 = arith.constant 3 : index
    %c0_57 = arith.constant 0 : index
    %c0_58 = arith.constant 0 : index
    %63 = vector.load %arg1[%c0_56, %c3, %c0_57, %c0_58] : memref<1x4x32x256xf32, #tpu.memory_space<vmem>>, vector<1x1x32x256xf32>
    %64 = vector.shape_cast %63 : vector<1x1x32x256xf32> to vector<32x256xf32>
    %c0_59 = arith.constant 0 : index
    %c3_60 = arith.constant 3 : index
    %c0_61 = arith.constant 0 : index
    %c0_62 = arith.constant 0 : index
    %65 = vector.load %arg2[%c0_59, %c3_60, %c0_61, %c0_62] : memref<1x4x32x256xf32, #tpu.memory_space<vmem>>, vector<1x1x32x256xf32>
    %66 = vector.shape_cast %65 : vector<1x1x32x256xf32> to vector<32x256xf32>
    %c0_63 = arith.constant 0 : index
    %c3_64 = arith.constant 3 : index
    %c0_65 = arith.constant 0 : index
    %c0_66 = arith.constant 0 : index
    %67 = vector.load %arg3[%c0_63, %c3_64, %c0_65, %c0_66] : memref<1x4x32x256xf32, #tpu.memory_space<vmem>>, vector<1x1x32x256xf32>
    %68 = vector.shape_cast %67 : vector<1x1x32x256xf32> to vector<32x256xf32>
    %cst_67 = arith.constant dense<0.000000e+00> : vector<256x256xf32>
    %69 = tpu.matmul %64, %66, %cst_67 {dimension_numbers = #tpu.dot_dimension_numbers<[0], [0], [1], [1], [0, 1, 1, 1], [], []>} : vector<32x256xf32>, vector<32x256xf32>, vector<256x256xf32> -> vector<256x256xf32>
    %cst_68 = arith.constant dense<0xFF800000> : vector<256xf32>
    %70 = vector.multi_reduction <maximumf>, %69, %cst_68 [1] : vector<256x256xf32> to vector<256xf32>
    %71 = vector.shape_cast %70 : vector<256xf32> to vector<256x1xf32>
    %72 = vector.broadcast %71 : vector<256x1xf32> to vector<256x256xf32>
    %73 = arith.subf %69, %72 : vector<256x256xf32>
    %74 = math.exp %73 : vector<256x256xf32>
    %cst_69 = arith.constant dense<0.000000e+00> : vector<256xf32>
    %75 = vector.multi_reduction <add>, %74, %cst_69 [1] : vector<256x256xf32> to vector<256xf32>
    %76 = vector.shape_cast %75 : vector<256xf32> to vector<256x1xf32>
    %77 = tpu.reciprocal %76 {approx = true} : vector<256x1xf32> -> vector<256x1xf32>
    %78 = vector.broadcast %77 : vector<256x1xf32> to vector<256x256xf32>
    %79 = arith.mulf %74, %78 : vector<256x256xf32>
    %cst_70 = arith.constant dense<0.000000e+00> : vector<32x256xf32>
    %80 = tpu.matmul %68, %79, %cst_70 {dimension_numbers = #tpu.dot_dimension_numbers<[1], [1], [0], [0], [0, 0, 1, 0], [], []>} : vector<32x256xf32>, vector<256x256xf32>, vector<32x256xf32> -> vector<32x256xf32>
    %c0_71 = arith.constant 0 : index
    %c3_72 = arith.constant 3 : index
    %c0_73 = arith.constant 0 : index
    %c0_74 = arith.constant 0 : index
    %81 = vector.load %arg4[%c0_71, %c3_72, %c0_73, %c0_74] : memref<1x4x32x256xf32, #tpu.memory_space<vmem>>, vector<1x1x32x256xf32>
    %82 = vector.shape_cast %81 : vector<1x1x32x256xf32> to vector<32x256xf32>
    %83 = vector.shape_cast %80 : vector<32x256xf32> to vector<1x1x32x256xf32>
    tpu.vector_store %arg4[%c0_71, %c3_72, %c0_73, %c0_74], %83 {strides = array<i32>} : memref<1x4x32x256xf32, #tpu.memory_space<vmem>>, vector<1x1x32x256xf32>,
    return
  }
  func.func @transform_0(%arg0: i32) -> (i32, i32, i32, i32) {
    %c0_i32 = arith.constant 0 : i32
    %c0_i32_0 = arith.constant 0 : i32
    %c0_i32_1 = arith.constant 0 : i32
    %c0_i32_2 = arith.constant 0 : i32
    return %arg0, %c0_i32, %c0_i32_0, %c0_i32_1 : i32, i32, i32, i32
  }
  func.func @transform_1(%arg0: i32) -> (i32, i32, i32, i32) {
    %c0_i32 = arith.constant 0 : i32
    %c0_i32_0 = arith.constant 0 : i32
    %c0_i32_1 = arith.constant 0 : i32
    %c0_i32_2 = arith.constant 0 : i32
    return %arg0, %c0_i32, %c0_i32_0, %c0_i32_1 : i32, i32, i32, i32
  }
  func.func @transform_2(%arg0: i32) -> (i32, i32, i32, i32) {
    %c0_i32 = arith.constant 0 : i32
    %c0_i32_0 = arith.constant 0 : i32
    %c0_i32_1 = arith.constant 0 : i32
    %c0_i32_2 = arith.constant 0 : i32
    return %arg0, %c0_i32, %c0_i32_0, %c0_i32_1 : i32, i32, i32, i32
  }
  func.func @transform_3(%arg0: i32) -> (i32, i32, i32, i32) {
    %c0_i32 = arith.constant 0 : i32
    %c0_i32_0 = arith.constant 0 : i32
    %c0_i32_1 = arith.constant 0 : i32
    %c0_i32_2 = arith.constant 0 : i32
    return %arg0, %c0_i32, %c0_i32_0, %c0_i32_1 : i32, i32, i32, i32
  }
}

</mosaic_0001>

<bundles_post_ra>
// kernel: attention_forward.1
= control target key start
LH: loop header
LB: loop body
LE: loop exit
PB: predicated region body
PF: predicated region fallthrough
CT: control target
= control target key end

     0   :  { %s5744_s12 = smov 0   ;;  %s8763_s0 = inlined_call_operand.vmem [shape: f32[2,4,32,256], index: 0, kind: input, shape index: {}]   ;;  %s8764_s1 = inlined_call_operand.vmem [shape: f32[2,4,32,256], index: 1, kind: input, shape index: {}]   ;;  %s8765_s2 = inlined_call_operand.vmem [shape: f32[2,4,32,256], index: 2, kind: input, shape index: {}]   ;;  %s8766_s3 = inlined_call_operand.vmem [shape: f32[2,4,32,256], index: 3, kind: output, shape index: {}]  }
   0x1 LB: > { %s4375_s13 = sadd.s32 4294967295, %s5721_s12   ;;  %p4379_p0 = scmp.ge.s32.totalorder %s5721_s12, 1  ;;  %s5721_s12 = sphi %s5744_s12, %s13_s12  }
   0x2   : > { %p157_p1 = scmp.lt.s32.totalorder %s5721_s12, 3 }
   0x4   : > { %p158_p2 = pnand %p4379_p0, %p157_p1 }
   0x6   : > { %161 = sbr.rel (%p158_p2) target bundleno = 1828 (0x724), region = 32 }
   0xd   : > { %p191_p3 = scmp.lt.s32.totalorder %s4375_s13, 1  ;;  %v8767_v0 = vmov 0.0   ;;  %vm299_vm0 = vcmask 261120  }
   0xe   : > { %460 = vmatprep.mubr.f32.mxu0 %v8767_v0 }
   0xf   : > { %s10122_s13 = smov (!%p191_p3, %s4375_s13), 1 }
  0x10   : > { %s5753_s14 = sshll.u32 %s10122_s13, 8 }
  0x11   : > { %s5759_s17 = scalar_lea.vmem %s8763_s0, %s5753_s14  ;;  %s5765_s20 = scalar_lea.vmem %s8764_s1, %s5753_s14 }
  0x12   : > { %v211_v1 = vld [vmem:[%s5759_s17] sm:$0xff]  ;;  %v212_v2 = vld [vmem:[%s5759_s17 + $0x8] sm:$0xff]  ;;  %v213_v3 = vld [vmem:[%s5759_s17 + $0x10] sm:$0xff]  ;;  %s7316_s23 = scalar_lea.vmem %s8765_s2, %s5753_s14  ;;  %s8427_s26 = scalar_lea.vmem %s8766_s3, %s5753_s14 }
  0x13   : > { %235 = vxpose.xlu0.b32.start [1/4] (short) %v211_v1, 128  ;;  %267 = vxpose.xlu1.b32.start [1/4] (short) %v212_v2, 128  ;;  %v214_v4 = vld [vmem:[%s5759_s17 + $0x18] sm:$0xff]  ;;  %v220_v5 = vld [vmem:[%s5765_s20 + $0x8] sm:$0xff]  ;;  %v219_v7 = vld [vmem:[%s5765_s20] sm:$0xff] }
  0x14   : > { %v222_v6 = vld [vmem:[%s5765_s20 + $0x18] sm:$0xff]  ;;  %v221_v8 = vld [vmem:[%s5765_s20 + $0x10] sm:$0xff]  ;;  %v224_v11 = vld [vmem:[%s5765_s20 + $0x28] sm:$0xff] }
  0x15   : > { %v4618_v9 = vpack.c.bf16 %v222_v6, %v220_v5  ;;  %v4620_v10 = vpack.c.bf16 %v221_v8, %v219_v7  ;;  %v226_v12 = vld [vmem:[%s5765_s20 + $0x38] sm:$0xff]  ;;  %v223_v13 = vld [vmem:[%s5765_s20 + $0x20] sm:$0xff]  ;;  %v225_v15 = vld [vmem:[%s5765_s20 + $0x30] sm:$0xff] }
  0x16   : > { %v4622_v14 = vpack.c.bf16 %v226_v12, %v224_v11  ;;  %v215_v16 = vld [vmem:[%s5759_s17 + $0x20] sm:$0xff]  ;;  %v216_v17 = vld [vmem:[%s5759_s17 + $0x28] sm:$0xff]  ;;  %v4624_v18 = vpack.c.bf16 %v225_v15, %v223_v13  ;;  %v217_v19 = vld [vmem:[%s5759_s17 + $0x30] sm:$0xff] }
  0x17   : > { %236 = vxpose.xlu0.b32.cont [2/4] (short) %v213_v3, 128  ;;  %268 = vxpose.xlu1.b32.cont [2/4] (short) %v214_v4, 128  ;;  %v218_v20 = vld [vmem:[%s5759_s17 + $0x38] sm:$0xff]  ;;  %v4420_v21 = vld [vmem:[%s5759_s17 + $0x40] sm:$0xff]  ;;  %v4421_v22 = vld [vmem:[%s5759_s17 + $0x48] sm:$0xff] }
  0x18   : > { %4619 = vmatprep.subr.bf16.mxu0 %v4618_v9  ;;  %v4422_v23 = vld [vmem:[%s5759_s17 + $0x50] sm:$0xff]  ;;  %v4423_v24 = vld [vmem:[%s5759_s17 + $0x58] sm:$0xff]  ;;  %v4424_v25 = vld [vmem:[%s5759_s17 + $0x60] sm:$0xff] }
  0x19   : > { %4621 = vmatpush1.bf16.msra.mxu0 %v4620_v10  ;;  %v4425_v26 = vld [vmem:[%s5759_s17 + $0x68] sm:$0xff]  ;;  %v4426_v27 = vld [vmem:[%s5759_s17 + $0x70] sm:$0xff]  ;;  %v4427_v28 = vld [vmem:[%s5759_s17 + $0x78] sm:$0xff] }
  0x1a   : > { %4623 = vmatprep.subr.bf16.mxu0 %v4622_v14  ;;  %v4429_v29 = vld [vmem:[%s5765_s20 + $0x48] sm:$0xff]  ;;  %v4431_v30 = vld [vmem:[%s5765_s20 + $0x58] sm:$0xff]  ;;  %v4484_v32 = vld [vmem:[%s5759_s17 + $0x80] sm:$0xff] }
  0x1b   : > { %237 = vxpose.xlu0.b32.cont [3/4] (short) %v215_v16, 128  ;;  %269 = vxpose.xlu1.b32.cont [3/4] (short) %v216_v17, 128  ;;  %v4690_v31 = vpack.c.bf16 %v4431_v30, %v4429_v29  ;;  %v4428_v33 = vld [vmem:[%s5765_s20 + $0x40] sm:$0xff]  ;;  %v4430_v34 = vld [vmem:[%s5765_s20 + $0x50] sm:$0xff]  ;;  %v4433_v36 = vld [vmem:[%s5765_s20 + $0x68] sm:$0xff] }
  0x1c   : > { %v4486_v35 = vld [vmem:[%s5759_s17 + $0x90] sm:$0xff]  ;;  %v4435_v37 = vld [vmem:[%s5765_s20 + $0x78] sm:$0xff]  ;;  %v4692_v38 = vpack.c.bf16 %v4430_v34, %v4428_v33  ;;  %v4432_v40 = vld [vmem:[%s5765_s20 + $0x60] sm:$0xff] }
  0x1d   : > { %4625 = vmatpush1.bf16.msra.mxu0 %v4624_v18  ;;  %v4694_v39 = vpack.c.bf16 %v4435_v37, %v4433_v36  ;;  %v4434_v41 = vld [vmem:[%s5765_s20 + $0x70] sm:$0xff]  ;;  %v4488_v43 = vld [vmem:[%s5759_s17 + $0xa0] sm:$0xff] }
  0x1e   : > { %4691 = vmatprep.subr.bf16.mxu0 %v4690_v31  ;;  %v4696_v44 = vpack.c.bf16 %v4434_v41, %v4432_v40  ;;  %v4490_v46 = vld [vmem:[%s5759_s17 + $0xb0] sm:$0xff] }
  0x1f   : > { %238 = vxpose.xlu0.b32.end [4/4] (short) %v217_v19, 128  ;;  %270 = vxpose.xlu1.b32.end [4/4] (short) %v218_v20, 128 }
  0x50   : > { %1257 = vxpose.xlu0.b32.start [1/4] (short) %v4420_v21, 128  ;;  %1289 = vxpose.xlu1.b32.start [1/4] (short) %v4421_v22, 128 }
  0x54   : > { %1258 = vxpose.xlu0.b32.cont [2/4] (short) %v4422_v23, 128  ;;  %1290 = vxpose.xlu1.b32.cont [2/4] (short) %v4423_v24, 128 }
  0x58   : > { %1259 = vxpose.xlu0.b32.cont [3/4] (short) %v4424_v25, 128  ;;  %1291 = vxpose.xlu1.b32.cont [3/4] (short) %v4425_v26, 128 }
  0x5c   : > { %1260 = vxpose.xlu0.b32.end [4/4] (short) %v4426_v27, 128  ;;  %1292 = vxpose.xlu1.b32.end [4/4] (short) %v4427_v28, 128 }
  0x8d   : > { %2279 = vxpose.xlu1.b32.start [1/4] (short) %v4484_v32, 128 }
  0x91   : > { %2280 = vxpose.xlu1.b32.cont [2/4] (short) %v4486_v35, 128 }
  0x93   : > { %v251_v42 = vpop.trf.xlu0  ;;  %v283_v54 = vpop.trf.xlu1 }
  0x94   : > { %4388 = vmatmul.mubr.msk.f32.vlgmr.msra.gmra.mrb[0].mxu0 %vm299_vm0, %v251_v42 }
  0x95   : > { %466 = vmatprep.mubr.f32.mxu0 %v8767_v0  ;;  %4693 = vmatpush1.bf16.msra.mxu0 %v4692_v38 }
  0x96   : > { %4695 = vmatprep.subr.bf16.mxu0 %v4694_v39  ;;  %2281 = vxpose.xlu1.b32.cont [3/4] (short) %v4488_v43, 128 }
  0x97   : > { %v252_v45 = vpop.trf.xlu0  ;;  %v284_v56 = vpop.trf.xlu1 }
  0x98   : > { %4389 = vmatmul.mubr.msk.f32.gmra.mrb[2].mxu0 %vm299_vm0, %v252_v45 }
  0x99   : > { %472 = vmatprep.mubr.f32.mxu0 %v8767_v0  ;;  %4697 = vmatpush1.bf16.msra.mxu0 %v4696_v44 }
  0x9a   : > { %2282 = vxpose.xlu1.b32.end [4/4] (short) %v4490_v46, 128 }
  0x9b   : > { %v253_v47 = vpop.trf.xlu0  ;;  %v285_v59 = vpop.trf.xlu1 }
  0x9c   : > { %4390 = vmatmul.mubr.msk.f32.gmra.mrb[4].mxu0 %vm299_vm0, %v253_v47 }
  0x9d   : > { %478 = vmatprep.mubr.f32.mxu0 %v8767_v0 }
  0x9f   : > { %v254_v48 = vpop.trf.xlu0  ;;  %v286_v61 = vpop.trf.xlu1 }
  0xa0   : > { %4391 = vmatmul.mubr.msk.f32.gmra.mrb[6].mxu0 %vm299_vm0, %v254_v48 }
  0xa1   : > { %484 = vmatprep.mubr.f32.mxu0 %v8767_v0 }
  0xa3   : > { %v255_v49 = vpop.trf.xlu0  ;;  %v287_v1 = vpop.trf.xlu1 }
  0xa4   : > { %4392 = vmatmul.mubr.msk.f32.gmra.mrb[8].mxu0 %vm299_vm0, %v255_v49 }
  0xa5   : > { %490 = vmatprep.mubr.f32.mxu0 %v8767_v0 }
  0xa7   : > { %v256_v50 = vpop.trf.xlu0  ;;  %v288_v3 = vpop.trf.xlu1 }
  0xa8   : > { %4393 = vmatmul.mubr.msk.f32.gmra.mrb[10].mxu0 %vm299_vm0, %v256_v50 }
  0xa9   : > { %496 = vmatprep.mubr.f32.mxu0 %v8767_v0 }
  0xab   : > { %v257_v51 = vpop.trf.xlu0  ;;  %v289_v4 = vpop.trf.xlu1 }
  0xac   : > { %4394 = vmatmul.mubr.msk.f32.gmra.mrb[12].mxu0 %vm299_vm0, %v257_v51 }
  0xad   : > { %502 = vmatprep.mubr.f32.mxu0 %v8767_v0 }
  0xaf   : > { %v258_v52 = vpop.trf.xlu0  ;;  %v290_v5 = vpop.trf.xlu1 }
  0xb0   : > { %4395 = vmatmul.mubr.msk.f32.gmra.mrb[14].mxu0 %vm299_vm0, %v258_v52 }
  0xb1   : > { %508 = vmatprep.mubr.f32.mxu0 %v8767_v0 }
  0xb3   : > { %v259_v53 = vpop.trf.xlu0  ;;  %v291_v6 = vpop.trf.xlu1 }
  0xb4   : > { %4396 = vmatmul.mubr.msk.f32.gmra.mrb[16].mxu0 %vm299_vm0, %v259_v53 }
  0xb5   : > { %514 = vmatprep.mubr.f32.mxu0 %v8767_v0 }
  0xb7   : > { %v260_v55 = vpop.trf.xlu0  ;;  %v292_v7 = vpop.trf.xlu1 }
  0xb8   : > { %4397 = vmatmul.mubr.msk.f32.gmra.mrb[18].mxu0 %vm299_vm0, %v260_v55 }
  0xb9   : > { %520 = vmatprep.mubr.f32.mxu0 %v8767_v0 }
  0xbb   : > { %v261_v57 = vpop.trf.xlu0  ;;  %v293_v8 = vpop.trf.xlu1 }
  0xbc   : > { %4398 = vmatmul.mubr.msk.f32.gmra.mrb[20].mxu0 %vm299_vm0, %v261_v57 }
  0xbd   : > { %526 = vmatprep.mubr.f32.mxu0 %v8767_v0 }
  0xbf   : > { %v262_v58 = vpop.trf.xlu0  ;;  %v294_v9 = vpop.trf.xlu1 }
  0xc0   : > { %4399 = vmatmul.mubr.msk.f32.gmra.mrb[22].mxu0 %vm299_vm0, %v262_v58 }
  0xc1   : > { %532 = vmatprep.mubr.f32.mxu0 %v8767_v0 }
  0xc3   : > { %v263_v60 = vpop.trf.xlu0  ;;  %v295_v11 = vpop.trf.xlu1 }
  0xc4   : > { %4400 = vmatmul.mubr.msk.f32.gmra.mrb[24].mxu0 %vm299_vm0, %v263_v60  ;;  %v4493_v60 = vld [vmem:[%s5765_s20 + $0x88] sm:$0xff] }
  0xc5   : > { %538 = vmatprep.mubr.f32.mxu0 %v8767_v0 }
  0xc7   : > { %v264_v62 = vpop.trf.xlu0  ;;  %v296_v13 = vpop.trf.xlu1 }
  0xc8   : > { %4401 = vmatmul.mubr.msk.f32.gmra.mrb[26].mxu0 %vm299_vm0, %v264_v62 }
  0xc9   : > { %544 = vmatprep.mubr.f32.mxu0 %v8767_v0 }
  0xcb   : > { %v265_v63 = vpop.trf.xlu0  ;;  %v297_v15 = vpop.trf.xlu1 }
  0xcc   : > { %4402 = vmatmul.mubr.msk.f32.gmra.mrb[28].mxu0 %vm299_vm0, %v265_v63 }
  0xcd   : > { %550 = vmatprep.mubr.f32.mxu0 %v8767_v0 }
  0xcf   : > { %v266_v2 = vpop.trf.xlu0  ;;  %v298_v17 = vpop.trf.xlu1 }
  0xd0   : > { %4403 = vmatmul.mubr.msk.f32.gmra.mrb[30].mxu0 %vm299_vm0, %v266_v2  ;;  %v4494_v2 = vld [vmem:[%s5765_s20 + $0x90] sm:$0xff] }
  0xd1   : > { %556 = vmatprep.mubr.f32.mxu0 %v8767_v0 }
  0xd3   : > { %v1273_v10 = vpop.trf.xlu0  ;;  %v1305_v20 = vpop.trf.xlu1 }
  0xd4   : > { %4404 = vmatmul.mubr.msk.f32.gmra.mrb[32].mxu0 %vm299_vm0, %v283_v54 }
  0xd5   : > { %562 = vmatprep.mubr.f32.mxu0 %v8767_v0 }
  0xd7   : > { %v1274_v12 = vpop.trf.xlu0  ;;  %v1306_v22 = vpop.trf.xlu1 }
  0xd8   : > { %4405 = vmatmul.mubr.msk.f32.gmra.mrb[34].mxu0 %vm299_vm0, %v284_v56 }
  0xd9   : > { %568 = vmatprep.mubr.f32.mxu0 %v8767_v0 }
  0xdb   : > { %v1275_v14 = vpop.trf.xlu0  ;;  %v1307_v24 = vpop.trf.xlu1 }
  0xdc   : > { %4406 = vmatmul.mubr.msk.f32.gmra.mrb[36].mxu0 %vm299_vm0, %v285_v59 }
  0xdd   : > { %574 = vmatprep.mubr.f32.mxu0 %v8767_v0 }
  0xdf   : > { %v1276_v16 = vpop.trf.xlu0  ;;  %v1308_v26 = vpop.trf.xlu1 }
  0xe0   : > { %4407 = vmatmul.mubr.msk.f32.gmra.mrb[38].mxu0 %vm299_vm0, %v286_v61  ;;  %v4495_v61 = vld [vmem:[%s5765_s20 + $0x98] sm:$0xff] }
  0xe1   : > { %580 = vmatprep.mubr.f32.mxu0 %v8767_v0  ;;  %v4762_v63 = vpack.c.bf16 %v4495_v61, %v4493_v60 }
  0xe3   : > { %v1277_v18 = vpop.trf.xlu0  ;;  %v1309_v28 = vpop.trf.xlu1  ;;  %4763 = vmatprep.subr.bf16.mxu0 %v4762_v63 }
  0xe4   : > { %4408 = vmatmul.mubr.msk.f32.gmra.mrb[40].mxu0 %vm299_vm0, %v287_v1  ;;  %v4492_v1 = vld [vmem:[%s5765_s20 + $0x80] sm:$0xff] }
  0xe5   : > { %586 = vmatprep.mubr.f32.mxu0 %v8767_v0 }
  0xe7   : > { %v1278_v19 = vpop.trf.xlu0  ;;  %v1310_v30 = vpop.trf.xlu1 }
  0xe8   : > { %4409 = vmatmul.mubr.msk.f32.gmra.mrb[42].mxu0 %vm299_vm0, %v288_v3 }
  0xe9   : > { %592 = vmatprep.mubr.f32.mxu0 %v8767_v0 }
  0xeb   : > { %v1279_v21 = vpop.trf.xlu0  ;;  %v1311_v32 = vpop.trf.xlu1 }
  0xec   : > { %4410 = vmatmul.mubr.msk.f32.gmra.mrb[44].mxu0 %vm299_vm0, %v289_v4  ;;  %v4764_v4 = vpack.c.bf16 %v4494_v2, %v4492_v1 }
  0xed   : > { %598 = vmatprep.mubr.f32.mxu0 %v8767_v0 }
  0xef   : > { %v1280_v23 = vpop.trf.xlu0  ;;  %v1312_v34 = vpop.trf.xlu1 }
  0xf0   : > { %4411 = vmatmul.mubr.msk.f32.gmra.mrb[46].mxu0 %vm299_vm0, %v290_v5 }
  0xf1   : > { %604 = vmatprep.mubr.f32.mxu0 %v8767_v0 }
  0xf3   : > { %v1281_v25 = vpop.trf.xlu0  ;;  %v1313_v36 = vpop.trf.xlu1 }
  0xf4   : > { %4412 = vmatmul.mubr.msk.f32.gmra.mrb[48].mxu0 %vm299_vm0, %v291_v6 }
  0xf5   : > { %610 = vmatprep.mubr.f32.mxu0 %v8767_v0 }
  0xf7   : > { %v1282_v27 = vpop.trf.xlu0  ;;  %v1314_v38 = vpop.trf.xlu1 }
  0xf8   : > { %4413 = vmatmul.mubr.msk.f32.gmra.mrb[50].mxu0 %vm299_vm0, %v292_v7  ;;  %v4497_v7 = vld [vmem:[%s5765_s20 + $0xa8] sm:$0xff] }
  0xf9   : > { %616 = vmatprep.mubr.f32.mxu0 %v8767_v0 }
  0xfb   : > { %v1283_v29 = vpop.trf.xlu0  ;;  %v1315_v40 = vpop.trf.xlu1 }
  0xfc   : > { %4414 = vmatmul.mubr.msk.f32.gmra.mrb[52].mxu0 %vm299_vm0, %v293_v8  ;;  %v4499_v8 = vld [vmem:[%s5765_s20 + $0xb8] sm:$0xff] }
  0xfd   : > { %622 = vmatprep.mubr.f32.mxu0 %v8767_v0 }
  0xff   : > { %v1284_v31 = vpop.trf.xlu0  ;;  %v5901_v41 = vpop.trf.xlu1 }
 0x100   : > { %4415 = vmatmul.mubr.msk.f32.gmra.mrb[54].mxu0 %vm299_vm0, %v294_v9 }
 0x101   : > { %628 = vmatprep.mubr.f32.mxu0 %v8767_v0 }
 0x103   : > { %v1285_v33 = vpop.trf.xlu0  ;;  %v5906_v42 = vpop.trf.xlu1 }
 0x104   : > { %4416 = vmatmul.mubr.msk.f32.gmra.mrb[56].mxu0 %vm299_vm0, %v295_v11  ;;  %v4496_v11 = vld [vmem:[%s5765_s20 + $0xa0] sm:$0xff] }
 0x105   : > { %634 = vmatprep.mubr.f32.mxu0 %v8767_v0 }
 0x107   : > { %v1286_v35 = vpop.trf.xlu0  ;;  %v5911_v43 = vpop.trf.xlu1 }
 0x108   : > { %4417 = vmatmul.mubr.msk.f32.gmra.mrb[58].mxu0 %vm299_vm0, %v296_v13 }
 0x109   : > { %640 = vmatprep.mubr.f32.mxu0 %v8767_v0 }
 0x10b   : > { %v1287_v37 = vpop.trf.xlu0  ;;  %v5922_v47 = vpop.trf.xlu1 }
 0x10c   : > { %4418 = vmatmul.mubr.msk.f32.gmra.mrb[60].mxu0 %vm299_vm0, %v297_v15 }
 0x10d   : > { %646 = vmatprep.mubr.f32.mxu0 %v8767_v0 }
 0x10f   : > { %v1288_v39 = vpop.trf.xlu0  ;;  %v5935_v52 = vpop.trf.xlu1 }
 0x110   : > { %4419 = vmatmul.mubr.msk.f32.gmra.mrb[62].mxu0 %vm299_vm0, %v298_v17 }
 0x111   : > { %1481 = vmatprep.mubr.f32.mxu0 %v8767_v0 }
 0x113   : > { %v5950_v58 = vpop.trf.xlu1 }
 0x114   : > { %4444 = vmatmul.mubr.msk.f32.vlgmr.msra.gmra.mrb[64].mxu0 %vm299_vm0, %v1273_v10  ;;  %v4766_v10 = vpack.c.bf16 %v4499_v8, %v4497_v7 }
 0x115   : > { %1487 = vmatprep.mubr.f32.mxu0 %v8767_v0  ;;  %4765 = vmatpush1.bf16.msra.mxu0 %v4764_v4 }
 0x116   : > { %4767 = vmatprep.subr.bf16.mxu0 %v4766_v10 }
 0x117   : > { %v2296_v6 = vpop.trf.xlu1 }
 0x118   : > { %4445 = vmatmul.mubr.msk.f32.gmra.mrb[66].mxu0 %vm299_vm0, %v1274_v12  ;;  %v4498_v12 = vld [vmem:[%s5765_s20 + $0xb0] sm:$0xff] }
 0x119   : > { %1493 = vmatprep.mubr.f32.mxu0 %v8767_v0 }
 0x11c   : > { %4446 = vmatmul.mubr.msk.f32.gmra.mrb[68].mxu0 %vm299_vm0, %v1275_v14  ;;  %v4768_v14 = vpack.c.bf16 %v4498_v12, %v4496_v11 }
 0x11d   : > { %1499 = vmatprep.mubr.f32.mxu0 %v8767_v0 }
 0x11e   : > { %4769 = vmatpush1.bf16.msra.mxu0 %v4768_v14 }
 0x120   : > { %4447 = vmatmul.mubr.msk.f32.gmra.mrb[70].mxu0 %vm299_vm0, %v1276_v16 }
 0x121   : > { %1505 = vmatprep.mubr.f32.mxu0 %v8767_v0 }
 0x124   : > { %4448 = vmatmul.mubr.msk.f32.gmra.mrb[72].mxu0 %vm299_vm0, %v1277_v18  ;;  %v2297_v18 = vpop.trf.xlu1 }
 0x125   : > { %1511 = vmatprep.mubr.f32.mxu0 %v8767_v0 }
 0x128   : > { %4449 = vmatmul.mubr.msk.f32.gmra.mrb[74].mxu0 %vm299_vm0, %v1278_v19 }
 0x129   : > { %1517 = vmatprep.mubr.f32.mxu0 %v8767_v0 }
 0x12c   : > { %4450 = vmatmul.mubr.msk.f32.gmra.mrb[76].mxu0 %vm299_vm0, %v1279_v21 }
 0x12d   : > { %1523 = vmatprep.mubr.f32.mxu0 %v8767_v0 }
 0x130   : > { %4451 = vmatmul.mubr.msk.f32.gmra.mrb[78].mxu0 %vm299_vm0, %v1280_v23  ;;  %v2298_v23 = vpop.trf.xlu1 }
 0x131   : > { %1529 = vmatprep.mubr.f32.mxu0 %v8767_v0 }
 0x134   : > { %4452 = vmatmul.mubr.msk.f32.gmra.mrb[80].mxu0 %vm299_vm0, %v1281_v25 }
 0x135   : > { %1535 = vmatprep.mubr.f32.mxu0 %v8767_v0 }
 0x138   : > { %4453 = vmatmul.mubr.msk.f32.gmra.mrb[82].mxu0 %vm299_vm0, %v1282_v27 }
 0x139   : > { %1541 = vmatprep.mubr.f32.mxu0 %v8767_v0 }
 0x13c   : > { %4454 = vmatmul.mubr.msk.f32.gmra.mrb[84].mxu0 %vm299_vm0, %v1283_v29  ;;  %v2299_v29 = vpop.trf.xlu1 }
 0x13d   : > { %1547 = vmatprep.mubr.f32.mxu0 %v8767_v0 }
 0x140   : > { %4455 = vmatmul.mubr.msk.f32.gmra.mrb[86].mxu0 %vm299_vm0, %v1284_v31 }
 0x141   : > { %1553 = vmatprep.mubr.f32.mxu0 %v8767_v0 }
 0x144   : > { %4456 = vmatmul.mubr.msk.f32.gmra.mrb[88].mxu0 %vm299_vm0, %v1285_v33 }
 0x145   : > { %1559 = vmatprep.mubr.f32.mxu0 %v8767_v0 }
 0x148   : > { %4457 = vmatmul.mubr.msk.f32.gmra.mrb[90].mxu0 %vm299_vm0, %v1286_v35 }
 0x149   : > { %1565 = vmatprep.mubr.f32.mxu0 %v8767_v0 }
 0x14c   : > { %4458 = vmatmul.mubr.msk.f32.gmra.mrb[92].mxu0 %vm299_vm0, %v1287_v37 }
 0x14d   : > { %1571 = vmatprep.mubr.f32.mxu0 %v8767_v0 }
 0x150   : > { %4459 = vmatmul.mubr.msk.f32.gmra.mrb[94].mxu0 %vm299_vm0, %v1288_v39 }
 0x151   : > { %1577 = vmatprep.mubr.f32.mxu0 %v8767_v0 }
 0x154   : > { %4460 = vmatmul.mubr.msk.f32.gmra.mrb[96].mxu0 %vm299_vm0, %v1305_v20 }
 0x155   : > { %1583 = vmatprep.mubr.f32.mxu0 %v8767_v0 }
 0x158   : > { %4461 = vmatmul.mubr.msk.f32.gmra.mrb[98].mxu0 %vm299_vm0, %v1306_v22 }
 0x159   : > { %1589 = vmatprep.mubr.f32.mxu0 %v8767_v0 }
 0x15c   : > { %4462 = vmatmul.mubr.msk.f32.gmra.mrb[100].mxu0 %vm299_vm0, %v1307_v24 }
 0x15d   : > { %1595 = vmatprep.mubr.f32.mxu0 %v8767_v0 }
 0x160   : > { %4463 = vmatmul.mubr.msk.f32.gmra.mrb[102].mxu0 %vm299_vm0, %v1308_v26 }
 0x161   : > { %1601 = vmatprep.mubr.f32.mxu0 %v8767_v0 }
 0x164   : > { %4464 = vmatmul.mubr.msk.f32.gmra.mrb[104].mxu0 %vm299_vm0, %v1309_v28 }
 0x165   : > { %1607 = vmatprep.mubr.f32.mxu0 %v8767_v0 }
 0x167   : > { %v5915_v44 = vpop.f32.mrb[0].mxu0 }
 0x168   : > { %v5917_v45 = vpop.f32.mrb[1].mxu0  ;;  %4465 = vmatmul.mubr.msk.f32.gmra.mrb[106].mxu0 %vm299_vm0, %v1310_v30 }
 0x169   : > { %v653_v46 = vmax.f32 %v5915_v44, %v5917_v45  ;;  %1613 = vmatprep.mubr.f32.mxu0 %v8767_v0 }
 0x16b   : > { %654 = vmax.xlane.f32.xlu0 %v653_v46  ;;  %v5925_v48 = vpop.f32.mrb[2].mxu0 }
 0x16c   : > { %v5927_v49 = vpop.f32.mrb[3].mxu0  ;;  %4466 = vmatmul.mubr.msk.f32.gmra.mrb[108].mxu0 %vm299_vm0, %v1311_v32 }
 0x16d   : > { %v656_v50 = vmax.f32 %v5925_v48, %v5927_v49  ;;  %1619 = vmatprep.mubr.f32.mxu0 %v8767_v0 }
 0x16f   : > { %657 = vmax.xlane.f32.xlu1 %v656_v50  ;;  %v5933_v51 = vpop.f32.mrb[4].mxu0 }
 0x170   : > { %v5937_v53 = vpop.f32.mrb[5].mxu0  ;;  %4467 = vmatmul.mubr.msk.f32.gmra.mrb[110].mxu0 %vm299_vm0, %v1312_v34  ;;  %v2300_v34 = vpop.trf.xlu1 }
 0x171   : > { %v659_v54 = vmax.f32 %v5933_v51, %v5937_v53  ;;  %1625 = vmatprep.mubr.f32.mxu0 %v8767_v0 }
 0x173   : > { %660 = vmax.xlane.f32.xlu0 %v659_v54  ;;  %v5943_v55 = vpop.f32.mrb[6].mxu0 }
 0x174   : > { %v5945_v56 = vpop.f32.mrb[7].mxu0  ;;  %4468 = vmatmul.mubr.msk.f32.gmra.mrb[112].mxu0 %vm299_vm0, %v1313_v36 }
 0x175   : > { %v662_v57 = vmax.f32 %v5943_v55, %v5945_v56  ;;  %1631 = vmatprep.mubr.f32.mxu0 %v8767_v0 }
 0x177   : > { %663 = vmax.xlane.f32.xlu0 %v662_v57  ;;  %v5953_v59 = vpop.f32.mrb[8].mxu0 }
 0x178   : > { %v5957_v62 = vpop.f32.mrb[9].mxu0  ;;  %4469 = vmatmul.mubr.msk.f32.gmra.mrb[114].mxu0 %vm299_vm0, %v1314_v38 }
 0x179   : > { %v665_v3 = vmax.f32 %v5953_v59, %v5957_v62  ;;  %1637 = vmatprep.mubr.f32.mxu0 %v8767_v0 }
 0x17b   : > { %666 = vmax.xlane.f32.xlu0 %v665_v3  ;;  %v5965_v5 = vpop.f32.mrb[10].mxu0 }
 0x17c   : > { %v5969_v9 = vpop.f32.mrb[11].mxu0  ;;  %4470 = vmatmul.mubr.msk.f32.gmra.mrb[116].mxu0 %vm299_vm0, %v1315_v40  ;;  %v2301_v40 = vpop.trf.xlu1 }
 0x17d   : > { %v668_v13 = vmax.f32 %v5965_v5, %v5969_v9  ;;  %1643 = vmatprep.mubr.f32.mxu0 %v8767_v0 }
 0x17f   : > { %669 = vmax.xlane.f32.xlu0 %v668_v13  ;;  %v5977_v15 = vpop.f32.mrb[12].mxu0 }
 0x180   : > { %v5979_v16 = vpop.f32.mrb[13].mxu0  ;;  %4471 = vmatmul.mubr.msk.f32.gmra.mrb[118].mxu0 %vm299_vm0, %v5901_v41 }
 0x181   : > { %v671_v17 = vmax.f32 %v5977_v15, %v5979_v16  ;;  %1649 = vmatprep.mubr.f32.mxu0 %v8767_v0 }
 0x183   : > { %672 = vmax.xlane.f32.xlu0 %v671_v17  ;;  %v5986_v19 = vpop.f32.mrb[14].mxu0 }
 0x184   : > { %v5988_v20 = vpop.f32.mrb[15].mxu0  ;;  %4472 = vmatmul.mubr.msk.f32.gmra.mrb[120].mxu0 %vm299_vm0, %v5906_v42 }
 0x185   : > { %v674_v21 = vmax.f32 %v5986_v19, %v5988_v20  ;;  %1655 = vmatprep.mubr.f32.mxu0 %v8767_v0 }
 0x187   : > { %675 = vmax.xlane.f32.xlu0 %v674_v21  ;;  %v5995_v22 = vpop.f32.mrb[16].mxu0 }
 0x188   : > { %v5997_v24 = vpop.f32.mrb[17].mxu0  ;;  %4473 = vmatmul.mubr.msk.f32.gmra.mrb[122].mxu0 %vm299_vm0, %v5911_v43 }
 0x189   : > { %v677_v25 = vmax.f32 %v5995_v22, %v5997_v24  ;;  %1661 = vmatprep.mubr.f32.mxu0 %v8767_v0 }
 0x18b   : > { %678 = vmax.xlane.f32.xlu0 %v677_v25  ;;  %v6004_v26 = vpop.f32.mrb[18].mxu0 }
 0x18c   : > { %v6006_v27 = vpop.f32.mrb[19].mxu0  ;;  %4474 = vmatmul.mubr.msk.f32.gmra.mrb[124].mxu0 %vm299_vm0, %v5922_v47  ;;  %v2302_v47 = vpop.trf.xlu1 }
 0x18d   : > { %v680_v28 = vmax.f32 %v6004_v26, %v6006_v27  ;;  %1667 = vmatprep.mubr.f32.mxu0 %v8767_v0 }
 0x18f   : > { %681 = vmax.xlane.f32.xlu0 %v680_v28  ;;  %v6013_v30 = vpop.f32.mrb[20].mxu0 }
 0x190   : > { %9261 = vst [vmem:[#allocation2_spill] sm:$0xff] %v6013_v30  ;;  %v6015_v31 = vpop.f32.mrb[21].mxu0  ;;  %4475 = vmatmul.mubr.msk.f32.gmra.mrb[126].mxu0 %vm299_vm0, %v5935_v52  ;;  %v2303_v60 = vpop.trf.xlu1 }
 0x191   : > { %9262 = vst [vmem:[#allocation3_spill] sm:$0xff] %v6015_v31  ;;  %v683_v32 = vmax.f32 %v6013_v30, %v6015_v31  ;;  %2503 = vmatprep.mubr.f32.mxu0 %v8767_v0 }
 0x193   : > { %684 = vmax.xlane.f32.xlu0 %v683_v32  ;;  %v6022_v33 = vpop.f32.mrb[22].mxu0 }
 0x194   : > { %v6024_v35 = vpop.f32.mrb[23].mxu0  ;;  %4508 = vmatmul.mubr.msk.f32.vlgmr.msra.gmra.mrb[128].mxu0 %vm299_vm0, %v5950_v58  ;;  %v2304_v3 = vpop.trf.xlu1 }
 0x195   : > { %v686_v36 = vmax.f32 %v6022_v33, %v6024_v35  ;;  %2509 = vmatprep.mubr.f32.mxu0 %v8767_v0 }
 0x197   : > { %687 = vmax.xlane.f32.xlu0 %v686_v36  ;;  %v6031_v37 = vpop.f32.mrb[24].mxu0 }
 0x198   : > { %v6033_v38 = vpop.f32.mrb[25].mxu0  ;;  %4509 = vmatmul.mubr.msk.f32.gmra.mrb[130].mxu0 %vm299_vm0, %v2296_v6  ;;  %v2305_v11 = vpop.trf.xlu1 }
 0x199   : > { %v689_v39 = vmax.f32 %v6031_v37, %v6033_v38  ;;  %2515 = vmatprep.mubr.f32.mxu0 %v8767_v0 }
 0x19b   : > { %690 = vmax.xlane.f32.xlu0 %v689_v39  ;;  %v6039_v41 = vpop.f32.mrb[26].mxu0 }
 0x19c   : > { %v6041_v42 = vpop.f32.mrb[27].mxu0  ;;  %4510 = vmatmul.mubr.msk.f32.gmra.mrb[132].mxu0 %vm299_vm0, %v2297_v18  ;;  %v2306_v18 = vpop.trf.xlu1 }
 0x19d   : > { %v692_v43 = vmax.f32 %v6039_v41, %v6041_v42  ;;  %2521 = vmatprep.mubr.f32.mxu0 %v8767_v0 }
 0x19f   : > { %693 = vmax.xlane.f32.xlu0 %v692_v43  ;;  %v6047_v46 = vpop.f32.mrb[28].mxu0 }
 0x1a0   : > { %v6049_v50 = vpop.f32.mrb[29].mxu0  ;;  %4511 = vmatmul.mubr.msk.f32.gmra.mrb[134].mxu0 %vm299_vm0, %v2298_v23  ;;  %v2307_v32 = vpop.trf.xlu1 }
 0x1a1   : > { %v695_v52 = vmax.f32 %v6047_v46, %v6049_v50  ;;  %2527 = vmatprep.mubr.f32.mxu0 %v8767_v0 }
 0x1a3   : > { %696 = vmax.xlane.f32.xlu0 %v695_v52  ;;  %v6055_v54 = vpop.f32.mrb[30].mxu0 }
 0x1a4   : > { %v6057_v57 = vpop.f32.mrb[31].mxu0  ;;  %4512 = vmatmul.mubr.msk.f32.gmra.mrb[136].mxu0 %vm299_vm0, %v2299_v29  ;;  %v2308_v43 = vpop.trf.xlu1 }
 0x1a5   : > { %v698_v58 = vmax.f32 %v6055_v54, %v6057_v57  ;;  %2533 = vmatprep.mubr.f32.mxu0 %v8767_v0 }
 0x1a7   : > { %699 = vmax.xlane.f32.xlu0 %v698_v58  ;;  %v6063_v61 = vpop.f32.mrb[32].mxu0 }
 0x1a8   : > { %v6065_v63 = vpop.f32.mrb[33].mxu0  ;;  %4513 = vmatmul.mubr.msk.f32.gmra.mrb[138].mxu0 %vm299_vm0, %v2300_v34 }
 0x1a9   : > { %v701_v1 = vmax.f32 %v6063_v61, %v6065_v63  ;;  %2539 = vmatprep.mubr.f32.mxu0 %v8767_v0 }
 0x1ab   : > { %702 = vmax.xlane.f32.xlu0 %v701_v1  ;;  %v6071_v2 = vpop.f32.mrb[34].mxu0 }
 0x1ac   : > { %v6073_v4 = vpop.f32.mrb[35].mxu0  ;;  %4514 = vmatmul.mubr.msk.f32.gmra.mrb[140].mxu0 %vm299_vm0, %v2301_v40 }
 0x1ad   : > { %v704_v6 = vmax.f32 %v6071_v2, %v6073_v4  ;;  %2545 = vmatprep.mubr.f32.mxu0 %v8767_v0 }
 0x1af   : > { %705 = vmax.xlane.f32.xlu1 %v704_v6  ;;  %v6079_v7 = vpop.f32.mrb[36].mxu0 }
 0x1b0   : > { %9263 = vst [vmem:[#allocation4_spill] sm:$0xff] %v6079_v7  ;;  %v6081_v8 = vpop.f32.mrb[37].mxu0  ;;  %4515 = vmatmul.mubr.msk.f32.gmra.mrb[142].mxu0 %vm299_vm0, %v2302_v47 }
 0x1b1   : > { %9264 = vst [vmem:[#allocation5_spill] sm:$0xff] %v6081_v8  ;;  %v707_v10 = vmax.f32 %v6079_v7, %v6081_v8  ;;  %2551 = vmatprep.mubr.f32.mxu0 %v8767_v0 }
 0x1b3   : > { %708 = vmax.xlane.f32.xlu0 %v707_v10  ;;  %v6087_v12 = vpop.f32.mrb[38].mxu0 }
 0x1b4   : > { %v6089_v13 = vpop.f32.mrb[39].mxu0  ;;  %4516 = vmatmul.mubr.msk.f32.gmra.mrb[144].mxu0 %vm299_vm0, %v2303_v60 }
 0x1b5   : > { %v710_v14 = vmax.f32 %v6087_v12, %v6089_v13  ;;  %2557 = vmatprep.mubr.f32.mxu0 %v8767_v0 }
 0x1b7   : > { %711 = vmax.xlane.f32.xlu1 %v710_v14  ;;  %v6095_v17 = vpop.f32.mrb[40].mxu0 }
 0x1b8   : > { %v6097_v21 = vpop.f32.mrb[41].mxu0  ;;  %4517 = vmatmul.mubr.msk.f32.gmra.mrb[146].mxu0 %vm299_vm0, %v2304_v3  ;;  %v2309_v3 = vpop.trf.xlu1 }
 0x1b9   : > { %9265 = vst [vmem:[#allocation6_spill] sm:$0xff] %v6097_v21  ;;  %v713_v23 = vmax.f32 %v6095_v17, %v6097_v21  ;;  %2563 = vmatprep.mubr.f32.mxu0 %v8767_v0 }
 0x1bb   : > { %714 = vmax.xlane.f32.xlu1 %v713_v23  ;;  %v6103_v25 = vpop.f32.mrb[42].mxu0 }
 0x1bc   : > { %9266 = vst [vmem:[#allocation7_spill] sm:$0xff] %v6103_v25  ;;  %v6105_v28 = vpop.f32.mrb[43].mxu0  ;;  %4518 = vmatmul.mubr.msk.f32.gmra.mrb[148].mxu0 %vm299_vm0, %v2305_v11 }
 0x1bd   : > { %9267 = vst [vmem:[#allocation8_spill] sm:$0xff] %v6105_v28  ;;  %v716_v29 = vmax.f32 %v6103_v25, %v6105_v28  ;;  %2569 = vmatprep.mubr.f32.mxu0 %v8767_v0  ;;  %v4552_v28 = vld [vmem:[%s5759_s17 + $0xe0] sm:$0xff] }
 0x1bf   : > { %717 = vmax.xlane.f32.xlu1 %v716_v29  ;;  %v6111_v34 = vpop.f32.mrb[44].mxu0 }
 0x1c0   : > { %9268 = vst [vmem:[#allocation9_spill] sm:$0xff] %v6111_v34  ;;  %v6113_v36 = vpop.f32.mrb[45].mxu0  ;;  %4519 = vmatmul.mubr.msk.f32.gmra.mrb[150].mxu0 %vm299_vm0, %v2306_v18  ;;  %v2310_v18 = vpop.trf.xlu1 }
 0x1c1   : > { %9269 = vst [vmem:[#allocation10_spill] sm:$0xff] %v6113_v36  ;;  %v719_v39 = vmax.f32 %v6111_v34, %v6113_v36  ;;  %2575 = vmatprep.mubr.f32.mxu0 %v8767_v0 }
 0x1c3   : > { %720 = vmax.xlane.f32.xlu1 %v719_v39  ;;  %v6119_v40 = vpop.f32.mrb[46].mxu0 }
 0x1c4   : > { %9270 = vst [vmem:[#allocation11_spill] sm:$0xff] %v6119_v40  ;;  %v6121_v47 = vpop.f32.mrb[47].mxu0  ;;  %4520 = vmatmul.mubr.msk.f32.gmra.mrb[152].mxu0 %vm299_vm0, %v2307_v32 }
 0x1c5   : > { %9271 = vst [vmem:[#allocation12_spill] sm:$0xff] %v6121_v47  ;;  %v722_v52 = vmax.f32 %v6119_v40, %v6121_v47  ;;  %2581 = vmatprep.mubr.f32.mxu0 %v8767_v0 }
 0x1c7   : > { %723 = vmax.xlane.f32.xlu1 %v722_v52  ;;  %v6127_v58 = vpop.f32.mrb[48].mxu0 }
 0x1c8   : > { %9272 = vst [vmem:[#allocation13_spill] sm:$0xff] %v6127_v58  ;;  %v6129_v60 = vpop.f32.mrb[49].mxu0  ;;  %4521 = vmatmul.mubr.msk.f32.gmra.mrb[154].mxu0 %vm299_vm0, %v2308_v43 }
 0x1c9   : > { %9273 = vst [vmem:[#allocation14_spill] sm:$0xff] %v6129_v60  ;;  %v725_v1 = vmax.f32 %v6127_v58, %v6129_v60  ;;  %2587 = vmatprep.mubr.f32.mxu0 %v8767_v0 }
 0x1cb   : > { %726 = vmax.xlane.f32.xlu1 %v725_v1  ;;  %v6135_v6 = vpop.f32.mrb[50].mxu0 }
 0x1cc   : > { %9274 = vst [vmem:[#allocation15_spill] sm:$0xff] %v6135_v6  ;;  %v6137_v10 = vpop.f32.mrb[51].mxu0  ;;  %4522 = vmatmul.mubr.msk.f32.gmra.mrb[156].mxu0 %vm299_vm0, %v2309_v3 }
 0x1cd   : > { %9275 = vst [vmem:[#allocation16_spill] sm:$0xff] %v6137_v10  ;;  %v728_v11 = vmax.f32 %v6135_v6, %v6137_v10  ;;  %2593 = vmatprep.mubr.f32.mxu0 %v8767_v0 }
 0x1cf   : > { %729 = vmax.xlane.f32.xlu1 %v728_v11  ;;  %v6143_v14 = vpop.f32.mrb[52].mxu0 }
 0x1d0   : > { %9276 = vst [vmem:[#allocation17_spill] sm:$0xff] %v6143_v14  ;;  %v6145_v23 = vpop.f32.mrb[53].mxu0  ;;  %4523 = vmatmul.mubr.msk.f32.gmra.mrb[158].mxu0 %vm299_vm0, %v2310_v18 }
 0x1d1   : > { %9277 = vst [vmem:[#allocation18_spill] sm:$0xff] %v6145_v23  ;;  %v731_v29 = vmax.f32 %v6143_v14, %v6145_v23  ;;  %2599 = vmatprep.mubr.f32.mxu0 %v8767_v0  ;;  %v4485_v0 = vld [vmem:[%s5759_s17 + $0x88] sm:$0xff] }
 0x1d3   : > { %732 = vmax.xlane.f32.xlu1 %v731_v29  ;;  %v6151_v32 = vpop.f32.mrb[54].mxu0 }
 0x1d4   : > { %9278 = vst [vmem:[#allocation19_spill] sm:$0xff] %v6151_v32  ;;  %v6153_v39 = vpop.f32.mrb[55].mxu0 }
 0x1d5   : > { %9279 = vst [vmem:[#allocation20_spill] sm:$0xff] %v6153_v39  ;;  %v734_v43 = vmax.f32 %v6151_v32, %v6153_v39 }
 0x1d7   : > { %735 = vmax.xlane.f32.xlu1 %v734_v43  ;;  %v6157_v52 = vpop.f32.mrb[56].mxu0 }
 0x1d8   : > { %9280 = vst [vmem:[#allocation21_spill] sm:$0xff] %v6157_v52  ;;  %v6159_v1 = vpop.f32.mrb[57].mxu0 }
 0x1d9   : > { %9281 = vst [vmem:[#allocation22_spill] sm:$0xff] %v6159_v1  ;;  %v737_v3 = vmax.f32 %v6157_v52, %v6159_v1  ;;  %v4487_v52 = vld [vmem:[%s5759_s17 + $0x98] sm:$0xff] }
 0x1da   : > { %v4491_v1 = vld [vmem:[%s5759_s17 + $0xb8] sm:$0xff] }
 0x1db   : > { %738 = vmax.xlane.f32.xlu1 %v737_v3  ;;  %v6163_v11 = vpop.f32.mrb[58].mxu0 }
 0x1dc   : > { %9282 = vst [vmem:[#allocation23_spill] sm:$0xff] %v6163_v11  ;;  %v6165_v18 = vpop.f32.mrb[59].mxu0 }
 0x1dd   : > { %9283 = vst [vmem:[#allocation24_spill] sm:$0xff] %v6165_v18  ;;  %v740_v29 = vmax.f32 %v6163_v11, %v6165_v18  ;;  %v4489_v11 = vld [vmem:[%s5759_s17 + $0xa8] sm:$0xff] }
 0x1df   : > { %741 = vmax.xlane.f32.xlu1 %v740_v29  ;;  %v6170_v43 = vpop.f32.mrb[60].mxu0 }
 0x1e0   : > { %9284 = vst [vmem:[#allocation25_spill] sm:$0xff] %v6170_v43  ;;  %2311 = vxpose.xlu0.b32.start [1/4] (short) %v4485_v0, 128  ;;  %v6172_v39 = vpop.f32.mrb[61].mxu0 }
 0x1e1   : > { %9285 = vst [vmem:[#allocation26_spill] sm:$0xff] %v6172_v39 }
 0x1e3   : > { %v6177_v3 = vpop.f32.mrb[62].mxu0 }
 0x1e4   : > { %2312 = vxpose.xlu0.b32.cont [2/4] (short) %v4487_v52, 128  ;;  %v6179_v32 = vpop.f32.mrb[63].mxu0 }
 0x1e5   : > { %v746_v18 = vmax.f32 %v6177_v3, %v6179_v32 }
 0x1e7   : > { %747 = vmax.xlane.f32.xlu1 %v746_v18  ;;  %v6184_v29 = vpop.f32.mrb[64].mxu0 }
 0x1e8   : > { %9286 = vst [vmem:[#allocation27_spill] sm:$0xff] %v6184_v29  ;;  %2313 = vxpose.xlu0.b32.cont [3/4] (short) %v4489_v11, 128  ;;  %v6186_v0 = vpop.f32.mrb[65].mxu0 }
 0x1e9   : > { %9287 = vst [vmem:[#allocation28_spill] sm:$0xff] %v6186_v0 }
 0x1eb   : > { %v6191_v14 = vpop.f32.mrb[66].mxu0 }
 0x1ec   : > { %9288 = vst [vmem:[#allocation29_spill] sm:$0xff] %v6191_v14  ;;  %2314 = vxpose.xlu0.b32.end [4/4] (short) %v4491_v1, 128  ;;  %v6193_v52 = vpop.f32.mrb[67].mxu0 }
 0x1ed   : > { %9289 = vst [vmem:[#allocation30_spill] sm:$0xff] %v6193_v52  ;;  %v1677_v10 = vmax.f32 %v6191_v14, %v6193_v52 }
 0x1ef   : > { %1678 = vmax.xlane.f32.xlu1 %v1677_v10  ;;  %v6197_v6 = vpop.f32.mrb[68].mxu0 }
 0x1f0   : > { %9290 = vst [vmem:[#allocation31_spill] sm:$0xff] %v6197_v6  ;;  %v6199_v18 = vpop.f32.mrb[69].mxu0 }
 0x1f1   : > { %9291 = vst [vmem:[#allocation32_spill] sm:$0xff] %v6199_v18 }
 0x1f3   : > { %v6203_v39 = vpop.f32.mrb[70].mxu0 }
 0x1f4   : > { %9292 = vst [vmem:[#allocation33_spill] sm:$0xff] %v6203_v39  ;;  %v6205_v23 = vpop.f32.mrb[71].mxu0 }
 0x1f5   : > { %9293 = vst [vmem:[#allocation34_spill] sm:$0xff] %v6205_v23 }
 0x1f7   : > { %v6209_v0 = vpop.f32.mrb[72].mxu0 }
 0x1f8   : > { %9294 = vst [vmem:[#allocation35_spill] sm:$0xff] %v6209_v0  ;;  %v655_v29 = vpop.xlane.xlu0 %654  ;;  %v6211_v43 = vpop.f32.mrb[73].mxu0 }
 0x1f9   : > { %9295 = vst [vmem:[#allocation36_spill] sm:$0xff] %v6211_v43  ;;  %v749_v10 = vsub.f32 %v5915_v44, %v655_v29  ;;  %v750_v60 = vsub.f32 %v5917_v45, %v655_v29 }
 0x1fb   : > { %v813_v11 = vmul.f32 1.442695, %v749_v10  ;;  %v815_v47 = vmul.f32 1.442695, %v750_v60  ;;  %v6217_v40 = vpop.f32.mrb[74].mxu0 }
 0x1fc   : > { %9296 = vst [vmem:[#allocation37_spill] sm:$0xff] %v6217_v40  ;;  %v658_v8 = vpop.xlane.xlu1 %657  ;;  %v6219_v7 = vpop.f32.mrb[75].mxu0 }
 0x1fd   : > { %9297 = vst [vmem:[#allocation38_spill] sm:$0xff] %v6219_v7  ;;  %4947 = vpow2.f32 %v813_v11  ;;  %v751_v1 = vsub.f32 %v5925_v48, %v658_v8  ;;  %v752_v36 = vsub.f32 %v5927_v49, %v658_v8 }
 0x1fe   : > { %4949 = vpow2.f32 %v815_v47 }
 0x1ff   : > { %v817_v45 = vmul.f32 1.442695, %v751_v1  ;;  %v819_v29 = vmul.f32 1.442695, %v752_v36  ;;  %v6225_v34 = vpop.f32.mrb[76].mxu0 }
 0x200   : > { %9298 = vst [vmem:[#allocation39_spill] sm:$0xff] %v6225_v34  ;;  %v661_v10 = vpop.xlane.xlu0 %660  ;;  %v6227_v60 = vpop.f32.mrb[77].mxu0 }
 0x201   : > { %9299 = vst [vmem:[#allocation40_spill] sm:$0xff] %v6227_v60  ;;  %4951 = vpow2.f32 %v817_v45  ;;  %v753_v58 = vsub.f32 %v5933_v51, %v661_v10  ;;  %v754_v11 = vsub.f32 %v5937_v53, %v661_v10 }
 0x202   : > { %4953 = vpow2.f32 %v819_v29 }
 0x203   : > { %v821_v49 = vmul.f32 1.442695, %v753_v58  ;;  %v823_v8 = vmul.f32 1.442695, %v754_v11  ;;  %v6233_v44 = vpop.f32.mrb[78].mxu0 }
 0x204   : > { %9300 = vst [vmem:[#allocation41_spill] sm:$0xff] %v6233_v44  ;;  %v664_v47 = vpop.xlane.xlu0 %663  ;;  %v6235_v36 = vpop.f32.mrb[79].mxu0 }
 0x205   : > { %9301 = vst [vmem:[#allocation42_spill] sm:$0xff] %v6235_v36  ;;  %4955 = vpow2.f32 %v821_v49  ;;  %v755_v1 = vsub.f32 %v5943_v55, %v664_v47  ;;  %v756_v45 = vsub.f32 %v5945_v56, %v664_v47 }
 0x206   : > { %4957 = vpow2.f32 %v823_v8 }
 0x207   : > { %v6241_v53 = vpop.eup %4947  ;;  %v825_v10 = vmul.f32 1.442695, %v755_v1  ;;  %v827_v29 = vmul.f32 1.442695, %v756_v45  ;;  %v6243_v58 = vpop.f32.mrb[80].mxu0 }
 0x208   : > { %9302 = vst [vmem:[#allocation43_spill] sm:$0xff] %v6241_v53  ;;  %9303 = vst [vmem:[#allocation44_spill] sm:$0xff] %v6243_v58  ;;  %v6245_v11 = vpop.eup %4949  ;;  %v667_v48 = vpop.xlane.xlu0 %666 }
 0x209   : > { %9304 = vst [vmem:[#allocation45_spill] sm:$0xff] %v6245_v11  ;;  %v6247_v31 = vpop.f32.mrb[81].mxu0  ;;  %4959 = vpow2.f32 %v825_v10  ;;  %v757_v55 = vsub.f32 %v5953_v59, %v667_v48  ;;  %v758_v56 = vsub.f32 %v5957_v62, %v667_v48  ;;  %v941_v49 = vadd.f32 %v6245_v11, %v6241_v53 }
 0x20a   : > { %9305 = vst [vmem:[#allocation46_spill] sm:$0xff] %v6247_v31  ;;  %4961 = vpow2.f32 %v827_v29 }
 0x20b   : > { %v6255_v47 = vpop.eup %4951  ;;  %v829_v1 = vmul.f32 1.442695, %v757_v55  ;;  %v831_v45 = vmul.f32 1.442695, %v758_v56  ;;  %942 = vadd.xlane.f32.xlu1 %v941_v49  ;;  %v6257_v51 = vpop.f32.mrb[82].mxu0 }
 0x20c   : > { %9306 = vst [vmem:[#allocation47_spill] sm:$0xff] %v6255_v47  ;;  %9307 = vst [vmem:[#allocation48_spill] sm:$0xff] %v6257_v51  ;;  %v6259_v52 = vpop.eup %4953  ;;  %v670_v10 = vpop.xlane.xlu0 %669 }
 0x20d   : > { %9308 = vst [vmem:[#allocation49_spill] sm:$0xff] %v6259_v52  ;;  %v6261_v59 = vpop.f32.mrb[83].mxu0  ;;  %4963 = vpow2.f32 %v829_v1  ;;  %v759_v62 = vsub.f32 %v5965_v5, %v670_v10  ;;  %v760_v48 = vsub.f32 %v5969_v9, %v670_v10  ;;  %v944_v29 = vadd.f32 %v6259_v52, %v6255_v47 }
 0x20e   : > { %9309 = vst [vmem:[#allocation50_spill] sm:$0xff] %v6261_v59  ;;  %4965 = vpow2.f32 %v831_v45 }
 0x20f   : > { %v6269_v56 = vpop.eup %4955  ;;  %v833_v49 = vmul.f32 1.442695, %v759_v62  ;;  %v835_v8 = vmul.f32 1.442695, %v760_v48  ;;  %945 = vadd.xlane.f32.xlu1 %v944_v29  ;;  %v6271_v53 = vpop.f32.mrb[84].mxu0 }
 0x210   : > { %9310 = vst [vmem:[#allocation51_spill] sm:$0xff] %v6269_v56  ;;  %9311 = vst [vmem:[#allocation52_spill] sm:$0xff] %v6271_v53  ;;  %v6273_v11 = vpop.eup %4957  ;;  %v6275_v1 = vpop.xlane.xlu0 %672 }
 0x211   : > { %9312 = vst [vmem:[#allocation53_spill] sm:$0xff] %v6273_v11  ;;  %v6277_v5 = vpop.f32.mrb[85].mxu0  ;;  %4967 = vpow2.f32 %v833_v49  ;;  %v947_v9 = vadd.f32 %v6273_v11, %v6269_v56 }
 0x212   : > { %9313 = vst [vmem:[#allocation54_spill] sm:$0xff] %v6277_v5  ;;  %4969 = vpow2.f32 %v835_v8 }
 0x213   : > { %v6283_v10 = vpop.eup %4959  ;;  %948 = vadd.xlane.f32.xlu1 %v947_v9  ;;  %v6285_v62 = vpop.f32.mrb[86].mxu0 }
 0x214   : > { %9314 = vst [vmem:[#allocation55_spill] sm:$0xff] %v6283_v10  ;;  %9315 = vst [vmem:[#allocation56_spill] sm:$0xff] %v6285_v62  ;;  %v6287_v48 = vpop.eup %4961  ;;  %v676_v29 = vpop.xlane.xlu0 %675 }
 0x215   : > { %9316 = vst [vmem:[#allocation57_spill] sm:$0xff] %v6287_v48  ;;  %v6289_v55 = vpop.f32.mrb[87].mxu0  ;;  %v763_v49 = vsub.f32 %v5986_v19, %v676_v29  ;;  %v764_v47 = vsub.f32 %v5988_v20, %v676_v29  ;;  %v950_v8 = vadd.f32 %v6287_v48, %v6283_v10  ;;  %v4548_v29 = vld [vmem:[%s5759_s17 + $0xc0] sm:$0xff] }
 0x216   : > { %9317 = vst [vmem:[#allocation58_spill] sm:$0xff] %v6289_v55 }
 0x217   : > { %v6297_v56 = vpop.eup %4963  ;;  %v841_v9 = vmul.f32 1.442695, %v763_v49  ;;  %v843_v11 = vmul.f32 1.442695, %v764_v47  ;;  %951 = vadd.xlane.f32.xlu1 %v950_v8  ;;  %v6299_v52 = vpop.f32.mrb[88].mxu0  ;;  %v4554_v49 = vld [vmem:[%s5759_s17 + $0xf0] sm:$0xff] }
 0x218   : > { %9318 = vst [vmem:[#allocation59_spill] sm:$0xff] %v6297_v56  ;;  %9319 = vst [vmem:[#allocation60_spill] sm:$0xff] %v6299_v52  ;;  %v6301_v14 = vpop.eup %4965  ;;  %v6303_v30 = vpop.xlane.xlu0 %678 }
 0x219   : > { %9320 = vst [vmem:[#allocation61_spill] sm:$0xff] %v6301_v14  ;;  %v6305_v19 = vpop.f32.mrb[89].mxu0  ;;  %4971 = vpow2.f32 %v841_v9  ;;  %v953_v20 = vadd.f32 %v6301_v14, %v6297_v56 }
 0x21a   : > { %9321 = vst [vmem:[#allocation62_spill] sm:$0xff] %v6305_v19  ;;  %4973 = vpow2.f32 %v843_v11  ;;  %v4550_v11 = vld [vmem:[%s5759_s17 + $0xd0] sm:$0xff] }
 0x21b   : > { %v6312_v47 = vpop.eup %4967  ;;  %954 = vadd.xlane.f32.xlu1 %v953_v20  ;;  %v6314_v8 = vpop.f32.mrb[90].mxu0 }
 0x21c   : > { %9322 = vst [vmem:[#allocation63_spill] sm:$0xff] %v6312_v47  ;;  %v6316_v45 = vpop.eup %4969  ;;  %v6318_v10 = vpop.f32.mrb[91].mxu0 }
 0x21d   : > { %9323 = vst [vmem:[#allocation64_spill] sm:$0xff] %v6316_v45  ;;  %9324 = vst [vmem:[#allocation65_spill] sm:$0xff] %v6318_v10  ;;  %v682_v48 = vpop.xlane.xlu0 %681  ;;  %3301 = vxpose.xlu0.b32.start [1/4] (short) %v4548_v29, 128  ;;  %v956_v9 = vadd.f32 %v6316_v45, %v6312_v47 }
 0x21f   : > { %957 = vadd.xlane.f32.xlu1 %v956_v9  ;;  %v6325_v56 = vpop.f32.mrb[92].mxu0 }
 0x220   : > { %9325 = vst [vmem:[#allocation66_spill] sm:$0xff] %v6325_v56  ;;  %v6327_v20 = vpop.f32.mrb[93].mxu0 }
 0x221   : > { %9326 = vst [vmem:[#allocation67_spill] sm:$0xff] %v6327_v20  ;;  %3302 = vxpose.xlu0.b32.cont [2/4] (short) %v4550_v11, 128  ;;  %v6334_v29 = vpop.xlane.xlu0 %684 }
 0x222   : > { %9328 = vst [vmem:[#allocation69_spill] sm:$0xff] %v6334_v29 }
 0x223   : > { %v6332_v25 = vpop.eup %4971  ;;  %v6336_v47 = vpop.f32.mrb[94].mxu0 }
 0x224   : > { %9327 = vst [vmem:[#allocation68_spill] sm:$0xff] %v6332_v25  ;;  %v6338_v45 = vpop.eup %4973  ;;  %v6340_v21 = vpop.f32.mrb[95].mxu0 }
 0x225   : > { %9329 = vst [vmem:[#allocation70_spill] sm:$0xff] %v6338_v45  ;;  %9330 = vst [vmem:[#allocation71_spill] sm:$0xff] %v6340_v21  ;;  %3303 = vxpose.xlu0.b32.cont [3/4] (short) %v4552_v28, 128  ;;  %v962_v9 = vadd.f32 %v6338_v45, %v6332_v25  ;;  %v688_v29 = vpop.xlane.xlu0 %687  ;;  %v9333_v28 = vmax.f32 %v6197_v6, %v6199_v18  ;;  %v9336_v45 = vmax.f32 %v6203_v39, %v6205_v23 }
 0x226   : > { %v9339_v18 = vmax.f32 %v6209_v0, %v6211_v43  ;;  %v772_v43 = vsub.f32 %v6024_v35, %v688_v29 }
 0x227   : > { %963 = vadd.xlane.f32.xlu1 %v962_v9  ;;  %v6347_v14 = vpop.f32.mrb[96].mxu0  ;;  %v768_v9 = vsub.f32 %v6006_v27, %v682_v48 }
 0x228   : > { %9331 = vst [vmem:[#allocation72_spill] sm:$0xff] %v6347_v14  ;;  %v6349_v20 = vpop.f32.mrb[97].mxu0 }
 0x229   : > { %9332 = vst [vmem:[#allocation73_spill] sm:$0xff] %v6349_v20  ;;  %3304 = vxpose.xlu0.b32.end [4/4] (short) %v4554_v49, 128  ;;  %v691_v11 = vpop.xlane.xlu0 %690 }
 0x22a   : > { %v774_v35 = vsub.f32 %v6033_v38, %v691_v11 }
 0x22b   : > { %1681 = vmax.xlane.f32.xlu1 %v9333_v28  ;;  %v6356_v10 = vpop.f32.mrb[98].mxu0  ;;  %v767_v28 = vsub.f32 %v6004_v26, %v682_v48  ;;  %v9340_v26 = vmax.f32 %v6217_v40, %v6219_v7 }
 0x22c   : > { %9334 = vst [vmem:[#allocation74_spill] sm:$0xff] %v6356_v10  ;;  %v6358_v25 = vpop.f32.mrb[99].mxu0  ;;  %v771_v10 = vsub.f32 %v6022_v33, %v688_v29  ;;  %v9343_v33 = vmax.f32 %v6225_v34, %v6227_v60 }
 0x22d   : > { %9335 = vst [vmem:[#allocation75_spill] sm:$0xff] %v6358_v25  ;;  %v849_v39 = vmul.f32 1.442695, %v767_v28  ;;  %v773_v28 = vsub.f32 %v6031_v37, %v691_v11 }
 0x22e   : > { %v857_v48 = vmul.f32 1.442695, %v771_v10  ;;  %v9344_v10 = vmax.f32 %v6233_v44, %v6235_v36 }
 0x22f   : > { %1684 = vmax.xlane.f32.xlu1 %v9336_v45  ;;  %v6365_v49 = vpop.f32.mrb[100].mxu0  ;;  %v694_v45 = vpop.xlane.xlu0 %693  ;;  %4975 = vpow2.f32 %v849_v39  ;;  %v861_v39 = vmul.f32 1.442695, %v773_v28 }
 0x230   : > { %9337 = vst [vmem:[#allocation76_spill] sm:$0xff] %v6365_v49  ;;  %v6367_v21 = vpop.f32.mrb[101].mxu0  ;;  %v775_v37 = vsub.f32 %v6039_v41, %v694_v45 }
 0x231   : > { %9338 = vst [vmem:[#allocation77_spill] sm:$0xff] %v6367_v21 }
 0x232   : > { %v865_v41 = vmul.f32 1.442695, %v775_v37 }
 0x233   : > { %1687 = vmax.xlane.f32.xlu1 %v9339_v18  ;;  %v6375_v6 = vpop.f32.mrb[102].mxu0  ;;  %v851_v18 = vmul.f32 1.442695, %v768_v9  ;;  %v697_v23 = vpop.xlane.xlu0 %696  ;;  %v859_v9 = vmul.f32 1.442695, %v772_v43  ;;  %v776_v43 = vsub.f32 %v6041_v42, %v694_v45 }
 0x234   : > { %v6378_v25 = vpop.f32.mrb[103].mxu0  ;;  %v777_v28 = vsub.f32 %v6047_v46, %v697_v23  ;;  %v778_v45 = vsub.f32 %v6049_v50, %v697_v23  ;;  %v9350_v50 = vmax.f32 %v6257_v51, %v6261_v59 }
 0x235   : > { %4977 = vpow2.f32 %v851_v18  ;;  %v863_v18 = vmul.f32 1.442695, %v774_v35  ;;  %v867_v42 = vmul.f32 1.442695, %v776_v43 }
 0x236   : > { %4979 = vpow2.f32 %v857_v48  ;;  %v869_v37 = vmul.f32 1.442695, %v777_v28 }
 0x237   : > { %1690 = vmax.xlane.f32.xlu1 %v9340_v26  ;;  %v6386_v56 = vpop.f32.mrb[104].mxu0  ;;  %4981 = vpow2.f32 %v859_v9  ;;  %v700_v60 = vpop.xlane.xlu0 %699 }
 0x238   : > { %9341 = vst [vmem:[#allocation78_spill] sm:$0xff] %v6386_v56  ;;  %v6389_v0 = vpop.f32.mrb[105].mxu0  ;;  %4983 = vpow2.f32 %v861_v39  ;;  %v780_v48 = vsub.f32 %v6057_v57, %v700_v60 }
 0x239   : > { %9342 = vst [vmem:[#allocation79_spill] sm:$0xff] %v6389_v0  ;;  %4985 = vpow2.f32 %v863_v18  ;;  %v6428_v36 = vpop.eup %4975  ;;  %v779_v18 = vsub.f32 %v6055_v54, %v700_v60 }
 0x23a   : > { %4987 = vpow2.f32 %v865_v41  ;;  %v875_v44 = vmul.f32 1.442695, %v780_v48 }
 0x23b   : > { %1693 = vmax.xlane.f32.xlu1 %v9343_v33  ;;  %v6397_v26 = vpop.f32.mrb[106].mxu0  ;;  %v703_v43 = vpop.xlane.xlu0 %702  ;;  %4989 = vpow2.f32 %v867_v42  ;;  %v4557_v42 = vld [vmem:[%s5765_s20 + $0xc8] sm:$0xff]  ;;  %v873_v59 = vmul.f32 1.442695, %v779_v18 }
 0x23c   : > { %v6400_v29 = vpop.f32.mrb[107].mxu0  ;;  %v6411_v38 = vpop.xlane.xlu1 %705  ;;  %4991 = vpow2.f32 %v869_v37  ;;  %v781_v57 = vsub.f32 %v6063_v61, %v703_v43  ;;  %v782_v34 = vsub.f32 %v6065_v63, %v703_v43  ;;  %v4558_v37 = vld [vmem:[%s5765_s20 + $0xd0] sm:$0xff]  ;;  %v4561_v63 = vld [vmem:[%s5765_s20 + $0xe8] sm:$0xff]  ;;  %v4563_v43 = vld [vmem:[%s5765_s20 + $0xf8] sm:$0xff] }
 0x23f   : > { %1696 = vmax.xlane.f32.xlu1 %v9344_v10  ;;  %v6408_v33 = vpop.f32.mrb[108].mxu0  ;;  %v9347_v10 = vmax.f32 %v6243_v58, %v6247_v31  ;;  %v6430_v39 = vpop.eup %4977  ;;  %v4556_v58 = vld [vmem:[%s5765_s20 + $0xc0] sm:$0xff] }
 0x240   : > { %9345 = vst [vmem:[#allocation80_spill] sm:$0xff] %v6408_v33  ;;  %v6413_v11 = vpop.f32.mrb[109].mxu0  ;;  %v6445_v41 = vpop.eup %4979  ;;  %v968_v54 = vadd.f32 %v6430_v39, %v6428_v36  ;;  %v4836_v48 = vpack.c.bf16 %v4558_v37, %v4556_v58 }
 0x241   : > { %9346 = vst [vmem:[#allocation81_spill] sm:$0xff] %v6413_v11  ;;  %9353 = vst [vmem:[#allocation86_spill] sm:$0xff] %v6445_v41  ;;  %v6449_v28 = vpop.eup %4981 }
 0x242   : > { %v6465_v18 = vpop.eup %4983  ;;  %v974_v61 = vadd.f32 %v6449_v28, %v6445_v41  ;;  %v4560_v41 = vld [vmem:[%s5765_s20 + $0xe0] sm:$0xff] }
 0x243   : > { %1699 = vmax.xlane.f32.xlu1 %v9347_v10  ;;  %v6421_v9 = vpop.f32.mrb[110].mxu0  ;;  %v871_v10 = vmul.f32 1.442695, %v778_v45  ;;  %v4559_v45 = vld [vmem:[%s5765_s20 + $0xd8] sm:$0xff]  ;;  %9354 = vst [vmem:[#allocation87_spill] sm:$0xff] %v6465_v18 }
 0x244   : > { %9348 = vst [vmem:[#allocation82_spill] sm:$0xff] %v6421_v9  ;;  %v6424_v35 = vpop.xlane.xlu1 %711  ;;  %v6426_v27 = vpop.f32.mrb[111].mxu0  ;;  %v4834_v51 = vpack.c.bf16 %v4559_v45, %v4557_v42  ;;  %v877_v42 = vmul.f32 1.442695, %v781_v57  ;;  %v783_v45 = vsub.f32 %v6071_v2, %v6411_v38 }
 0x245   : > { %9349 = vst [vmem:[#allocation83_spill] sm:$0xff] %v6426_v27  ;;  %4993 = vpow2.f32 %v871_v10 }
 0x246   : > { %4835 = vmatprep.subr.bf16.mxu0 %v4834_v51  ;;  %4995 = vpow2.f32 %v873_v59  ;;  %v879_v51 = vmul.f32 1.442695, %v782_v34  ;;  %v4562_v59 = vld [vmem:[%s5765_s20 + $0xf0] sm:$0xff] }
 0x247   : > { %1702 = vmax.xlane.f32.xlu1 %v9350_v50  ;;  %v6438_v23 = vpop.f32.mrb[112].mxu0  ;;  %4997 = vpow2.f32 %v875_v44  ;;  %4837 = vmatpush1.bf16.msra.mxu0 %v4836_v48  ;;  %v4840_v44 = vpack.c.bf16 %v4562_v59, %v4560_v41  ;;  %v6523_v41 = vpop.xlane.xlu0 %708 }
 0x248   : > { %9351 = vst [vmem:[#allocation84_spill] sm:$0xff] %v6438_v23  ;;  %v6441_v31 = vpop.xlane.xlu1 %714  ;;  %v6443_v46 = vpop.f32.mrb[113].mxu0  ;;  %v784_v23 = vsub.f32 %v6073_v4, %v6411_v38  ;;  %4999 = vpow2.f32 %v877_v42  ;;  %v881_v4 = vmul.f32 1.442695, %v783_v45 }
 0x249   : > { %9352 = vst [vmem:[#allocation85_spill] sm:$0xff] %v6443_v46  ;;  %v4838_v46 = vpack.c.bf16 %v4563_v43, %v4561_v63  ;;  %5001 = vpow2.f32 %v879_v51 }
 0x24a   : > { %5003 = vpow2.f32 %v881_v4 }
 0x24b   : > { %969 = vadd.xlane.f32.xlu1 %v968_v54  ;;  %v6456_v60 = vpop.f32.mrb[114].mxu0  ;;  %v6469_v54 = vpop.eup %4985  ;;  %4839 = vmatprep.subr.bf16.mxu0 %v4838_v46 }
 0x24c   : > { %v6460_v7 = vpop.xlane.xlu1 %717  ;;  %v6462_v50 = vpop.f32.mrb[115].mxu0  ;;  %v977_v2 = vadd.f32 %v6469_v54, %v6465_v18  ;;  %4841 = vmatpush1.bf16.msra.mxu0 %v4840_v44 }
 0x24d   : > { %v6487_v57 = vpop.eup %4987 }
 0x24e   : > { %v6491_v37 = vpop.eup %4989 }
 0x24f   : > { %975 = vadd.xlane.f32.xlu1 %v974_v61  ;;  %v6477_v40 = vpop.f32.mrb[116].mxu0  ;;  %v883_v61 = vmul.f32 1.442695, %v784_v23  ;;  %v6501_v43 = vpop.eup %4991  ;;  %v980_v46 = vadd.f32 %v6491_v37, %v6487_v57 }
 0x250   : > { %9355 = vst [vmem:[#allocation88_spill] sm:$0xff] %v6477_v40  ;;  %v6482_v10 = vpop.xlane.xlu1 %720  ;;  %v6484_v58 = vpop.f32.mrb[117].mxu0  ;;  %9359 = vst [vmem:[#allocation92_spill] sm:$0xff] %v6501_v43 }
 0x251   : > { %9356 = vst [vmem:[#allocation89_spill] sm:$0xff] %v6484_v58  ;;  %v6505_v18 = vpop.eup %4993  ;;  %5005 = vpow2.f32 %v883_v61 }
 0x252   : > { %9360 = vst [vmem:[#allocation93_spill] sm:$0xff] %v6505_v18  ;;  %v6515_v51 = vpop.eup %4995  ;;  %v983_v59 = vadd.f32 %v6505_v18, %v6501_v43  ;;  %v9372_v18 = vmov 0.0  }
 0x253   : > { %978 = vadd.xlane.f32.xlu1 %v977_v2  ;;  %v6495_v38 = vpop.f32.mrb[118].mxu0  ;;  %9363 = vst [vmem:[#allocation96_spill] sm:$0xff] %v6515_v51  ;;  %v6519_v2 = vpop.eup %4997 }
 0x254   : > { %9357 = vst [vmem:[#allocation90_spill] sm:$0xff] %v6495_v38  ;;  %v6497_v48 = vpop.xlane.xlu1 %723  ;;  %v6499_v63 = vpop.f32.mrb[119].mxu0 }
 0x255   : > { %9358 = vst [vmem:[#allocation91_spill] sm:$0xff] %v6499_v63  ;;  %v6531_v34 = vpop.eup %4999  ;;  %v986_v63 = vadd.f32 %v6519_v2, %v6515_v51 }
 0x256   : > { %9366 = vst [vmem:[#allocation99_spill] sm:$0xff] %v6531_v34  ;;  %v6535_v38 = vpop.eup %5001 }
 0x257   : > { %981 = vadd.xlane.f32.xlu1 %v980_v46  ;;  %v6509_v42 = vpop.f32.mrb[120].mxu0  ;;  %9367 = vst [vmem:[#allocation100_spill] sm:$0xff] %v6535_v38  ;;  %v989_v40 = vadd.f32 %v6535_v38, %v6531_v34 }
 0x258   : > { %9361 = vst [vmem:[#allocation94_spill] sm:$0xff] %v6509_v42  ;;  %v6511_v23 = vpop.xlane.xlu1 %726  ;;  %v6513_v45 = vpop.f32.mrb[121].mxu0 }
 0x259   : > { %9362 = vst [vmem:[#allocation95_spill] sm:$0xff] %v6513_v45  ;;  %v6543_v42 = vpop.eup %5003 }
 0x25a   : > { %9369 = vst [vmem:[#allocation102_spill] sm:$0xff] %v6543_v42 }
 0x25b   : > { %984 = vadd.xlane.f32.xlu1 %v983_v59  ;;  %v6525_v4 = vpop.f32.mrb[122].mxu0  ;;  %v6550_v51 = vpop.eup %5005 }
 0x25c   : > { %9364 = vst [vmem:[#allocation97_spill] sm:$0xff] %v6525_v4  ;;  %v6527_v61 = vpop.xlane.xlu1 %729  ;;  %v6529_v46 = vpop.f32.mrb[123].mxu0  ;;  %9371 = vst [vmem:[#allocation104_spill] sm:$0xff] %v6550_v51  ;;  %v992_v34 = vadd.f32 %v6550_v51, %v6543_v42  ;;  %v9377_v42 = vmax.f32 %v6271_v53, %v6277_v5 }
 0x25d   : > { %9365 = vst [vmem:[#allocation98_spill] sm:$0xff] %v6529_v46 }
 0x25f   : > { %987 = vadd.xlane.f32.xlu1 %v986_v63  ;;  %v6539_v44 = vpop.f32.mrb[124].mxu0 }
 0x260   : > { %9368 = vst [vmem:[#allocation101_spill] sm:$0xff] %v6539_v44  ;;  %v6541_v59 = vpop.xlane.xlu1 %732  ;;  %v2327_v45 = vpop.trf.xlu0 }
 0x261   : > { %4524 = vmatmul.mubr.msk.f32.gmra.mrb[160].mxu0 %vm299_vm0, %v2327_v45  ;;  %v6548_v43 = vpop.f32.mrb[125].mxu0 }
 0x262   : > { %9370 = vst [vmem:[#allocation103_spill] sm:$0xff] %v6548_v43  ;;  %2605 = vmatprep.mubr.f32.mxu0 %v9372_v18 }
 0x263   : > { %990 = vadd.xlane.f32.xlu1 %v989_v40  ;;  %v6555_v58 = vpop.f32.mrb[126].mxu0 }
 0x264   : > { %9373 = vst [vmem:[#allocation105_spill] sm:$0xff] %v6555_v58  ;;  %v6557_v46 = vpop.xlane.xlu1 %735  ;;  %v2328_v4 = vpop.trf.xlu0 }
 0x265   : > { %4525 = vmatmul.mubr.msk.f32.gmra.mrb[162].mxu0 %vm299_vm0, %v2328_v4  ;;  %v6562_v45 = vpop.f32.mrb[127].mxu0  ;;  %v762_v4 = vsub.f32 %v5979_v16, %v6275_v1 }
 0x266   : > { %9374 = vst [vmem:[#allocation106_spill] sm:$0xff] %v6562_v45  ;;  %2611 = vmatprep.mubr.f32.mxu0 %v9372_v18 }
 0x267   : > { %993 = vadd.xlane.f32.xlu1 %v992_v34  ;;  %v6567_v63 = vpop.f32.mrb[128].mxu0  ;;  %v839_v16 = vmul.f32 1.442695, %v762_v4 }
 0x268   : > { %9375 = vst [vmem:[#allocation107_spill] sm:$0xff] %v6567_v63  ;;  %v2329_v40 = vpop.trf.xlu0  ;;  %v6569_v43 = vpop.xlane.xlu1 %738 }
 0x269   : > { %4526 = vmatmul.mubr.msk.f32.gmra.mrb[164].mxu0 %vm299_vm0, %v2329_v40  ;;  %v6572_v44 = vpop.f32.mrb[129].mxu0  ;;  %v761_v40 = vsub.f32 %v5977_v15, %v6275_v1  ;;  %v787_v1 = vsub.f32 %v6087_v12, %v6424_v35  ;;  %v789_v15 = vsub.f32 %v6095_v17, %v6441_v31  ;;  %v9386_v12 = vld [vmem:[#allocation65_spill] sm:$0xff] }
 0x26a   : > { %9376 = vst [vmem:[#allocation108_spill] sm:$0xff] %v6572_v44  ;;  %2617 = vmatprep.mubr.f32.mxu0 %v9372_v18  ;;  %v9387_v4 = vmax.f32 %v6314_v8, %v9386_v12 }
 0x26b   : > { %1705 = vmax.xlane.f32.xlu1 %v9377_v42  ;;  %v6580_v38 = vpop.f32.mrb[130].mxu0  ;;  %v9380_v42 = vmax.f32 %v6285_v62, %v6289_v55  ;;  %v837_v58 = vmul.f32 1.442695, %v761_v40  ;;  %v765_v40 = vsub.f32 %v5995_v22, %v6303_v30  ;;  %v889_v22 = vmul.f32 1.442695, %v787_v1 }
 0x26c   : > { %9378 = vst [vmem:[#allocation109_spill] sm:$0xff] %v6580_v38  ;;  %v2330_v34 = vpop.trf.xlu0  ;;  %v6583_v45 = vpop.f32.mrb[131].mxu0  ;;  %v788_v38 = vsub.f32 %v6089_v13, %v6424_v35  ;;  %v766_v13 = vsub.f32 %v5997_v24, %v6303_v30  ;;  %v893_v1 = vmul.f32 1.442695, %v789_v15  ;;  %v9392_v35 = vld [vmem:[#allocation66_spill] sm:$0xff] }
 0x26d   : > { %4527 = vmatmul.mubr.msk.f32.gmra.mrb[166].mxu0 %vm299_vm0, %v2330_v34  ;;  %9379 = vst [vmem:[#allocation110_spill] sm:$0xff] %v6583_v45  ;;  %v6592_v44 = vpop.xlane.xlu1 %741  ;;  %5007 = vpow2.f32 %v837_v58  ;;  %v9398_v15 = vld [vmem:[#allocation2_spill] sm:$0xff] }
 0x26e   : > { %2623 = vmatprep.mubr.f32.mxu0 %v9372_v18  ;;  %5009 = vpow2.f32 %v839_v16  ;;  %v891_v58 = vmul.f32 1.442695, %v788_v38  ;;  %v847_v17 = vmul.f32 1.442695, %v766_v13 }
 0x26f   : > { %1708 = vmax.xlane.f32.xlu1 %v9380_v42  ;;  %v6597_v34 = vpop.f32.mrb[132].mxu0  ;;  %v9383_v42 = vmax.f32 %v6299_v52, %v6305_v19  ;;  %v845_v19 = vmul.f32 1.442695, %v765_v40  ;;  %5011 = vpow2.f32 %v889_v22  ;;  %v9393_v52 = vld [vmem:[#allocation67_spill] sm:$0xff]  ;;  %v9397_v22 = vld [vmem:[#allocation69_spill] sm:$0xff] }
 0x270   : > { %9381 = vst [vmem:[#allocation111_spill] sm:$0xff] %v6597_v34  ;;  %v2331_v63 = vpop.trf.xlu0  ;;  %v6599_v5 = vpop.f32.mrb[133].mxu0  ;;  %5013 = vpow2.f32 %v891_v58 }
 0x271   : > { %9382 = vst [vmem:[#allocation112_spill] sm:$0xff] %v6599_v5  ;;  %4528 = vmatmul.mubr.msk.f32.gmra.mrb[168].mxu0 %vm299_vm0, %v2331_v63  ;;  %v9389_v5 = vld [vmem:[#allocation6_spill] sm:$0xff]  ;;  %5015 = vpow2.f32 %v845_v19 }
 0x272   : > { %2629 = vmatprep.mubr.f32.mxu0 %v9372_v18  ;;  %v790_v24 = vsub.f32 %v9389_v5, %v6441_v31  ;;  %v9394_v31 = vmax.f32 %v9392_v35, %v9393_v52  ;;  %v9400_v52 = vld [vmem:[#allocation30_spill] sm:$0xff]  ;;  %5017 = vpow2.f32 %v847_v17 }
 0x273   : > { %1711 = vmax.xlane.f32.xlu1 %v9383_v42  ;;  %v6610_v45 = vpop.f32.mrb[134].mxu0  ;;  %5019 = vpow2.f32 %v893_v1 }
 0x274   : > { %9384 = vst [vmem:[#allocation113_spill] sm:$0xff] %v6610_v45  ;;  %v6614_v63 = vpop.xlane.xlu1 %747  ;;  %v2332_v55 = vpop.trf.xlu0  ;;  %v895_v40 = vmul.f32 1.442695, %v790_v24 }
 0x275   : > { %4529 = vmatmul.mubr.msk.f32.gmra.mrb[170].mxu0 %vm299_vm0, %v2332_v55  ;;  %v6623_v42 = vpop.f32.mrb[135].mxu0 }
 0x276   : > { %9385 = vst [vmem:[#allocation114_spill] sm:$0xff] %v6623_v42  ;;  %2635 = vmatprep.mubr.f32.mxu0 %v9372_v18  ;;  %5021 = vpow2.f32 %v895_v40 }
 0x277   : > { %1714 = vmax.xlane.f32.xlu1 %v9387_v4  ;;  %v6635_v55 = vpop.f32.mrb[136].mxu0  ;;  %v9391_v4 = vld [vmem:[#allocation7_spill] sm:$0xff]  ;;  %v6677_v17 = vpop.eup %5007 }
 0x278   : > { %9388 = vst [vmem:[#allocation65_spill] sm:$0xff] %v6635_v55  ;;  %v2333_v30 = vpop.trf.xlu0  ;;  %v6639_v34 = vpop.f32.mrb[137].mxu0  ;;  %v791_v38 = vsub.f32 %v9391_v4, %v6460_v7  ;;  %v9399_v4 = vld [vmem:[#allocation29_spill] sm:$0xff] }
 0x279   : > { %9390 = vst [vmem:[#allocation6_spill] sm:$0xff] %v6639_v34  ;;  %4530 = vmatmul.mubr.msk.f32.gmra.mrb[172].mxu0 %vm299_vm0, %v2333_v30  ;;  %v9396_v30 = vld [vmem:[#allocation8_spill] sm:$0xff]  ;;  %v769_v34 = vsub.f32 %v9398_v15, %v9397_v22  ;;  %v9403_v15 = vld [vmem:[#allocation9_spill] sm:$0xff]  ;;  %v6683_v1 = vpop.eup %5009 }
 0x27a   : > { %2641 = vmatprep.mubr.f32.mxu0 %v9372_v18  ;;  %v792_v62 = vsub.f32 %v9396_v30, %v6460_v7  ;;  %v9402_v7 = vld [vmem:[#allocation3_spill] sm:$0xff]  ;;  %v897_v30 = vmul.f32 1.442695, %v791_v38  ;;  %v793_v55 = vsub.f32 %v9403_v15, %v6482_v10  ;;  %v9409_v15 = vld [vmem:[#allocation4_spill] sm:$0xff] }
 0x27b   : > { %1717 = vmax.xlane.f32.xlu1 %v9394_v31  ;;  %v6650_v5 = vpop.f32.mrb[138].mxu0  ;;  %v770_v24 = vsub.f32 %v9402_v7, %v9397_v22  ;;  %v9404_v31 = vld [vmem:[#allocation71_spill] sm:$0xff]  ;;  %v9407_v7 = vld [vmem:[#allocation10_spill] sm:$0xff]  ;;  %v853_v38 = vmul.f32 1.442695, %v769_v34  ;;  %v9412_v34 = vmax.f32 %v6347_v14, %v6349_v20 }
 0x27c   : > { %9395 = vst [vmem:[#allocation7_spill] sm:$0xff] %v6650_v5  ;;  %v6654_v16 = vpop.xlane.xlu1 %1678  ;;  %v2334_v13 = vpop.trf.xlu0  ;;  %v9405_v35 = vmax.f32 %v6336_v47, %v9404_v31  ;;  %v899_v22 = vmul.f32 1.442695, %v792_v62  ;;  %v794_v53 = vsub.f32 %v9407_v7, %v6482_v10  ;;  %v9410_v62 = vld [vmem:[#allocation5_spill] sm:$0xff]  ;;  %5023 = vpow2.f32 %v897_v30  ;;  %v9411_v7 = vld [vmem:[#allocation11_spill] sm:$0xff] }
 0x27d   : > { %4531 = vmatmul.mubr.msk.f32.gmra.mrb[174].mxu0 %vm299_vm0, %v2334_v13  ;;  %v6663_v58 = vpop.f32.mrb[139].mxu0  ;;  %v855_v5 = vmul.f32 1.442695, %v770_v24  ;;  %v786_v40 = vsub.f32 %v9410_v62, %v6523_v41  ;;  %v901_v10 = vmul.f32 1.442695, %v793_v55  ;;  %v795_v45 = vsub.f32 %v9411_v7, %v6497_v48  ;;  %v9414_v24 = vld [vmem:[#allocation12_spill] sm:$0xff]  ;;  %v6706_v55 = vpop.eup %5011 }
 0x27e   : > { %9401 = vst [vmem:[#allocation8_spill] sm:$0xff] %v6663_v58  ;;  %2647 = vmatprep.mubr.f32.mxu0 %v9372_v18  ;;  %v785_v58 = vsub.f32 %v9409_v15, %v6523_v41  ;;  %5025 = vpow2.f32 %v899_v22  ;;  %v959_v41 = vadd.f32 %v6683_v1, %v6677_v17  ;;  %9416 = vst [vmem:[#allocation3_spill] sm:$0xff] %v6706_v55  ;;  %v6711_v22 = vpop.eup %5013 }
 0x27f   : > { %1720 = vmax.xlane.f32.xlu1 %v9405_v35  ;;  %v6675_v13 = vpop.f32.mrb[140].mxu0  ;;  %v796_v35 = vsub.f32 %v9414_v24, %v6497_v48  ;;  %5027 = vpow2.f32 %v853_v38  ;;  %9417 = vst [vmem:[#allocation9_spill] sm:$0xff] %v6711_v22  ;;  %v6714_v48 = vpop.eup %5015  ;;  %v905_v24 = vmul.f32 1.442695, %v795_v45 }
 0x280   : > { %9406 = vst [vmem:[#allocation69_spill] sm:$0xff] %v6675_v13  ;;  %v2335_v42 = vpop.trf.xlu0  ;;  %v6681_v19 = vpop.f32.mrb[141].mxu0  ;;  %v885_v7 = vmul.f32 1.442695, %v785_v58  ;;  %5029 = vpow2.f32 %v855_v5  ;;  %v9419_v58 = vld [vmem:[#allocation74_spill] sm:$0xff]  ;;  %v9420_v13 = vld [vmem:[#allocation75_spill] sm:$0xff] }
 0x281   : > { %9408 = vst [vmem:[#allocation2_spill] sm:$0xff] %v6681_v19  ;;  %4532 = vmatmul.mubr.msk.f32.gmra.mrb[176].mxu0 %vm299_vm0, %v2335_v42  ;;  %v903_v42 = vmul.f32 1.442695, %v794_v53  ;;  %v887_v53 = vmul.f32 1.442695, %v786_v40  ;;  %5031 = vpow2.f32 %v901_v10  ;;  %v9418_v19 = vld [vmem:[#allocation13_spill] sm:$0xff] }
 0x282   : > { %2653 = vmatprep.mubr.f32.mxu0 %v9372_v18  ;;  %v797_v38 = vsub.f32 %v9418_v19, %v6511_v23  ;;  %v907_v5 = vmul.f32 1.442695, %v796_v35  ;;  %v9423_v40 = vld [vmem:[#allocation14_spill] sm:$0xff]  ;;  %v998_v19 = vadd.f32 %v6711_v22, %v6706_v55  ;;  %v9427_v35 = vld [vmem:[#allocation25_spill] sm:$0xff]  ;;  %v9432_v10 = vld [vmem:[#allocation16_spill] sm:$0xff] }
 0x283   : > { %1723 = vmax.xlane.f32.xlu1 %v9412_v34  ;;  %v6698_v15 = vpop.f32.mrb[142].mxu0  ;;  %v6723_v34 = vpop.eup %5017  ;;  %5033 = vpow2.f32 %v903_v42  ;;  %v9428_v42 = vld [vmem:[#allocation26_spill] sm:$0xff] }
 0x284   : > { %9413 = vst [vmem:[#allocation29_spill] sm:$0xff] %v6698_v15  ;;  %v2336_v62 = vpop.trf.xlu0  ;;  %v6704_v30 = vpop.f32.mrb[143].mxu0  ;;  %5035 = vpow2.f32 %v885_v7  ;;  %v9430_v7 = vld [vmem:[#allocation15_spill] sm:$0xff] }
 0x285   : > { %9415 = vst [vmem:[#allocation30_spill] sm:$0xff] %v6704_v30  ;;  %4533 = vmatmul.mubr.msk.f32.gmra.mrb[178].mxu0 %vm299_vm0, %v2336_v62  ;;  %v9421_v62 = vmax.f32 %v9419_v58, %v9420_v13  ;;  %v6729_v45 = vpop.eup %5019  ;;  %5037 = vpow2.f32 %v887_v53  ;;  %v799_v15 = vsub.f32 %v9430_v7, %v6527_v61  ;;  %v965_v53 = vadd.f32 %v6723_v34, %v6714_v48 }
 0x286   : > { %960 = vadd.xlane.f32.xlu0 %v959_v41  ;;  %2659 = vmatprep.mubr.f32.mxu0 %v9372_v18  ;;  %v798_v41 = vsub.f32 %v9423_v40, %v6511_v23  ;;  %9425 = vst [vmem:[#allocation4_spill] sm:$0xff] %v6729_v45  ;;  %v9429_v23 = vmax.f32 %v9427_v35, %v9428_v42  ;;  %5039 = vpow2.f32 %v905_v24  ;;  %v909_v40 = vmul.f32 1.442695, %v797_v38  ;;  %v9438_v38 = vld [vmem:[#allocation18_spill] sm:$0xff] }
 0x287   : > { %1726 = vmax.xlane.f32.xlu1 %v9421_v62  ;;  %v6721_v20 = vpop.f32.mrb[144].mxu0  ;;  %v6736_v62 = vpop.eup %5021  ;;  %5041 = vpow2.f32 %v907_v5 }
 0x288   : > { %9422 = vst [vmem:[#allocation71_spill] sm:$0xff] %v6721_v20  ;;  %v2337_v14 = vpop.trf.xlu0  ;;  %v6727_v30 = vpop.f32.mrb[145].mxu0  ;;  %9426 = vst [vmem:[#allocation5_spill] sm:$0xff] %v6736_v62  ;;  %v1001_v24 = vadd.f32 %v6736_v62, %v6729_v45  ;;  %5043 = vpow2.f32 %v909_v40 }
 0x289   : > { %9424 = vst [vmem:[#allocation10_spill] sm:$0xff] %v6727_v30  ;;  %4534 = vmatmul.mubr.msk.f32.gmra.mrb[180].mxu0 %vm299_vm0, %v2337_v14  ;;  %v911_v14 = vmul.f32 1.442695, %v798_v41  ;;  %v800_v30 = vsub.f32 %v9432_v10, %v6527_v61  ;;  %v6752_v22 = vpop.eup %5023  ;;  %v913_v41 = vmul.f32 1.442695, %v799_v15 }
 0x28a   : > { %744 = vmax.xlane.f32.xlu0 %v9429_v23  ;;  %2665 = vmatprep.mubr.f32.mxu0 %v9372_v18  ;;  %9434 = vst [vmem:[#allocation13_spill] sm:$0xff] %v6752_v22  ;;  %v6759_v5 = vpop.eup %5025 }
 0x28b   : > { %999 = vadd.xlane.f32.xlu1 %v998_v19  ;;  %v6744_v55 = vpop.f32.mrb[146].mxu0  ;;  %9435 = vst [vmem:[#allocation14_spill] sm:$0xff] %v6759_v5  ;;  %v6762_v61 = vpop.eup %5027  ;;  %v9436_v19 = vld [vmem:[#allocation17_spill] sm:$0xff]  ;;  %5045 = vpow2.f32 %v911_v14  ;;  %v1004_v15 = vadd.f32 %v6759_v5, %v6752_v22 }
 0x28c   : > { %9431 = vst [vmem:[#allocation11_spill] sm:$0xff] %v6744_v55  ;;  %v2338_v20 = vpop.trf.xlu0  ;;  %v6750_v23 = vpop.f32.mrb[147].mxu0  ;;  %v801_v10 = vsub.f32 %v9436_v19, %v6541_v59  ;;  %v9443_v19 = vld [vmem:[#allocation27_spill] sm:$0xff]  ;;  %5047 = vpow2.f32 %v913_v41 }
 0x28d   : > { %9433 = vst [vmem:[#allocation12_spill] sm:$0xff] %v6750_v23  ;;  %4535 = vmatmul.mubr.msk.f32.gmra.mrb[182].mxu0 %vm299_vm0, %v2338_v20  ;;  %v6768_v45 = vpop.eup %5029  ;;  %v915_v20 = vmul.f32 1.442695, %v800_v30  ;;  %v802_v23 = vsub.f32 %v9438_v38, %v6541_v59  ;;  %v9442_v30 = vld [vmem:[#allocation19_spill] sm:$0xff]  ;;  %v9444_v59 = vld [vmem:[#allocation28_spill] sm:$0xff] }
 0x28e   : > { %966 = vadd.xlane.f32.xlu0 %v965_v53  ;;  %2671 = vmatprep.mubr.f32.mxu0 %v9372_v18  ;;  %v6774_v62 = vpop.eup %5031  ;;  %v803_v14 = vsub.f32 %v9442_v30, %v6557_v46  ;;  %v9445_v38 = vmax.f32 %v9443_v19, %v9444_v59  ;;  %v917_v22 = vmul.f32 1.442695, %v801_v10 }
 0x28f   : > { %1002 = vadd.xlane.f32.xlu1 %v1001_v24  ;;  %v6766_v7 = vpop.f32.mrb[148].mxu0  ;;  %9440 = vst [vmem:[#allocation15_spill] sm:$0xff] %v6774_v62  ;;  %v6781_v24 = vpop.eup %5033  ;;  %5049 = vpow2.f32 %v915_v20  ;;  %v919_v40 = vmul.f32 1.442695, %v802_v23 }
 0x290   : > { %9437 = vst [vmem:[#allocation25_spill] sm:$0xff] %v6766_v7  ;;  %v2339_v53 = vpop.trf.xlu0  ;;  %v6772_v55 = vpop.f32.mrb[149].mxu0  ;;  %9441 = vst [vmem:[#allocation16_spill] sm:$0xff] %v6781_v24  ;;  %v971_v7 = vadd.f32 %v6768_v45, %v6762_v61  ;;  %v1007_v41 = vadd.f32 %v6781_v24, %v6774_v62  ;;  %v921_v20 = vmul.f32 1.442695, %v803_v14  ;;  %5051 = vpow2.f32 %v917_v22 }
 0x291   : > { %9439 = vst [vmem:[#allocation26_spill] sm:$0xff] %v6772_v55  ;;  %4536 = vmatmul.mubr.msk.f32.gmra.mrb[184].mxu0 %vm299_vm0, %v2339_v53  ;;  %v6789_v51 = vpop.eup %5035  ;;  %v9447_v55 = vld [vmem:[#allocation20_spill] sm:$0xff]  ;;  %5053 = vpow2.f32 %v919_v40  ;;  %v9461_v40 = vld [vmem:[#allocation22_spill] sm:$0xff] }
 0x292   : > { %1675 = vmax.xlane.f32.xlu0 %v9445_v38  ;;  %2677 = vmatprep.mubr.f32.mxu0 %v9372_v18  ;;  %v6793_v5 = vpop.eup %5037  ;;  %v804_v30 = vsub.f32 %v9447_v55, %v6557_v46  ;;  %5055 = vpow2.f32 %v921_v20 }
 0x293   : > { %1005 = vadd.xlane.f32.xlu1 %v1004_v15  ;;  %v6791_v53 = vpop.f32.mrb[150].mxu0  ;;  %v6801_v58 = vpop.eup %5039  ;;  %v995_v62 = vadd.f32 %v6793_v5, %v6789_v51 }
 0x294   : > { %9446 = vst [vmem:[#allocation17_spill] sm:$0xff] %v6791_v53  ;;  %v2340_v38 = vpop.trf.xlu0  ;;  %v6799_v13 = vpop.f32.mrb[151].mxu0  ;;  %9449 = vst [vmem:[#allocation19_spill] sm:$0xff] %v6801_v58  ;;  %v923_v55 = vmul.f32 1.442695, %v804_v30 }
 0x295   : > { %9448 = vst [vmem:[#allocation18_spill] sm:$0xff] %v6799_v13  ;;  %4537 = vmatmul.mubr.msk.f32.gmra.mrb[186].mxu0 %vm299_vm0, %v2340_v38  ;;  %v6808_v23 = vpop.eup %5041 }
 0x296   : > { %9450 = vst [vmem:[#allocation27_spill] sm:$0xff] %v6808_v23  ;;  %972 = vadd.xlane.f32.xlu0 %v971_v7  ;;  %2683 = vmatprep.mubr.f32.mxu0 %v9372_v18  ;;  %v6815_v24 = vpop.eup %5043  ;;  %v1010_v10 = vadd.f32 %v6808_v23, %v6801_v58 }
 0x297   : > { %1008 = vadd.xlane.f32.xlu1 %v1007_v41  ;;  %v6811_v46 = vpop.f32.mrb[152].mxu0  ;;  %9452 = vst [vmem:[#allocation20_spill] sm:$0xff] %v6815_v24  ;;  %v6822_v22 = vpop.eup %5045 }
 0x298   : > { %9451 = vst [vmem:[#allocation28_spill] sm:$0xff] %v6811_v46  ;;  %v943_v15 = vpop.xlane.xlu1 %942  ;;  %v2341_v38 = vpop.trf.xlu0  ;;  %9454 = vst [vmem:[#allocation116_spill] sm:$0xff] %v6822_v22 }
 0x299   : > { %4538 = vmatmul.mubr.msk.f32.gmra.mrb[188].mxu0 %vm299_vm0, %v2341_v38  ;;  %v6820_v7 = vpop.f32.mrb[153].mxu0  ;;  %5057 = vrcp.f32 %v943_v15  ;;  %v6829_v13 = vpop.eup %5047  ;;  %v1013_v38 = vadd.f32 %v6822_v22, %v6815_v24  ;;  %v9459_v15 = vld [vmem:[#allocation21_spill] sm:$0xff] }
 0x29a   : > { %9453 = vst [vmem:[#allocation115_spill] sm:$0xff] %v6820_v7  ;;  %996 = vadd.xlane.f32.xlu0 %v995_v62  ;;  %2689 = vmatprep.mubr.f32.mxu0 %v9372_v18  ;;  %5059 = vpow2.f32 %v923_v55  ;;  %9456 = vst [vmem:[#allocation118_spill] sm:$0xff] %v6829_v13  ;;  %v6836_v20 = vpop.eup %5049  ;;  %v9460_v55 = vmax.f32 %v6365_v49, %v6367_v21  ;;  %v806_v7 = vsub.f32 %v9461_v40, %v6569_v43  ;;  %v9467_v40 = vld [vmem:[#allocation24_spill] sm:$0xff] }
 0x29b   : > { %1011 = vadd.xlane.f32.xlu1 %v1010_v10  ;;  %v6827_v14 = vpop.f32.mrb[154].mxu0  ;;  %9458 = vst [vmem:[#allocation120_spill] sm:$0xff] %v6836_v20  ;;  %v805_v10 = vsub.f32 %v9459_v15, %v6569_v43  ;;  %v6850_v53 = vpop.eup %5051  ;;  %v9464_v15 = vld [vmem:[#allocation23_spill] sm:$0xff]  ;;  %v9468_v49 = vmax.f32 %v6375_v6, %v6378_v25 }
 0x29c   : > { %9455 = vst [vmem:[#allocation117_spill] sm:$0xff] %v6827_v14  ;;  %v946_v30 = vpop.xlane.xlu1 %945  ;;  %v2342_v41 = vpop.trf.xlu0  ;;  %9463 = vst [vmem:[#allocation22_spill] sm:$0xff] %v6850_v53  ;;  %v807_v22 = vsub.f32 %v9464_v15, %v6592_v44 }
 0x29d   : > { %5061 = vrcp.f32 %v946_v30  ;;  %4539 = vmatmul.mubr.msk.f32.gmra.mrb[190].mxu0 %vm299_vm0, %v2342_v41  ;;  %v6834_v62 = vpop.f32.mrb[155].mxu0  ;;  %v6859_v30 = vpop.eup %5053  ;;  %v925_v43 = vmul.f32 1.442695, %v805_v10 }
 0x29e   : > { %9457 = vst [vmem:[#allocation119_spill] sm:$0xff] %v6834_v62  ;;  %1729 = vmax.xlane.f32.xlu0 %v9460_v55  ;;  %3525 = vmatprep.mubr.f32.mxu0 %v9372_v18  ;;  %v1016_v55 = vadd.f32 %v6836_v20, %v6829_v13  ;;  %9466 = vst [vmem:[#allocation121_spill] sm:$0xff] %v6859_v30  ;;  %v927_v62 = vmul.f32 1.442695, %v806_v7  ;;  %v6871_v14 = vpop.eup %5055  ;;  %v9473_v7 = vmax.f32 %v6386_v56, %v6389_v0 }
 0x29f   : > { %1014 = vadd.xlane.f32.xlu1 %v1013_v38  ;;  %v6848_v41 = vpop.f32.mrb[156].mxu0  ;;  %v808_v38 = vsub.f32 %v9467_v40, %v6592_v44  ;;  %9470 = vst [vmem:[#allocation122_spill] sm:$0xff] %v6871_v14  ;;  %v929_v44 = vmul.f32 1.442695, %v807_v22 }
 0x2a0   : > { %9462 = vst [vmem:[#allocation21_spill] sm:$0xff] %v6848_v41  ;;  %v949_v46 = vpop.xlane.xlu1 %948  ;;  %v3317_v24 = vpop.trf.xlu0  ;;  %v9475_v41 = vld [vmem:[#allocation49_spill] sm:$0xff] }
 0x2a1   : > { %4572 = vmatmul.mubr.msk.f32.vlgmr.msra.gmra.mrb[192].mxu0 %vm299_vm0, %v3317_v24  ;;  %v6857_v21 = vpop.f32.mrb[157].mxu0  ;;  %5063 = vrcp.f32 %v949_v46  ;;  %v931_v46 = vmul.f32 1.442695, %v808_v38  ;;  %v9477_v38 = vld [vmem:[#allocation47_spill] sm:$0xff] }
 0x2a2   : > { %9465 = vst [vmem:[#allocation23_spill] sm:$0xff] %v6857_v21  ;;  %1732 = vmax.xlane.f32.xlu0 %v9468_v49  ;;  %3531 = vmatprep.mubr.f32.mxu0 %v9372_v18  ;;  %v1019_v49 = vadd.f32 %v6859_v30, %v6850_v53  ;;  %v9476_v30 = vld [vmem:[#allocation43_spill] sm:$0xff] }
 0x2a3   : > { %1017 = vadd.xlane.f32.xlu1 %v1016_v55  ;;  %v6869_v24 = vpop.f32.mrb[158].mxu0  ;;  %v5058_v20 = vpop.eup %5057 }
 0x2a4   : > { %9469 = vst [vmem:[#allocation24_spill] sm:$0xff] %v6869_v24  ;;  %v952_v10 = vpop.xlane.xlu1 %951  ;;  %v3318_v13 = vpop.trf.xlu0 }
 0x2a5   : > { %5065 = vrcp.f32 %v952_v10  ;;  %4573 = vmatmul.mubr.msk.f32.gmra.mrb[194].mxu0 %vm299_vm0, %v3318_v13  ;;  %v6876_v40 = vpop.f32.mrb[159].mxu0  ;;  %v6878_v15 = vpop.eup %5059  ;;  %v9474_v13 = vld [vmem:[#allocation45_spill] sm:$0xff] }
 0x2a6   : > { %9471 = vst [vmem:[#allocation123_spill] sm:$0xff] %v6876_v40  ;;  %9472 = vst [vmem:[#allocation124_spill] sm:$0xff] %v6878_v15  ;;  %5067 = vpow2.f32 %v925_v43  ;;  %1735 = vmax.xlane.f32.xlu0 %v9473_v7  ;;  %3537 = vmatprep.mubr.f32.mxu0 %v9372_v18  ;;  %v1070_v21 = vmul.f32 %v5058_v20, %v9474_v13  ;;  %v1069_v43 = vmul.f32 %v5058_v20, %v9476_v30 }
 0x2a7   : > { %v5062_v55 = vpop.eup %5061  ;;  %5069 = vpow2.f32 %v927_v62  ;;  %1020 = vadd.xlane.f32.xlu1 %v1019_v49  ;;  %v1022_v7 = vadd.f32 %v6878_v15, %v6871_v14  ;;  %v9478_v62 = vmax.f32 %v6397_v26, %v6400_v29 }
 0x2a8   : > { %v955_v10 = vpop.xlane.xlu1 %954  ;;  %v1072_v53 = vmul.f32 %v5062_v55, %v9475_v41  ;;  %v1071_v58 = vmul.f32 %v5062_v55, %v9477_v38  ;;  %v3319_v23 = vpop.trf.xlu0  ;;  %5071 = vpow2.f32 %v929_v44  ;;  %v9484_v38 = vld [vmem:[#allocation55_spill] sm:$0xff] }
 0x2a9   : > { %4574 = vmatmul.mubr.msk.f32.gmra.mrb[196].mxu0 %vm299_vm0, %v3319_v23  ;;  %5073 = vpow2.f32 %v931_v46  ;;  %v9479_v23 = vmax.f32 %v6408_v33, %v6413_v11  ;;  %v9482_v46 = vld [vmem:[#allocation57_spill] sm:$0xff]  ;;  %v9492_v11 = vld [vmem:[#allocation63_spill] sm:$0xff] }
 0x2aa   : > { %1738 = vmax.xlane.f32.xlu0 %v9478_v62  ;;  %v4626_v49 = vpack.c.bf16 %v1072_v53, %v1070_v21  ;;  %v4628_v13 = vpack.c.bf16 %v1071_v58, %v1069_v43  ;;  %3543 = vmatprep.mubr.f32.mxu0 %v9372_v18  ;;  %5075 = vrcp.f32 %v955_v10  ;;  %v9481_v53 = vld [vmem:[#allocation53_spill] sm:$0xff]  ;;  %v9483_v10 = vld [vmem:[#allocation51_spill] sm:$0xff] }
 0x2ab   : > { %1023 = vadd.xlane.f32.xlu1 %v1022_v7  ;;  %v5064_v41 = vpop.eup %5063 }
 0x2ac   : > { %4627 = vmatprep.subr.bf16.mxu1 %v4626_v49  ;;  %v958_v20 = vpop.xlane.xlu1 %957  ;;  %v3320_v30 = vpop.trf.xlu0  ;;  %v1074_v44 = vmul.f32 %v5064_v41, %v9481_v53  ;;  %v1073_v43 = vmul.f32 %v5064_v41, %v9483_v10 }
 0x2ad   : > { %5077 = vrcp.f32 %v958_v20  ;;  %4629 = vmatpush1.bf16.xpose.msra.mxu1 %v4628_v13  ;;  %4575 = vmatmul.mubr.msk.f32.gmra.mrb[198].mxu0 %vm299_vm0, %v3320_v30  ;;  %v9486_v13 = vmax.f32 %v6421_v9, %v6426_v27 }
 0x2ae   : > { %1741 = vmax.xlane.f32.xlu0 %v9479_v23  ;;  %3549 = vmatprep.mubr.f32.mxu0 %v9372_v18 }
 0x2af   : > { %v5066_v21 = vpop.eup %5065 }
 0x2b0   : > { %v6902_v58 = vpop.eup %5067  ;;  %v1076_v55 = vmul.f32 %v5066_v21, %v9482_v46  ;;  %v1075_v7 = vmul.f32 %v5066_v21, %v9484_v38  ;;  %v3321_v62 = vpop.trf.xlu0  ;;  %v9489_v38 = vld [vmem:[#allocation61_spill] sm:$0xff] }
 0x2b1   : > { %9480 = vst [vmem:[#allocation45_spill] sm:$0xff] %v6902_v58  ;;  %v6908_v49 = vpop.eup %5069  ;;  %4576 = vmatmul.mubr.msk.f32.gmra.mrb[200].mxu0 %vm299_vm0, %v3321_v62  ;;  %v9490_v62 = vld [vmem:[#allocation64_spill] sm:$0xff] }
 0x2b2   : > { %9485 = vst [vmem:[#allocation49_spill] sm:$0xff] %v6908_v49  ;;  %1744 = vmax.xlane.f32.xlu0 %v9486_v13  ;;  %v4630_v20 = vpack.c.bf16 %v1076_v55, %v1074_v44  ;;  %v4632_v30 = vpack.c.bf16 %v1075_v7, %v1073_v43  ;;  %3555 = vmatprep.mubr.f32.mxu0 %v9372_v18  ;;  %v6915_v23 = vpop.eup %5071 }
 0x2b3   : > { %9487 = vst [vmem:[#allocation43_spill] sm:$0xff] %v6915_v23  ;;  %v6917_v53 = vpop.eup %5073  ;;  %v1025_v21 = vadd.f32 %v6908_v49, %v6902_v58  ;;  %v4555_v58 = vld [vmem:[%s5759_s17 + $0xf8] sm:$0xff] }
 0x2b4   : > { %9488 = vst [vmem:[#allocation47_spill] sm:$0xff] %v6917_v53  ;;  %4631 = vmatprep.subr.bf16.mxu1 %v4630_v20  ;;  %v6919_v41 = vpop.xlane.xlu1 %963  ;;  %v3322_v46 = vpop.trf.xlu0  ;;  %v1028_v55 = vadd.f32 %v6917_v53, %v6915_v23  ;;  %v9491_v20 = vld [vmem:[#allocation59_spill] sm:$0xff] }
 0x2b5   : > { %v5076_v10 = vpop.eup %5075  ;;  %4633 = vmatpush1.bf16.xpose.msra.mxu1 %v4632_v30  ;;  %4577 = vmatmul.mubr.msk.f32.gmra.mrb[202].mxu0 %vm299_vm0, %v3322_v46  ;;  %5079 = vrcp.f32 %v6919_v41 }
 0x2b6   : > { %1026 = vadd.xlane.f32.xlu0 %v1025_v21  ;;  %3561 = vmatprep.mubr.f32.mxu0 %v9372_v18  ;;  %v1078_v7 = vmul.f32 %v5076_v10, %v9489_v38  ;;  %v1077_v22 = vmul.f32 %v5076_v10, %v9491_v20 }
 0x2b7   : > { %v5078_v44 = vpop.eup %5077 }
 0x2b8   : > { %v6927_v43 = vpop.xlane.xlu1 %1681  ;;  %v1080_v13 = vmul.f32 %v5078_v44, %v9490_v62  ;;  %v1079_v33 = vmul.f32 %v5078_v44, %v9492_v11  ;;  %v3323_v30 = vpop.trf.xlu0 }
 0x2b9   : > { %4578 = vmatmul.mubr.msk.f32.gmra.mrb[204].mxu0 %vm299_vm0, %v3323_v30 }
 0x2ba   : > { %1029 = vadd.xlane.f32.xlu0 %v1028_v55  ;;  %v4634_v21 = vpack.c.bf16 %v1080_v13, %v1078_v7  ;;  %v4636_v46 = vpack.c.bf16 %v1079_v33, %v1077_v22  ;;  %3567 = vmatprep.mubr.f32.mxu0 %v9372_v18 }
 0x2bc   : > { %4635 = vmatprep.subr.bf16.mxu1 %v4634_v21  ;;  %v6935_v0 = vpop.xlane.xlu1 %1684  ;;  %v3324_v56 = vpop.trf.xlu0 }
 0x2bd   : > { %4637 = vmatpush1.bf16.xpose.msra.mxu1 %v4636_v46  ;;  %4579 = vmatmul.mubr.msk.f32.gmra.mrb[206].mxu0 %vm299_vm0, %v3324_v56  ;;  %v4549_v46 = vld [vmem:[%s5759_s17 + $0xc8] sm:$0xff] }
 0x2be   : > { %3573 = vmatprep.mubr.f32.mxu0 %v9372_v18 }
 0x2bf   : > { %v5080_v9 = vpop.eup %5079 }
 0x2c0   : > { %v6939_v10 = vpop.xlane.xlu1 %1687  ;;  %v3325_v11 = vpop.trf.xlu0 }
 0x2c1   : > { %4580 = vmatmul.mubr.msk.f32.gmra.mrb[208].mxu0 %vm299_vm0, %v3325_v11 }
 0x2c2   : > { %3579 = vmatprep.mubr.f32.mxu0 %v9372_v18 }
 0x2c4   : > { %v6943_v44 = vpop.xlane.xlu1 %1690  ;;  %v3326_v33 = vpop.trf.xlu0 }
 0x2c5   : > { %4581 = vmatmul.mubr.msk.f32.gmra.mrb[210].mxu0 %vm299_vm0, %v3326_v33 }
 0x2c6   : > { %3585 = vmatprep.mubr.f32.mxu0 %v9372_v18 }
 0x2c8   : > { %v6947_v22 = vpop.xlane.xlu1 %1693  ;;  %v3327_v55 = vpop.trf.xlu0 }
 0x2c9   : > { %4582 = vmatmul.mubr.msk.f32.gmra.mrb[212].mxu0 %vm299_vm0, %v3327_v55  ;;  %v4551_v55 = vld [vmem:[%s5759_s17 + $0xd8] sm:$0xff] }
 0x2ca   : > { %3591 = vmatprep.mubr.f32.mxu0 %v9372_v18 }
 0x2cc   : > { %v6951_v56 = vpop.xlane.xlu1 %1696  ;;  %v3328_v38 = vpop.trf.xlu0 }
 0x2cd   : > { %4583 = vmatmul.mubr.msk.f32.gmra.mrb[214].mxu0 %vm299_vm0, %v3328_v38 }
 0x2ce   : > { %3597 = vmatprep.mubr.f32.mxu0 %v9372_v18 }
 0x2d0   : > { %v6955_v7 = vpop.xlane.xlu1 %1699  ;;  %v3329_v62 = vpop.trf.xlu0 }
 0x2d1   : > { %4584 = vmatmul.mubr.msk.f32.gmra.mrb[216].mxu0 %vm299_vm0, %v3329_v62  ;;  %v4553_v62 = vld [vmem:[%s5759_s17 + $0xe8] sm:$0xff] }
 0x2d2   : > { %3603 = vmatprep.mubr.f32.mxu0 %v9372_v18 }
 0x2d4   : > { %v6959_v13 = vpop.xlane.xlu1 %1702  ;;  %v3330_v20 = vpop.trf.xlu0 }
 0x2d5   : > { %4585 = vmatmul.mubr.msk.f32.gmra.mrb[218].mxu0 %vm299_vm0, %v3330_v20 }
 0x2d6   : > { %3609 = vmatprep.mubr.f32.mxu0 %v9372_v18 }
 0x2d8   : > { %v970_v30 = vpop.xlane.xlu1 %969  ;;  %v3331_v21 = vpop.trf.xlu0 }
 0x2d9   : > { %4586 = vmatmul.mubr.msk.f32.gmra.mrb[220].mxu0 %vm299_vm0, %v3331_v21 }
 0x2da   : > { %3615 = vmatprep.mubr.f32.mxu0 %v9372_v18 }
 0x2dc   : > { %v976_v11 = vpop.xlane.xlu1 %975  ;;  %v3332_v33 = vpop.trf.xlu0 }
 0x2dd   : > { %4587 = vmatmul.mubr.msk.f32.gmra.mrb[222].mxu0 %vm299_vm0, %v3332_v33 }
 0x2de   : > { %3333 = vxpose.xlu1.b32.start [1/4] (short) %v4549_v46, 128  ;;  %3621 = vmatprep.mubr.f32.mxu0 %v9372_v18 }
 0x2e0   : > { %v979_v38 = vpop.xlane.xlu1 %978 }
 0x2e2   : > { %3334 = vxpose.xlu1.b32.cont [2/4] (short) %v4551_v55, 128 }
 0x2e4   : > { %v982_v20 = vpop.xlane.xlu1 %981 }
 0x2e6   : > { %3335 = vxpose.xlu1.b32.cont [3/4] (short) %v4553_v62, 128 }
 0x2e8   : > { %v6971_v23 = vpop.xlane.xlu1 %984 }
 0x2ea   : > { %3336 = vxpose.xlu1.b32.end [4/4] (short) %v4555_v58, 128  ;;  %v9497_v58 = vsub.f32 %v6177_v3, %v6614_v63 }
 0x2ec   : > { %v6973_v21 = vpop.xlane.xlu1 %987  ;;  %v937_v14 = vmul.f32 1.442695, %v9497_v58  ;;  %v9499_v58 = vsub.f32 %v9399_v4, %v6654_v16 }
 0x2f0   : > { %v6975_v40 = vpop.xlane.xlu1 %990 }
 0x2f4   : > { %v6977_v24 = vpop.xlane.xlu1 %993 }
 0x2f8   : > { %v6979_v33 = vpop.xlane.xlu1 %1705 }
 0x2f9   : > { %9493 = vst [vmem:[#allocation53_spill] sm:$0xff] %v6979_v33 }
 0x2fc   : > { %v6981_v46 = vpop.xlane.xlu1 %1708 }
 0x2fd   : > { %9494 = vst [vmem:[#allocation57_spill] sm:$0xff] %v6981_v46 }
 0x300   : > { %v6983_v49 = vpop.xlane.xlu1 %1711 }
 0x301   : > { %9495 = vst [vmem:[#allocation51_spill] sm:$0xff] %v6983_v49  ;;  %v9498_v49 = vsub.f32 %v6179_v32, %v6614_v63  ;;  %v9501_v32 = vld [vmem:[#allocation70_spill] sm:$0xff] }
 0x302   : > { %v1084_v63 = vmul.f32 %v5080_v9, %v9501_v32 }
 0x303   : > { %v939_v41 = vmul.f32 1.442695, %v9498_v49 }
 0x304   : > { %v6985_v55 = vpop.xlane.xlu1 %1714 }
 0x308   : > { %v6988_v62 = vpop.xlane.xlu1 %1717 }
 0x309   : > { %9496 = vst [vmem:[#allocation55_spill] sm:$0xff] %v6988_v62 }
 0x30c   : > { %v6993_v18 = vpop.xlane.xlu1 %1720 }
 0x313   : > { %v961_v53 = vpop.xlane.xlu0 %960 }
 0x314   : > { %5081 = vrcp.f32 %v961_v53 }
 0x315   : > { %5083 = vpow2.f32 %v937_v14 }
 0x316   : > { %5085 = vrcp.f32 %v970_v30 }
 0x317   : > { %v745_v15 = vpop.xlane.xlu0 %744 }
 0x318   : > { %v809_v33 = vsub.f32 %v9427_v35, %v745_v15  ;;  %v810_v46 = vsub.f32 %v9428_v42, %v745_v15  ;;  %v1838_v35 = vmul.f32 1.442695, %v9499_v58  ;;  %v9500_v42 = vsub.f32 %v9400_v52, %v6654_v16  ;;  %v7006_v15 = vpop.xlane.xlu1 %1723  ;;  %v9503_v52 = vld [vmem:[#allocation31_spill] sm:$0xff] }
 0x319   : > { %v1774_v16 = vsub.f32 %v9503_v52, %v6927_v43  ;;  %v9506_v52 = vld [vmem:[#allocation34_spill] sm:$0xff] }
 0x31a   : > { %v933_v27 = vmul.f32 1.442695, %v809_v33  ;;  %v935_v62 = vmul.f32 1.442695, %v810_v46  ;;  %v1840_v14 = vmul.f32 1.442695, %v9500_v42 }
 0x31b   : > { %v967_v53 = vpop.xlane.xlu0 %966  ;;  %v9502_v33 = vld [vmem:[#allocation68_spill] sm:$0xff] }
 0x31c   : > { %5087 = vpow2.f32 %v933_v27  ;;  %v1083_v46 = vmul.f32 %v5080_v9, %v9502_v33  ;;  %v7016_v58 = vpop.xlane.xlu1 %1726 }
 0x31d   : > { %5089 = vpow2.f32 %v935_v62 }
 0x31e   : > { %v5082_v3 = vpop.eup %5081  ;;  %5091 = vpow2.f32 %v939_v41 }
 0x31f   : > { %5093 = vrcp.f32 %v967_v53  ;;  %v1676_v49 = vpop.xlane.xlu0 %1675  ;;  %v1082_v30 = vmul.f32 %v5082_v3, %v6683_v1  ;;  %v1081_v27 = vmul.f32 %v5082_v3, %v6677_v17  ;;  %v7012_v4 = vpop.eup %5083  ;;  %v9504_v17 = vld [vmem:[#allocation32_spill] sm:$0xff] }
 0x320   : > { %5095 = vpow2.f32 %v1838_v35  ;;  %v5086_v1 = vpop.eup %5085  ;;  %v1775_v3 = vsub.f32 %v9504_v17, %v6927_v43  ;;  %v1770_v43 = vsub.f32 %v9443_v19, %v1676_v49  ;;  %v7032_v33 = vpop.xlane.xlu1 %999 }
 0x321   : > { %v4638_v62 = vpack.c.bf16 %v1084_v63, %v1082_v30  ;;  %v4640_v41 = vpack.c.bf16 %v1083_v46, %v1081_v27  ;;  %5097 = vpow2.f32 %v1840_v14  ;;  %v1842_v14 = vmul.f32 1.442695, %v1774_v16 }
 0x322   : > { %5099 = vrcp.f32 %v976_v11  ;;  %v9505_v11 = vld [vmem:[#allocation33_spill] sm:$0xff]  ;;  %v1844_v27 = vmul.f32 1.442695, %v1775_v3  ;;  %v1777_v16 = vsub.f32 %v9506_v52, %v6935_v0 }
 0x323   : > { %4639 = vmatprep.subr.bf16.mxu1 %v4638_v62  ;;  %v973_v53 = vpop.xlane.xlu0 %972  ;;  %5101 = vrcp.f32 %v982_v20  ;;  %v1776_v32 = vsub.f32 %v9505_v11, %v6935_v0  ;;  %v1088_v20 = vmul.f32 %v5086_v1, %v6430_v39 }
 0x324   : > { %4641 = vmatpush1.bf16.xpose.msra.mxu1 %v4640_v41  ;;  %5103 = vrcp.f32 %v979_v38  ;;  %v1771_v38 = vsub.f32 %v9444_v59, %v1676_v49  ;;  %v1087_v41 = vmul.f32 %v5086_v1, %v6428_v36  ;;  %v1848_v49 = vmul.f32 1.442695, %v1777_v16 }
 0x325   : > { %5105 = vrcp.f32 %v973_v53  ;;  %v1846_v39 = vmul.f32 1.442695, %v1776_v32  ;;  %v1796_v32 = vsub.f32 %v6314_v8, %v6985_v55  ;;  %v9510_v8 = vld [vmem:[#allocation86_spill] sm:$0xff] }
 0x326   : > { %v7020_v9 = vpop.eup %5087  ;;  %5107 = vpow2.f32 %v1842_v14  ;;  %v1836_v36 = vmul.f32 1.442695, %v1771_v38  ;;  %v7048_v14 = vpop.xlane.xlu1 %1002 }
 0x327   : > { %v7022_v35 = vpop.eup %5089  ;;  %5109 = vrcp.f32 %v6973_v21 }
 0x328   : > { %v7024_v42 = vpop.eup %5091  ;;  %v1031_v63 = vadd.f32 %v7022_v35, %v7020_v9  ;;  %5111 = vpow2.f32 %v1844_v27  ;;  %v9507_v27 = vld [vmem:[#allocation84_spill] sm:$0xff] }
 0x329   : > { %v5094_v30 = vpop.eup %5093  ;;  %v1034_v53 = vadd.f32 %v7024_v42, %v7012_v4  ;;  %5113 = vrcp.f32 %v6971_v23 }
 0x32a   : > { %1032 = vadd.xlane.f32.xlu0 %v1031_v63  ;;  %v1086_v46 = vmul.f32 %v5094_v30, %v6723_v34  ;;  %v1085_v62 = vmul.f32 %v5094_v30, %v6714_v48  ;;  %v7042_v19 = vpop.eup %5095  ;;  %v1834_v34 = vmul.f32 1.442695, %v1770_v43  ;;  %5115 = vpow2.f32 %v1846_v39  ;;  %v997_v30 = vpop.xlane.xlu0 %996  ;;  %v9508_v43 = vld [vmem:[#allocation85_spill] sm:$0xff] }
 0x32b   : > { %v7044_v59 = vpop.eup %5097  ;;  %v1797_v63 = vsub.f32 %v9386_v12, %v6985_v55  ;;  %v9509_v23 = vmax.f32 %v9507_v27, %v9508_v43 }
 0x32c   : > { %v4642_v17 = vpack.c.bf16 %v1088_v20, %v1086_v46  ;;  %v4644_v3 = vpack.c.bf16 %v1087_v41, %v1085_v62  ;;  %v5100_v48 = vpop.eup %5099  ;;  %5117 = vpow2.f32 %v1834_v34  ;;  %v1965_v12 = vadd.f32 %v7044_v59, %v7042_v19  ;;  %v7076_v34 = vpop.xlane.xlu1 %1005 }
 0x32d   : > { %v5102_v0 = vpop.eup %5101  ;;  %v1092_v21 = vmul.f32 %v5100_v48, %v6449_v28  ;;  %5119 = vpow2.f32 %v1836_v36  ;;  %v1091_v62 = vmul.f32 %v5100_v48, %v9510_v8  ;;  %v9511_v28 = vld [vmem:[#allocation35_spill] sm:$0xff]  ;;  %v1801_v8 = vsub.f32 %v9404_v31, %v6993_v18 }
 0x32e   : > { %4643 = vmatprep.subr.bf16.mxu1 %v4642_v17  ;;  %1035 = vadd.xlane.f32.xlu0 %v1034_v53  ;;  %v5104_v1 = vpop.eup %5103  ;;  %v1096_v38 = vmul.f32 %v5102_v0, %v6491_v37  ;;  %5121 = vpow2.f32 %v1848_v49  ;;  %v1778_v41 = vsub.f32 %v9511_v28, %v6939_v10  ;;  %v1886_v37 = vmul.f32 1.442695, %v1796_v32  ;;  %v9514_v49 = vld [vmem:[#allocation37_spill] sm:$0xff]  ;;  %v7085_v32 = vpop.xlane.xlu0 %1729 }
 0x32f   : > { %4645 = vmatpush1.bf16.xpose.msra.mxu1 %v4644_v3  ;;  %v5106_v11 = vpop.eup %5105  ;;  %v1094_v55 = vmul.f32 %v5104_v1, %v6469_v54  ;;  %5123 = vrcp.f32 %v6977_v24  ;;  %v1888_v3 = vmul.f32 1.442695, %v1797_v63 }
 0x330   : > { %v1090_v20 = vmul.f32 %v5106_v11, %v6768_v45  ;;  %v1089_v46 = vmul.f32 %v5106_v11, %v6762_v61  ;;  %v9512_v45 = vld [vmem:[#allocation36_spill] sm:$0xff]  ;;  %v7074_v17 = vpop.eup %5107  ;;  %5125 = vrcp.f32 %v6975_v40  ;;  %v1850_v36 = vmul.f32 1.442695, %v1778_v41  ;;  %v7111_v31 = vpop.xlane.xlu1 %1008  ;;  %v9535_v41 = vld [vmem:[#allocation114_spill] sm:$0xff] }
 0x331   : > { %v1779_v53 = vsub.f32 %v9512_v45, %v6939_v10  ;;  %9513 = vst [vmem:[#allocation61_spill] sm:$0xff] %v7074_v17  ;;  %v4650_v48 = vpack.c.bf16 %v1096_v38, %v1094_v55  ;;  %v5110_v54 = vpop.eup %5109  ;;  %v1780_v11 = vsub.f32 %v9514_v49, %v6943_v44  ;;  %5127 = vpow2.f32 %v1886_v37 }
 0x332   : > { %1747 = vmax.xlane.f32.xlu0 %v9509_v23  ;;  %v4646_v52 = vpack.c.bf16 %v1092_v21, %v1090_v20  ;;  %v4648_v61 = vpack.c.bf16 %v1091_v62, %v1089_v46  ;;  %v7081_v24 = vpop.eup %5111  ;;  %v1800_v40 = vsub.f32 %v6336_v47, %v6993_v18  ;;  %v1095_v20 = vmul.f32 %v5102_v0, %v6487_v57  ;;  %v9516_v57 = vld [vmem:[#allocation38_spill] sm:$0xff] }
 0x333   : > { %v5114_v63 = vpop.eup %5113  ;;  %v1852_v23 = vmul.f32 1.442695, %v1779_v53  ;;  %5129 = vpow2.f32 %v1888_v3  ;;  %v9515_v62 = vmax.f32 %v6456_v60, %v6462_v50  ;;  %v1100_v28 = vmul.f32 %v5110_v54, %v6519_v2  ;;  %v9518_v2 = vld [vmem:[#allocation93_spill] sm:$0xff] }
 0x334   : > { %v7067_v16 = vpop.f32.mrb[160].mxu0  ;;  %4647 = vmatprep.subr.bf16.mxu1 %v4646_v52  ;;  %v7094_v46 = vpop.eup %5115  ;;  %v1781_v0 = vsub.f32 %v9516_v57, %v6943_v44  ;;  %v9517_v52 = vld [vmem:[#allocation87_spill] sm:$0xff]  ;;  %5131 = vpow2.f32 %v1850_v36  ;;  %v1854_v18 = vmul.f32 1.442695, %v1780_v11  ;;  %v1968_v45 = vadd.f32 %v7081_v24, %v7074_v17 }
 0x335   : > { %v7072_v39 = vpop.f32.mrb[161].mxu0  ;;  %v1098_v53 = vmul.f32 %v5114_v63, %v9518_v2  ;;  %v1894_v3 = vmul.f32 1.442695, %v1800_v40  ;;  %5133 = vrcp.f32 %v997_v30  ;;  %v7122_v36 = vpop.xlane.xlu0 %1732  ;;  %v9526_v2 = vld [vmem:[#allocation104_spill] sm:$0xff] }
 0x336   : > { %1966 = vadd.xlane.f32.xlu0 %v1965_v12  ;;  %v7104_v47 = vpop.eup %5117  ;;  %v1093_v12 = vmul.f32 %v5104_v1, %v9517_v52  ;;  %5135 = vpow2.f32 %v1852_v23  ;;  %v1896_v1 = vmul.f32 1.442695, %v1801_v8  ;;  %v1856_v57 = vmul.f32 1.442695, %v1781_v0  ;;  %v9522_v8 = vld [vmem:[#allocation74_spill] sm:$0xff]  ;;  %v9523_v0 = vld [vmem:[#allocation96_spill] sm:$0xff] }
 0x337   : > { %4649 = vmatpush1.bf16.xpose.msra.mxu1 %v4648_v61  ;;  %v7109_v55 = vpop.eup %5119  ;;  %v4654_v49 = vpack.c.bf16 %v1100_v28, %v1098_v53  ;;  %5137 = vrcp.f32 %v7032_v33  ;;  %v1804_v28 = vsub.f32 %v9522_v8, %v7016_v58  ;;  %v1099_v52 = vmul.f32 %v5110_v54, %v9523_v0  ;;  %v9530_v54 = vld [vmem:[#allocation39_spill] sm:$0xff] }
 0x338   : > { %4651 = vmatprep.subr.bf16.mxu1 %v4650_v48  ;;  %v7087_v21 = vpop.f32.mrb[162].mxu0  ;;  %v7118_v61 = vpop.eup %5121  ;;  %v4652_v44 = vpack.c.bf16 %v1095_v20, %v1093_v12  ;;  %v1962_v30 = vadd.f32 %v7109_v55, %v7104_v47  ;;  %5139 = vpow2.f32 %v1854_v18  ;;  %v9525_v12 = vld [vmem:[#allocation75_spill] sm:$0xff] }
 0x339   : > { %v7092_v38 = vpop.f32.mrb[163].mxu0  ;;  %v1971_v23 = vadd.f32 %v7118_v61, %v7094_v46  ;;  %5141 = vpow2.f32 %v1894_v3  ;;  %v1805_v18 = vsub.f32 %v9525_v12, %v7016_v58  ;;  %v7150_v0 = vpop.xlane.xlu0 %1735  ;;  %v9531_v58 = vld [vmem:[#allocation100_spill] sm:$0xff] }
 0x33a   : > { %1750 = vmax.xlane.f32.xlu0 %v9515_v62  ;;  %v5124_v62 = vpop.eup %5123  ;;  %5143 = vpow2.f32 %v1896_v1  ;;  %v1782_v1 = vsub.f32 %v9530_v54, %v6947_v22 }
 0x33b   : > { %v5126_v20 = vpop.eup %5125  ;;  %v1104_v53 = vmul.f32 %v5124_v62, %v9526_v2  ;;  %5145 = vpow2.f32 %v1856_v57  ;;  %v9533_v2 = vld [vmem:[#allocation40_spill] sm:$0xff]  ;;  %v9534_v57 = vld [vmem:[#allocation113_spill] sm:$0xff] }
 0x33c   : > { %v7116_v37 = vpop.f32.mrb[164].mxu0  ;;  %v7143_v3 = vpop.eup %5127  ;;  %v1102_v12 = vmul.f32 %v5126_v20, %v9531_v58  ;;  %v1783_v11 = vsub.f32 %v9533_v2, %v6947_v22  ;;  %5147 = vrcp.f32 %v7076_v34  ;;  %v9540_v58 = vld [vmem:[#allocation89_spill] sm:$0xff] }
 0x33d   : > { %9519 = vst [vmem:[#allocation64_spill] sm:$0xff] %v7116_v37  ;;  %v7120_v48 = vpop.f32.mrb[165].mxu0  ;;  %9527 = vst [vmem:[#allocation68_spill] sm:$0xff] %v7143_v3  ;;  %v7146_v8 = vpop.eup %5129  ;;  %5149 = vrcp.f32 %v7048_v14  ;;  %v1808_v14 = vsub.f32 %v6375_v6, %v7122_v36 }
 0x33e   : > { %9520 = vst [vmem:[#allocation59_spill] sm:$0xff] %v7120_v48  ;;  %1969 = vadd.xlane.f32.xlu0 %v1968_v45  ;;  %v1012_v45 = vpop.xlane.xlu1 %1011  ;;  %9529 = vst [vmem:[#allocation31_spill] sm:$0xff] %v7146_v8  ;;  %v7163_v54 = vpop.eup %5131  ;;  %v4658_v37 = vpack.c.bf16 %v1104_v53, %v1102_v12  ;;  %v2001_v34 = vadd.f32 %v7146_v8, %v7143_v3  ;;  %v1860_v12 = vmul.f32 1.442695, %v1783_v11  ;;  %v9548_v8 = vld [vmem:[#allocation90_spill] sm:$0xff] }
 0x33f   : > { %4653 = vmatpush1.bf16.xpose.msra.mxu1 %v4652_v44  ;;  %v1902_v44 = vmul.f32 1.442695, %v1804_v28  ;;  %9538 = vst [vmem:[#allocation34_spill] sm:$0xff] %v7163_v54  ;;  %v5134_v28 = vpop.eup %5133  ;;  %v1910_v6 = vmul.f32 1.442695, %v1808_v14 }
 0x340   : > { %4655 = vmatprep.subr.bf16.mxu1 %v4654_v49  ;;  %v7131_v40 = vpop.f32.mrb[166].mxu0  ;;  %v9528_v49 = vld [vmem:[#allocation92_spill] sm:$0xff]  ;;  %v1106_v11 = vmul.f32 %v5134_v28, %v6793_v5 }
 0x341   : > { %9521 = vst [vmem:[#allocation63_spill] sm:$0xff] %v7131_v40  ;;  %1963 = vadd.xlane.f32.xlu1 %v1962_v30  ;;  %v7136_v33 = vpop.f32.mrb[167].mxu0  ;;  %v1097_v30 = vmul.f32 %v5114_v63, %v9528_v49  ;;  %v9536_v63 = vmax.f32 %v9534_v57, %v9535_v41  ;;  %v9539_v40 = vld [vmem:[#allocation88_spill] sm:$0xff]  ;;  %5151 = vpow2.f32 %v1902_v44  ;;  %v9549_v41 = vld [vmem:[#allocation91_spill] sm:$0xff] }
 0x342   : > { %9524 = vst [vmem:[#allocation70_spill] sm:$0xff] %v7136_v33  ;;  %1972 = vadd.xlane.f32.xlu0 %v1971_v23  ;;  %v1904_v33 = vmul.f32 1.442695, %v1805_v18  ;;  %v9541_v48 = vmax.f32 %v9539_v40, %v9540_v58  ;;  %v9543_v18 = vld [vmem:[#allocation41_spill] sm:$0xff]  ;;  %v9550_v57 = vmax.f32 %v9548_v8, %v9549_v41 }
 0x343   : > { %v4656_v49 = vpack.c.bf16 %v1099_v52, %v1097_v30  ;;  %v7173_v52 = vpop.eup %5135  ;;  %v1858_v30 = vmul.f32 1.442695, %v1782_v1  ;;  %v1784_v2 = vsub.f32 %v9543_v18, %v6951_v56  ;;  %v1809_v18 = vsub.f32 %v6378_v25, %v7122_v36 }
 0x344   : > { %v7153_v23 = vpop.f32.mrb[168].mxu0  ;;  %9542 = vst [vmem:[#allocation84_spill] sm:$0xff] %v7173_v52  ;;  %v5138_v53 = vpop.eup %5137  ;;  %5153 = vpow2.f32 %v1904_v33  ;;  %v1974_v36 = vadd.f32 %v7173_v52, %v7163_v54 }
 0x345   : > { %9532 = vst [vmem:[#allocation32_spill] sm:$0xff] %v7153_v23  ;;  %2706 = vmax.xlane.f32.xlu1 %v9536_v63  ;;  %v7161_v10 = vpop.f32.mrb[169].mxu0  ;;  %v7177_v63 = vpop.xlane.xlu1 %1014  ;;  %5155 = vpow2.f32 %v1858_v30  ;;  %v1862_v25 = vmul.f32 1.442695, %v1784_v2  ;;  %v1912_v2 = vmul.f32 1.442695, %v1809_v18 }
 0x346   : > { %9537 = vst [vmem:[#allocation33_spill] sm:$0xff] %v7161_v10  ;;  %1753 = vmax.xlane.f32.xlu0 %v9541_v48  ;;  %v7186_v1 = vpop.eup %5139  ;;  %5157 = vrcp.f32 %v1012_v45 }
 0x347   : > { %4657 = vmatpush1.bf16.xpose.msra.mxu1 %v4656_v49  ;;  %v9545_v49 = vld [vmem:[#allocation102_spill] sm:$0xff]  ;;  %9547 = vst [vmem:[#allocation35_spill] sm:$0xff] %v7186_v1  ;;  %v7196_v44 = vpop.eup %5141  ;;  %5159 = vpow2.f32 %v1860_v12 }
 0x348   : > { %4659 = vmatprep.subr.bf16.mxu1 %v4658_v37  ;;  %v7179_v48 = vpop.f32.mrb[170].mxu0  ;;  %v1103_v22 = vmul.f32 %v5124_v62, %v9545_v49  ;;  %v1739_v37 = vpop.xlane.xlu0 %1738  ;;  %9551 = vst [vmem:[#allocation36_spill] sm:$0xff] %v7196_v44  ;;  %v9552_v62 = vld [vmem:[#allocation42_spill] sm:$0xff]  ;;  %v9553_v49 = vld [vmem:[#allocation99_spill] sm:$0xff]  ;;  %5161 = vrcp.f32 %v7111_v31  ;;  %v1105_v31 = vmul.f32 %v5134_v28, %v6789_v51  ;;  %v9567_v51 = vld [vmem:[#allocation44_spill] sm:$0xff] }
 0x349   : > { %9544 = vst [vmem:[#allocation85_spill] sm:$0xff] %v7179_v48  ;;  %2002 = vadd.xlane.f32.xlu1 %v2001_v34  ;;  %v7184_v3 = vpop.f32.mrb[171].mxu0  ;;  %v1785_v34 = vsub.f32 %v9552_v62, %v6951_v56  ;;  %v1101_v33 = vmul.f32 %v5126_v20, %v9553_v49  ;;  %v7201_v10 = vpop.eup %5143  ;;  %v9558_v48 = vld [vmem:[#allocation8_spill] sm:$0xff]  ;;  %5163 = vpow2.f32 %v1862_v25  ;;  %v1812_v18 = vsub.f32 %v6397_v26, %v1739_v37 }
 0x34a   : > { %9546 = vst [vmem:[#allocation86_spill] sm:$0xff] %v7184_v3  ;;  %1756 = vmax.xlane.f32.xlu0 %v9550_v57  ;;  %9554 = vst [vmem:[#allocation37_spill] sm:$0xff] %v7201_v10  ;;  %v9555_v57 = vld [vmem:[#allocation9_spill] sm:$0xff]  ;;  %v7208_v17 = vpop.eup %5145  ;;  %v9557_v3 = vld [vmem:[#allocation7_spill] sm:$0xff]  ;;  %v1018_v30 = vpop.xlane.xlu1 %1017  ;;  %v2007_v45 = vadd.f32 %v7201_v10, %v7196_v44  ;;  %5165 = vpow2.f32 %v1910_v6  ;;  %v1786_v28 = vsub.f32 %v9567_v51, %v6955_v7 }
 0x34b   : > { %v1108_v23 = vmul.f32 %v5138_v53, %v9555_v57  ;;  %v9559_v56 = vmax.f32 %v9557_v3, %v9558_v48  ;;  %v4660_v20 = vpack.c.bf16 %v1103_v22, %v1101_v33  ;;  %v5148_v54 = vpop.eup %5147  ;;  %v1864_v52 = vmul.f32 1.442695, %v1785_v34  ;;  %v9563_v33 = vld [vmem:[#allocation14_spill] sm:$0xff]  ;;  %v9565_v6 = vld [vmem:[#allocation3_spill] sm:$0xff] }
 0x34c   : > { %v7206_v5 = vpop.f32.mrb[172].mxu0  ;;  %v7220_v22 = vpop.xlane.xlu0 %1741  ;;  %v1977_v12 = vadd.f32 %v7208_v17, %v7186_v1  ;;  %5167 = vpow2.f32 %v1912_v2  ;;  %v1813_v34 = vsub.f32 %v6400_v29, %v1739_v37  ;;  %v1112_v25 = vmul.f32 %v5148_v54, %v9563_v33  ;;  %v9568_v2 = vld [vmem:[#allocation5_spill] sm:$0xff]  ;;  %v9570_v37 = vld [vmem:[#allocation46_spill] sm:$0xff] }
 0x34d   : > { %9556 = vst [vmem:[#allocation38_spill] sm:$0xff] %v7206_v5  ;;  %2712 = vmax.xlane.f32.xlu1 %v9559_v56  ;;  %v7213_v62 = vpop.f32.mrb[173].mxu0  ;;  %v4662_v49 = vpack.c.bf16 %v1108_v23, %v1106_v11  ;;  %v5150_v23 = vpop.eup %5149  ;;  %5169 = vpow2.f32 %v1864_v52  ;;  %v1918_v33 = vmul.f32 1.442695, %v1812_v18  ;;  %v9572_v57 = vld [vmem:[#allocation30_spill] sm:$0xff] }
 0x34e   : > { %9560 = vst [vmem:[#allocation87_spill] sm:$0xff] %v7213_v62  ;;  %1975 = vadd.xlane.f32.xlu0 %v1974_v36  ;;  %v7234_v56 = vpop.eup %5151  ;;  %5171 = vrcp.f32 %v1018_v30  ;;  %v9571_v36 = vld [vmem:[#allocation29_spill] sm:$0xff]  ;;  %v1920_v51 = vmul.f32 1.442695, %v1813_v34  ;;  %v9576_v48 = vld [vmem:[#allocation94_spill] sm:$0xff]  ;;  %v9580_v34 = vld [vmem:[#allocation48_spill] sm:$0xff] }
 0x34f   : > { %4661 = vmatpush1.bf16.xpose.msra.mxu1 %v4660_v20  ;;  %9564 = vst [vmem:[#allocation96_spill] sm:$0xff] %v7234_v56  ;;  %v1107_v20 = vmul.f32 %v5138_v53, %v9565_v6  ;;  %v7237_v26 = vpop.eup %5153  ;;  %v9573_v52 = vmax.f32 %v9571_v36, %v9572_v57  ;;  %5173 = vrcp.f32 %v7177_v63  ;;  %v9583_v63 = vld [vmem:[#allocation13_spill] sm:$0xff]  ;;  %v9590_v36 = vld [vmem:[#allocation27_spill] sm:$0xff] }
 0x350   : > { %4663 = vmatprep.subr.bf16.mxu1 %v4662_v49  ;;  %v7224_v14 = vpop.f32.mrb[174].mxu0  ;;  %9566 = vst [vmem:[#allocation75_spill] sm:$0xff] %v7237_v26  ;;  %v1021_v49 = vpop.xlane.xlu1 %1020  ;;  %v2013_v18 = vadd.f32 %v7237_v26, %v7234_v56  ;;  %5175 = vpow2.f32 %v1918_v33  ;;  %v9586_v26 = vld [vmem:[#allocation83_spill] sm:$0xff] }
 0x351   : > { %9561 = vst [vmem:[#allocation93_spill] sm:$0xff] %v7224_v14  ;;  %2008 = vadd.xlane.f32.xlu1 %v2007_v45  ;;  %v7228_v11 = vpop.f32.mrb[175].mxu0  ;;  %v1110_v45 = vmul.f32 %v5150_v23, %v9568_v2  ;;  %v4664_v53 = vpack.c.bf16 %v1107_v20, %v1105_v31  ;;  %v7251_v44 = vpop.eup %5155  ;;  %v9577_v2 = vld [vmem:[#allocation95_spill] sm:$0xff]  ;;  %v1866_v20 = vmul.f32 1.442695, %v1786_v28  ;;  %5177 = vpow2.f32 %v1920_v51  ;;  %v9595_v51 = vld [vmem:[#allocation16_spill] sm:$0xff] }
 0x352   : > { %9562 = vst [vmem:[#allocation74_spill] sm:$0xff] %v7228_v11  ;;  %1978 = vadd.xlane.f32.xlu0 %v1977_v12  ;;  %v1787_v12 = vsub.f32 %v9570_v37, %v6955_v7  ;;  %9575 = vst [vmem:[#allocation39_spill] sm:$0xff] %v7251_v44  ;;  %v1745_v10 = vpop.xlane.xlu0 %1744  ;;  %v9578_v11 = vmax.f32 %v9576_v48, %v9577_v2  ;;  %v5158_v30 = vpop.eup %5157  ;;  %v1788_v37 = vsub.f32 %v9580_v34, %v6959_v13 }
 0x353   : > { %v4666_v14 = vpack.c.bf16 %v1112_v25, %v1110_v45  ;;  %v7261_v31 = vpop.eup %5159  ;;  %v9582_v45 = vld [vmem:[#allocation82_spill] sm:$0xff]  ;;  %v1817_v34 = vsub.f32 %v9586_v26, %v1745_v10  ;;  %5179 = vpow2.f32 %v1866_v20 }
 0x354   : > { %v7242_v29 = vpop.f32.mrb[176].mxu0  ;;  %9579 = vst [vmem:[#allocation100_spill] sm:$0xff] %v7261_v31  ;;  %v1868_v25 = vmul.f32 1.442695, %v1787_v12  ;;  %v1816_v7 = vsub.f32 %v9582_v45, %v1745_v10  ;;  %v1024_v28 = vpop.xlane.xlu1 %1023  ;;  %v1116_v12 = vmul.f32 %v5158_v30, %v9590_v36  ;;  %v1870_v10 = vmul.f32 1.442695, %v1788_v37 }
 0x355   : > { %9569 = vst [vmem:[#allocation104_spill] sm:$0xff] %v7242_v29  ;;  %2718 = vmax.xlane.f32.xlu1 %v9573_v52  ;;  %v7249_v6 = vpop.f32.mrb[177].mxu0  ;;  %v9588_v29 = vld [vmem:[#allocation98_spill] sm:$0xff]  ;;  %5181 = vrcp.f32 %v1024_v28  ;;  %v1928_v37 = vmul.f32 1.442695, %v1817_v34  ;;  %v9604_v28 = vld [vmem:[#allocation19_spill] sm:$0xff] }
 0x356   : > { %9574 = vst [vmem:[#allocation92_spill] sm:$0xff] %v7249_v6  ;;  %1759 = vmax.xlane.f32.xlu0 %v9578_v11  ;;  %v7267_v11 = vpop.eup %5161  ;;  %v1027_v26 = vpop.xlane.xlu0 %1026  ;;  %5183 = vpow2.f32 %v1868_v25 }
 0x357   : > { %4665 = vmatpush1.bf16.xpose.msra.mxu1 %v4664_v53  ;;  %v1111_v53 = vmul.f32 %v5148_v54, %v9583_v63  ;;  %v7273_v56 = vpop.eup %5163  ;;  %v9592_v54 = vld [vmem:[#allocation50_spill] sm:$0xff]  ;;  %v9593_v63 = vld [vmem:[#allocation4_spill] sm:$0xff]  ;;  %v1114_v36 = vmul.f32 %v7267_v11, %v9595_v51  ;;  %5185 = vrcp.f32 %v1021_v49 }
 0x358   : > { %4667 = vmatprep.subr.bf16.mxu1 %v4666_v14  ;;  %v7265_v52 = vpop.f32.mrb[178].mxu0  ;;  %9585 = vst [vmem:[#allocation89_spill] sm:$0xff] %v7273_v56  ;;  %v9587_v14 = vld [vmem:[#allocation97_spill] sm:$0xff]  ;;  %v1789_v45 = vsub.f32 %v9592_v54, %v6959_v13  ;;  %v1109_v3 = vmul.f32 %v5150_v23, %v9593_v63  ;;  %v9598_v13 = vld [vmem:[#allocation11_spill] sm:$0xff]  ;;  %v9599_v54 = vld [vmem:[#allocation12_spill] sm:$0xff]  ;;  %5187 = vpow2.f32 %v1870_v10 }
 0x359   : > { %9581 = vst [vmem:[#allocation40_spill] sm:$0xff] %v7265_v52  ;;  %2014 = vadd.xlane.f32.xlu1 %v2013_v18  ;;  %v7271_v6 = vpop.f32.mrb[179].mxu0  ;;  %v9589_v57 = vmax.f32 %v9587_v14, %v9588_v29  ;;  %v7282_v18 = vpop.eup %5165  ;;  %v9600_v23 = vmax.f32 %v9598_v13, %v9599_v54  ;;  %v4670_v52 = vpack.c.bf16 %v1116_v12, %v1114_v36 }
 0x35a   : > { %9584 = vst [vmem:[#allocation88_spill] sm:$0xff] %v7271_v6  ;;  %9591 = vst [vmem:[#allocation41_spill] sm:$0xff] %v7282_v18  ;;  %v7287_v62 = vpop.eup %5167  ;;  %v1926_v6 = vmul.f32 1.442695, %v1816_v7  ;;  %v4668_v63 = vpack.c.bf16 %v1111_v53, %v1109_v3  ;;  %v1872_v1 = vmul.f32 1.442695, %v1789_v45  ;;  %v1030_v12 = vpop.xlane.xlu0 %1029 }
 0x35b   : > { %1762 = vmax.xlane.f32.xlu0 %v9589_v57  ;;  %9594 = vst [vmem:[#allocation102_spill] sm:$0xff] %v7287_v62  ;;  %v1980_v57 = vadd.f32 %v7261_v31, %v7251_v44  ;;  %v7295_v33 = vpop.eup %5169  ;;  %v2019_v7 = vadd.f32 %v7287_v62, %v7282_v18  ;;  %v9603_v53 = vmov 0.0   ;;  %v9606_v45 = vld [vmem:[#allocation120_spill] sm:$0xff]  ;;  %v9619_v18 = vld [vmem:[#allocation101_spill] sm:$0xff]  ;;  %v9620_v62 = vld [vmem:[#allocation103_spill] sm:$0xff] }
 0x35c   : > { %v7293_v5 = vpop.f32.mrb[180].mxu0  ;;  %9597 = vst [vmem:[#allocation91_spill] sm:$0xff] %v7295_v33  ;;  %v5172_v31 = vpop.eup %5171  ;;  %v1983_v3 = vadd.f32 %v7295_v33, %v7273_v56  ;;  %5189 = vpow2.f32 %v1926_v6  ;;  %v9608_v6 = vld [vmem:[#allocation15_spill] sm:$0xff] }
 0x35d   : > { %9596 = vst [vmem:[#allocation90_spill] sm:$0xff] %v7293_v5  ;;  %2724 = vmax.xlane.f32.xlu1 %v9600_v23  ;;  %v7300_v20 = vpop.f32.mrb[181].mxu0  ;;  %v5174_v49 = vpop.eup %5173  ;;  %5191 = vpow2.f32 %v1928_v37  ;;  %v1120_v10 = vmul.f32 %v5172_v31, %v9606_v45  ;;  %v9610_v37 = vld [vmem:[#allocation116_spill] sm:$0xff]  ;;  %v9612_v45 = vld [vmem:[#allocation17_spill] sm:$0xff] }
 0x35e   : > { %9601 = vst [vmem:[#allocation42_spill] sm:$0xff] %v7300_v20  ;;  %v3349_v44 = vpop.trf.xlu1  ;;  %v7325_v23 = vpop.eup %5175  ;;  %5193 = vpow2.f32 %v1872_v1 }
 0x35f   : > { %1981 = vadd.xlane.f32.xlu0 %v1980_v57  ;;  %4669 = vmatpush1.bf16.xpose.msra.mxu1 %v4668_v63  ;;  %9607 = vst [vmem:[#allocation14_spill] sm:$0xff] %v7325_v23  ;;  %v1113_v63 = vmul.f32 %v7267_v11, %v9608_v6  ;;  %5195 = vrcp.f32 %v1030_v12  ;;  %v9617_v11 = vld [vmem:[#allocation53_spill] sm:$0xff] }
 0x360   : > { %4588 = vmatmul.mubr.msk.f32.gmra.mrb[224].mxu0 %vm299_vm0, %v3349_v44  ;;  %4671 = vmatprep.subr.bf16.mxu1 %v4670_v52  ;;  %v7309_v25 = vpop.f32.mrb[182].mxu0  ;;  %v1115_v44 = vmul.f32 %v5158_v30, %v9604_v28  ;;  %v228_v52 = vld [vmem:[%s7316_s23 + $0x8] sm:$0xff]  ;;  %v7330_v30 = vpop.eup %5177  ;;  %5197 = vrcp.f32 %v1027_v26 }
 0x361   : > { %9602 = vst [vmem:[#allocation99_spill] sm:$0xff] %v7309_v25  ;;  %3627 = vmatprep.mubr.f32.mxu0 %v9603_v53  ;;  %2020 = vadd.xlane.f32.xlu1 %v2019_v7  ;;  %v7319_v34 = vpop.f32.mrb[183].mxu0  ;;  %9609 = vst [vmem:[#allocation3_spill] sm:$0xff] %v7330_v30  ;;  %v1118_v7 = vmul.f32 %v5174_v49, %v9610_v37  ;;  %v7341_v36 = vpop.eup %5179  ;;  %v9621_v37 = vmax.f32 %v9619_v18, %v9620_v62 }
 0x362   : > { %9605 = vst [vmem:[#allocation9_spill] sm:$0xff] %v7319_v34  ;;  %v3350_v57 = vpop.trf.xlu1  ;;  %1197 = vmatprep.mubr.f32.mxu1 %v228_v52  ;;  %v4672_v28 = vpack.c.bf16 %v1115_v44, %v1113_v63  ;;  %v9613_v52 = vld [vmem:[#allocation18_spill] sm:$0xff]  ;;  %9616 = vst [vmem:[#allocation46_spill] sm:$0xff] %v7341_v36  ;;  %v5182_v12 = vpop.eup %5181 }
 0x363   : > { %1984 = vadd.xlane.f32.xlu0 %v1983_v3  ;;  %v9614_v51 = vmax.f32 %v9612_v45, %v9613_v52  ;;  %v4674_v20 = vpack.c.bf16 %v1120_v10, %v1118_v7  ;;  %v9622_v63 = vld [vmem:[#allocation54_spill] sm:$0xff]  ;;  %v2025_v52 = vadd.f32 %v7330_v30, %v7325_v23 }
 0x364   : > { %4589 = vmatmul.mubr.msk.f32.gmra.mrb[226].mxu0 %vm299_vm0, %v3350_v57  ;;  %v7333_v3 = vpop.f32.mrb[184].mxu0  ;;  %v9618_v57 = vld [vmem:[#allocation52_spill] sm:$0xff]  ;;  %v9625_v7 = vld [vmem:[#allocation118_spill] sm:$0xff] }
 0x365   : > { %9611 = vst [vmem:[#allocation44_spill] sm:$0xff] %v7333_v3  ;;  %3633 = vmatprep.mubr.f32.mxu0 %v9603_v53  ;;  %2730 = vmax.xlane.f32.xlu1 %v9614_v51  ;;  %v7339_v1 = vpop.f32.mrb[185].mxu0  ;;  %v1790_v6 = vsub.f32 %v9618_v57, %v9617_v11  ;;  %v1791_v51 = vsub.f32 %v9622_v63, %v9617_v11  ;;  %v7355_v57 = vpop.eup %5183  ;;  %v9627_v11 = vld [vmem:[#allocation57_spill] sm:$0xff]  ;;  %v9628_v63 = vld [vmem:[#allocation56_spill] sm:$0xff]  ;;  %v9630_v30 = vld [vmem:[#allocation106_spill] sm:$0xff] }
 0x366   : > { %9615 = vst [vmem:[#allocation5_spill] sm:$0xff] %v7339_v1  ;;  %v3351_v5 = vpop.trf.xlu1  ;;  %9623 = vst [vmem:[#allocation94_spill] sm:$0xff] %v7355_v57  ;;  %v5186_v10 = vpop.eup %5185  ;;  %v1119_v44 = vmul.f32 %v5172_v31, %v9625_v7  ;;  %v1792_v23 = vsub.f32 %v9628_v63, %v9627_v11  ;;  %v9634_v7 = vld [vmem:[#allocation58_spill] sm:$0xff] }
 0x367   : > { %1765 = vmax.xlane.f32.xlu0 %v9621_v37  ;;  %4673 = vmatpush1.bf16.xpose.msra.mxu1 %v4672_v28  ;;  %v7363_v26 = vpop.eup %5187  ;;  %v1874_v28 = vmul.f32 1.442695, %v1790_v6  ;;  %v1876_v31 = vmul.f32 1.442695, %v1791_v51  ;;  %v1793_v54 = vsub.f32 %v9634_v7, %v9627_v11  ;;  %v9635_v6 = vld [vmem:[#allocation20_spill] sm:$0xff]  ;;  %v9640_v11 = vld [vmem:[#allocation119_spill] sm:$0xff] }
 0x368   : > { %4590 = vmatmul.mubr.msk.f32.gmra.mrb[228].mxu0 %vm299_vm0, %v3351_v5  ;;  %4675 = vmatprep.subr.bf16.mxu1 %v4674_v20  ;;  %v7357_v37 = vpop.f32.mrb[186].mxu0  ;;  %v9629_v5 = vld [vmem:[#allocation105_spill] sm:$0xff]  ;;  %v9632_v20 = vld [vmem:[#allocation124_spill] sm:$0xff]  ;;  %v7373_v25 = vpop.eup %5189  ;;  %v1117_v13 = vmul.f32 %v5174_v49, %v9635_v6 }
 0x369   : > { %9624 = vst [vmem:[#allocation95_spill] sm:$0xff] %v7357_v37  ;;  %3639 = vmatprep.mubr.f32.mxu0 %v9603_v53  ;;  %2026 = vadd.xlane.f32.xlu1 %v2025_v52  ;;  %v7361_v1 = vpop.f32.mrb[187].mxu0  ;;  %v9631_v3 = vmax.f32 %v9629_v5, %v9630_v30  ;;  %v1124_v45 = vmul.f32 %v5182_v12, %v9632_v20  ;;  %9633 = vst [vmem:[#allocation82_spill] sm:$0xff] %v7373_v25  ;;  %v7379_v63 = vpop.eup %5191  ;;  %v9637_v20 = vld [vmem:[#allocation121_spill] sm:$0xff]  ;;  %5199 = vpow2.f32 %v1874_v28 }
 0x36a   : > { %9626 = vst [vmem:[#allocation48_spill] sm:$0xff] %v7361_v1  ;;  %v3352_v34 = vpop.trf.xlu1  ;;  %9636 = vst [vmem:[#allocation13_spill] sm:$0xff] %v7379_v63  ;;  %v1122_v56 = vmul.f32 %v5186_v10, %v9637_v20  ;;  %v7387_v52 = vpop.eup %5193  ;;  %v4676_v51 = vpack.c.bf16 %v1119_v44, %v1117_v13  ;;  %v9639_v1 = vld [vmem:[#allocation117_spill] sm:$0xff]  ;;  %5201 = vpow2.f32 %v1876_v31  ;;  %v2031_v13 = vadd.f32 %v7379_v63, %v7373_v25  ;;  %v9649_v25 = vld [vmem:[#allocation62_spill] sm:$0xff] }
 0x36b   : > { %1768 = vmax.xlane.f32.xlu0 %v9631_v3  ;;  %v1986_v3 = vadd.f32 %v7355_v57, %v7341_v36  ;;  %v9641_v7 = vmax.f32 %v9639_v1, %v9640_v11  ;;  %v5196_v36 = vpop.eup %5195  ;;  %v1880_v57 = vmul.f32 1.442695, %v1793_v54  ;;  %v1989_v44 = vadd.f32 %v7387_v52, %v7363_v26  ;;  %v9646_v54 = vld [vmem:[#allocation51_spill] sm:$0xff]  ;;  %v9691_v1 = vld [vmem:[#allocation65_spill] sm:$0xff] }
 0x36c   : > { %4591 = vmatmul.mubr.msk.f32.gmra.mrb[230].mxu0 %vm299_vm0, %v3352_v34  ;;  %v7384_v33 = vpop.f32.mrb[188].mxu0  ;;  %v1878_v34 = vmul.f32 1.442695, %v1792_v23  ;;  %v4678_v6 = vpack.c.bf16 %v1124_v45, %v1122_v56  ;;  %v5198_v56 = vpop.eup %5197  ;;  %v9644_v45 = vld [vmem:[#allocation122_spill] sm:$0xff]  ;;  %v1795_v63 = vsub.f32 %v9649_v25, %v9646_v54  ;;  %v9658_v25 = vld [vmem:[#allocation108_spill] sm:$0xff] }
 0x36d   : > { %9638 = vst [vmem:[#allocation83_spill] sm:$0xff] %v7384_v33  ;;  %3645 = vmatprep.mubr.f32.mxu0 %v9603_v53  ;;  %2736 = vmax.xlane.f32.xlu1 %v9641_v7  ;;  %v7392_v49 = vpop.f32.mrb[189].mxu0  ;;  %v1123_v28 = vmul.f32 %v5182_v12, %v9644_v45  ;;  %v9651_v12 = vld [vmem:[#allocation49_spill] sm:$0xff] }
 0x36e   : > { %9642 = vst [vmem:[#allocation97_spill] sm:$0xff] %v7392_v49  ;;  %v3353_v37 = vpop.trf.xlu1  ;;  %5203 = vpow2.f32 %v1878_v34  ;;  %v1126_v34 = vmul.f32 %v5198_v56, %v9651_v12  ;;  %v1884_v12 = vmul.f32 1.442695, %v1795_v63 }
 0x36f   : > { %1987 = vadd.xlane.f32.xlu0 %v1986_v3  ;;  %4677 = vmatpush1.bf16.xpose.msra.mxu1 %v4676_v51  ;;  %v9647_v3 = vld [vmem:[#allocation60_spill] sm:$0xff]  ;;  %5205 = vpow2.f32 %v1880_v57 }
 0x370   : > { %4592 = vmatmul.mubr.msk.f32.gmra.mrb[232].mxu0 %vm299_vm0, %v3353_v37  ;;  %4679 = vmatprep.subr.bf16.mxu1 %v4678_v6  ;;  %v7401_v23 = vpop.f32.mrb[190].mxu0  ;;  %v1794_v51 = vsub.f32 %v9647_v3, %v9646_v54  ;;  %v9648_v37 = vld [vmem:[#allocation47_spill] sm:$0xff]  ;;  %v9653_v3 = vld [vmem:[#allocation24_spill] sm:$0xff] }
 0x371   : > { %9643 = vst [vmem:[#allocation98_spill] sm:$0xff] %v7401_v23  ;;  %3651 = vmatprep.mubr.f32.mxu0 %v9603_v53  ;;  %2032 = vadd.xlane.f32.xlu1 %v2031_v13  ;;  %v7405_v31 = vpop.f32.mrb[191].mxu0  ;;  %v1128_v7 = vmul.f32 %v5196_v36, %v9648_v37  ;;  %v9650_v13 = vld [vmem:[#allocation22_spill] sm:$0xff]  ;;  %v9654_v37 = vld [vmem:[#allocation123_spill] sm:$0xff]  ;;  %v9669_v23 = vld [vmem:[#allocation45_spill] sm:$0xff] }
 0x372   : > { %9645 = vst [vmem:[#allocation27_spill] sm:$0xff] %v7405_v31  ;;  %v3354_v6 = vpop.trf.xlu1  ;;  %v1121_v49 = vmul.f32 %v5186_v10, %v9650_v13  ;;  %v9655_v33 = vmax.f32 %v9653_v3, %v9654_v37  ;;  %v1882_v57 = vmul.f32 1.442695, %v1794_v51  ;;  %v9657_v31 = vld [vmem:[#allocation107_spill] sm:$0xff]  ;;  %v9664_v13 = vld [vmem:[#allocation66_spill] sm:$0xff] }
 0x373   : > { %1990 = vadd.xlane.f32.xlu0 %v1989_v44  ;;  %v9659_v54 = vmax.f32 %v9657_v31, %v9658_v25  ;;  %v4682_v10 = vpack.c.bf16 %v1128_v7, %v1126_v34  ;;  %v9661_v51 = vld [vmem:[#allocation43_spill] sm:$0xff] }
 0x374   : > { %4593 = vmatmul.mubr.msk.f32.gmra.mrb[234].mxu0 %vm299_vm0, %v3354_v6  ;;  %v7417_v45 = vpop.f32.mrb[192].mxu0  ;;  %v4680_v44 = vpack.c.bf16 %v1123_v28, %v1121_v49  ;;  %v7431_v49 = vpop.eup %5199  ;;  %5207 = vpow2.f32 %v1882_v57  ;;  %v9663_v34 = vld [vmem:[#allocation55_spill] sm:$0xff] }
 0x375   : > { %9652 = vst [vmem:[#allocation50_spill] sm:$0xff] %v7417_v45  ;;  %3657 = vmatprep.mubr.f32.mxu0 %v9603_v53  ;;  %2742 = vmax.xlane.f32.xlu1 %v9655_v33  ;;  %v7423_v20 = vpop.f32.mrb[193].mxu0  ;;  %v7436_v28 = vpop.eup %5201  ;;  %v1798_v63 = vsub.f32 %v9664_v13, %v9663_v34  ;;  %5209 = vpow2.f32 %v1884_v12  ;;  %v9668_v37 = vld [vmem:[#allocation67_spill] sm:$0xff] }
 0x376   : > { %9656 = vst [vmem:[#allocation4_spill] sm:$0xff] %v7423_v20  ;;  %v3355_v6 = vpop.trf.xlu1  ;;  %v9666_v20 = vld [vmem:[#allocation110_spill] sm:$0xff]  ;;  %v1799_v3 = vsub.f32 %v9668_v37, %v9663_v34  ;;  %v1992_v13 = vadd.f32 %v7436_v28, %v7431_v49 }
 0x377   : > { %2697 = vmax.xlane.f32.xlu0 %v9659_v54  ;;  %4681 = vmatpush1.bf16.xpose.msra.mxu1 %v4680_v44  ;;  %v1127_v54 = vmul.f32 %v5196_v36, %v9661_v51  ;;  %v9665_v44 = vld [vmem:[#allocation109_spill] sm:$0xff]  ;;  %v1125_v36 = vmul.f32 %v5198_v56, %v9669_v23 }
 0x378   : > { %4594 = vmatmul.mubr.msk.f32.gmra.mrb[236].mxu0 %vm299_vm0, %v3355_v6  ;;  %4683 = vmatprep.subr.bf16.mxu1 %v4682_v10  ;;  %v7433_v33 = vpop.f32.mrb[194].mxu0  ;;  %v9667_v6 = vmax.f32 %v9665_v44, %v9666_v20  ;;  %v7452_v57 = vpop.eup %5203  ;;  %v1892_v56 = vmul.f32 1.442695, %v1799_v3 }
 0x379   : > { %9660 = vst [vmem:[#allocation16_spill] sm:$0xff] %v7433_v33  ;;  %3663 = vmatprep.mubr.f32.mxu0 %v9603_v53  ;;  %v7439_v7 = vpop.f32.mrb[195].mxu0  ;;  %v4684_v10 = vpack.c.bf16 %v1127_v54, %v1125_v36  ;;  %v9681_v33 = vld [vmem:[#allocation112_spill] sm:$0xff] }
 0x37a   : > { %9662 = vst [vmem:[#allocation19_spill] sm:$0xff] %v7439_v7  ;;  %v3356_v45 = vpop.trf.xlu1  ;;  %v1890_v7 = vmul.f32 1.442695, %v1798_v63  ;;  %v9674_v63 = vld [vmem:[#allocation72_spill] sm:$0xff] }
 0x37b   : > { %2700 = vmax.xlane.f32.xlu0 %v9667_v6  ;;  %v7459_v6 = vpop.eup %5205  ;;  %v1802_v36 = vsub.f32 %v9674_v63, %v7006_v15 }
 0x37c   : > { %4595 = vmatmul.mubr.msk.f32.gmra.mrb[238].mxu0 %vm299_vm0, %v3356_v45  ;;  %v7456_v51 = vpop.f32.mrb[196].mxu0  ;;  %v1995_v45 = vadd.f32 %v7459_v6, %v7452_v57  ;;  %5211 = vpow2.f32 %v1890_v7 }
 0x37d   : > { %9670 = vst [vmem:[#allocation120_spill] sm:$0xff] %v7456_v51  ;;  %3669 = vmatprep.mubr.f32.mxu0 %v9603_v53  ;;  %v7461_v12 = vpop.f32.mrb[197].mxu0  ;;  %5213 = vpow2.f32 %v1892_v56  ;;  %v9680_v51 = vld [vmem:[#allocation111_spill] sm:$0xff] }
 0x37e   : > { %9671 = vst [vmem:[#allocation15_spill] sm:$0xff] %v7461_v12  ;;  %v3357_v37 = vpop.trf.xlu1  ;;  %v7480_v23 = vpop.eup %5207  ;;  %v9682_v3 = vmax.f32 %v9680_v51, %v9681_v33 }
 0x37f   : > { %1993 = vadd.xlane.f32.xlu0 %v1992_v13  ;;  %4685 = vmatpush1.bf16.xpose.msra.mxu1 %v4684_v10  ;;  %v9675_v10 = vld [vmem:[#allocation73_spill] sm:$0xff]  ;;  %9676 = vst [vmem:[#allocation52_spill] sm:$0xff] %v7480_v23  ;;  %v7485_v7 = vpop.eup %5209 }
 0x380   : > { %4596 = vmatmul.mubr.msk.f32.gmra.mrb[240].mxu0 %vm299_vm0, %v3357_v37  ;;  %v7468_v34 = vpop.f32.mrb[198].mxu0  ;;  %v1803_v37 = vsub.f32 %v9675_v10, %v7006_v15  ;;  %9678 = vst [vmem:[#allocation103_spill] sm:$0xff] %v7485_v7  ;;  %v1998_v10 = vadd.f32 %v7485_v7, %v7480_v23  ;;  %v9692_v23 = vld [vmem:[#allocation6_spill] sm:$0xff] }
 0x381   : > { %9672 = vst [vmem:[#allocation116_spill] sm:$0xff] %v7468_v34  ;;  %3675 = vmatprep.mubr.f32.mxu0 %v9603_v53  ;;  %v7471_v54 = vpop.f32.mrb[199].mxu0 }
 0x382   : > { %9673 = vst [vmem:[#allocation53_spill] sm:$0xff] %v7471_v54  ;;  %v3358_v13 = vpop.trf.xlu1 }
 0x383   : > { %1996 = vadd.xlane.f32.xlu0 %v1995_v45  ;;  %v1898_v45 = vmul.f32 1.442695, %v1802_v36  ;;  %v9685_v36 = vld [vmem:[#allocation76_spill] sm:$0xff] }
 0x384   : > { %4597 = vmatmul.mubr.msk.f32.gmra.mrb[242].mxu0 %vm299_vm0, %v3358_v13  ;;  %v7482_v12 = vpop.f32.mrb[200].mxu0  ;;  %v1900_v13 = vmul.f32 1.442695, %v1803_v37  ;;  %v9693_v37 = vmax.f32 %v9691_v1, %v9692_v23 }
 0x385   : > { %9677 = vst [vmem:[#allocation101_spill] sm:$0xff] %v7482_v12  ;;  %3681 = vmatprep.mubr.f32.mxu0 %v9603_v53  ;;  %v7487_v63 = vpop.f32.mrb[201].mxu0  ;;  %5215 = vpow2.f32 %v1898_v45 }
 0x386   : > { %9679 = vst [vmem:[#allocation54_spill] sm:$0xff] %v7487_v63  ;;  %v3359_v56 = vpop.trf.xlu1  ;;  %5217 = vpow2.f32 %v1900_v13  ;;  %v7509_v63 = vpop.eup %5211 }
 0x387   : > { %2703 = vmax.xlane.f32.xlu0 %v9682_v3  ;;  %v1806_v3 = vsub.f32 %v9685_v36, %v7085_v32  ;;  %9687 = vst [vmem:[#allocation56_spill] sm:$0xff] %v7509_v63  ;;  %v7514_v45 = vpop.eup %5213 }
 0x388   : > { %4598 = vmatmul.mubr.msk.f32.gmra.mrb[244].mxu0 %vm299_vm0, %v3359_v56  ;;  %v7497_v54 = vpop.f32.mrb[202].mxu0  ;;  %v9686_v56 = vld [vmem:[#allocation77_spill] sm:$0xff]  ;;  %9689 = vst [vmem:[#allocation106_spill] sm:$0xff] %v7514_v45 }
 0x389   : > { %9683 = vst [vmem:[#allocation118_spill] sm:$0xff] %v7497_v54  ;;  %3687 = vmatprep.mubr.f32.mxu0 %v9603_v53  ;;  %v7500_v34 = vpop.f32.mrb[203].mxu0  ;;  %v1807_v15 = vsub.f32 %v9686_v56, %v7085_v32  ;;  %v2004_v56 = vadd.f32 %v7514_v45, %v7509_v63  ;;  %v9702_v63 = vld [vmem:[#allocation69_spill] sm:$0xff]  ;;  %v9703_v45 = vld [vmem:[#allocation2_spill] sm:$0xff] }
 0x38a   : > { %9684 = vst [vmem:[#allocation57_spill] sm:$0xff] %v7500_v34  ;;  %v3360_v11 = vpop.trf.xlu1 }
 0x38b   : > { %1999 = vadd.xlane.f32.xlu0 %v1998_v10  ;;  %v1906_v10 = vmul.f32 1.442695, %v1806_v3  ;;  %v9696_v3 = vld [vmem:[#allocation78_spill] sm:$0xff] }
 0x38c   : > { %4599 = vmatmul.mubr.msk.f32.gmra.mrb[246].mxu0 %vm299_vm0, %v3360_v11  ;;  %v7511_v12 = vpop.f32.mrb[204].mxu0  ;;  %v1908_v11 = vmul.f32 1.442695, %v1807_v15  ;;  %v9704_v15 = vmax.f32 %v9702_v63, %v9703_v45 }
 0x38d   : > { %9688 = vst [vmem:[#allocation105_spill] sm:$0xff] %v7511_v12  ;;  %3693 = vmatprep.mubr.f32.mxu0 %v9603_v53  ;;  %v7516_v36 = vpop.f32.mrb[205].mxu0  ;;  %5219 = vpow2.f32 %v1906_v10 }
 0x38e   : > { %9690 = vst [vmem:[#allocation124_spill] sm:$0xff] %v7516_v36  ;;  %v3361_v13 = vpop.trf.xlu1  ;;  %5221 = vpow2.f32 %v1908_v11 }
 0x38f   : > { %2709 = vmax.xlane.f32.xlu0 %v9693_v37  ;;  %v1810_v37 = vsub.f32 %v9696_v3, %v7150_v0  ;;  %v7538_v36 = vpop.eup %5215 }
 0x390   : > { %4600 = vmatmul.mubr.msk.f32.gmra.mrb[248].mxu0 %vm299_vm0, %v3361_v13  ;;  %v7526_v34 = vpop.f32.mrb[206].mxu0  ;;  %v9697_v13 = vld [vmem:[#allocation79_spill] sm:$0xff]  ;;  %9698 = vst [vmem:[#allocation121_spill] sm:$0xff] %v7538_v36  ;;  %v7543_v10 = vpop.eup %5217 }
 0x391   : > { %9694 = vst [vmem:[#allocation58_spill] sm:$0xff] %v7526_v34  ;;  %3699 = vmatprep.mubr.f32.mxu0 %v9603_v53  ;;  %v7529_v54 = vpop.f32.mrb[207].mxu0  ;;  %v1811_v32 = vsub.f32 %v9697_v13, %v7150_v0  ;;  %9700 = vst [vmem:[#allocation51_spill] sm:$0xff] %v7543_v10  ;;  %v2010_v13 = vadd.f32 %v7543_v10, %v7538_v36  ;;  %v9714_v36 = vld [vmem:[#allocation10_spill] sm:$0xff] }
 0x392   : > { %9695 = vst [vmem:[#allocation20_spill] sm:$0xff] %v7529_v54  ;;  %v3362_v7 = vpop.trf.xlu1 }
 0x393   : > { %2005 = vadd.xlane.f32.xlu0 %v2004_v56  ;;  %v1914_v56 = vmul.f32 1.442695, %v1810_v37  ;;  %v9707_v37 = vld [vmem:[#allocation80_spill] sm:$0xff] }
 0x394   : > { %4601 = vmatmul.mubr.msk.f32.gmra.mrb[250].mxu0 %vm299_vm0, %v3362_v7  ;;  %v7540_v12 = vpop.f32.mrb[208].mxu0  ;;  %v1916_v7 = vmul.f32 1.442695, %v1811_v32 }
 0x395   : > { %9699 = vst [vmem:[#allocation122_spill] sm:$0xff] %v7540_v12  ;;  %3705 = vmatprep.mubr.f32.mxu0 %v9603_v53  ;;  %v7545_v3 = vpop.f32.mrb[209].mxu0  ;;  %5223 = vpow2.f32 %v1914_v56 }
 0x396   : > { %9701 = vst [vmem:[#allocation60_spill] sm:$0xff] %v7545_v3  ;;  %v3363_v11 = vpop.trf.xlu1  ;;  %5225 = vpow2.f32 %v1916_v7  ;;  %v9722_v7 = vld [vmem:[#allocation25_spill] sm:$0xff] }
 0x397   : > { %2715 = vmax.xlane.f32.xlu0 %v9704_v15  ;;  %v1814_v15 = vsub.f32 %v9707_v37, %v7220_v22  ;;  %v7567_v3 = vpop.eup %5219 }
 0x398   : > { %4602 = vmatmul.mubr.msk.f32.gmra.mrb[252].mxu0 %vm299_vm0, %v3363_v11  ;;  %v7555_v54 = vpop.f32.mrb[210].mxu0  ;;  %v9708_v11 = vld [vmem:[#allocation81_spill] sm:$0xff]  ;;  %9709 = vst [vmem:[#allocation22_spill] sm:$0xff] %v7567_v3  ;;  %v7571_v12 = vpop.eup %5221 }
 0x399   : > { %9705 = vst [vmem:[#allocation47_spill] sm:$0xff] %v7555_v54  ;;  %3711 = vmatprep.mubr.f32.mxu0 %v9603_v53  ;;  %v7558_v34 = vpop.f32.mrb[211].mxu0  ;;  %v1815_v0 = vsub.f32 %v9708_v11, %v7220_v22  ;;  %9711 = vst [vmem:[#allocation107_spill] sm:$0xff] %v7571_v12  ;;  %v1922_v37 = vmul.f32 1.442695, %v1814_v15  ;;  %v2016_v22 = vadd.f32 %v7571_v12, %v7567_v3 }
 0x39a   : > { %9706 = vst [vmem:[#allocation62_spill] sm:$0xff] %v7558_v34  ;;  %v3364_v45 = vpop.trf.xlu1 }
 0x39b   : > { %2011 = vadd.xlane.f32.xlu0 %v2010_v13  ;;  %v9713_v13 = vld [vmem:[#allocation71_spill] sm:$0xff]  ;;  %v1924_v32 = vmul.f32 1.442695, %v1815_v0  ;;  %5227 = vpow2.f32 %v1922_v37  ;;  %v9731_v37 = vld [vmem:[#allocation28_spill] sm:$0xff] }
 0x39c   : > { %4603 = vmatmul.mubr.msk.f32.gmra.mrb[254].mxu0 %vm299_vm0, %v3364_v45  ;;  %v7569_v53 = vpop.f32.mrb[212].mxu0  ;;  %v9715_v10 = vmax.f32 %v9713_v13, %v9714_v36 }
 0x39d   : > { %9710 = vst [vmem:[#allocation49_spill] sm:$0xff] %v7569_v53  ;;  %v7573_v56 = vpop.f32.mrb[213].mxu0  ;;  %5229 = vpow2.f32 %v1924_v32 }
 0x39e   : > { %9712 = vst [vmem:[#allocation108_spill] sm:$0xff] %v7573_v56  ;;  %v9723_v56 = vld [vmem:[#allocation26_spill] sm:$0xff] }
 0x39f   : > { %2721 = vmax.xlane.f32.xlu0 %v9715_v10  ;;  %v7588_v34 = vpop.eup %5223  ;;  %v9724_v53 = vmax.f32 %v9722_v7, %v9723_v56  ;;  %v9737_v56 = vld [vmem:[#allocation23_spill] sm:$0xff] }
 0x3a0   : > { %v7582_v45 = vpop.f32.mrb[214].mxu0  ;;  %9718 = vst [vmem:[#allocation66_spill] sm:$0xff] %v7588_v34  ;;  %v7592_v54 = vpop.eup %5225 }
 0x3a1   : > { %9716 = vst [vmem:[#allocation43_spill] sm:$0xff] %v7582_v45  ;;  %v7584_v11 = vpop.f32.mrb[215].mxu0  ;;  %9720 = vst [vmem:[#allocation110_spill] sm:$0xff] %v7592_v54 }
 0x3a2   : > { %9717 = vst [vmem:[#allocation55_spill] sm:$0xff] %v7584_v11 }
 0x3a3   : > { %2017 = vadd.xlane.f32.xlu0 %v2016_v22  ;;  %v2022_v22 = vadd.f32 %v7592_v54, %v7588_v34 }
 0x3a4   : > { %v7590_v10 = vpop.f32.mrb[216].mxu0 }
 0x3a5   : > { %9719 = vst [vmem:[#allocation109_spill] sm:$0xff] %v7590_v10  ;;  %v7594_v0 = vpop.f32.mrb[217].mxu0  ;;  %v7609_v45 = vpop.eup %5227 }
 0x3a6   : > { %9721 = vst [vmem:[#allocation67_spill] sm:$0xff] %v7594_v0  ;;  %9727 = vst [vmem:[#allocation73_spill] sm:$0xff] %v7609_v45  ;;  %v9732_v0 = vld [vmem:[#allocation115_spill] sm:$0xff] }
 0x3a7   : > { %2727 = vmax.xlane.f32.xlu0 %v9724_v53  ;;  %v7613_v12 = vpop.eup %5229  ;;  %v9733_v10 = vmax.f32 %v9731_v37, %v9732_v0 }
 0x3a8   : > { %v7603_v15 = vpop.f32.mrb[218].mxu0  ;;  %9729 = vst [vmem:[#allocation112_spill] sm:$0xff] %v7613_v12 }
 0x3a9   : > { %9725 = vst [vmem:[#allocation45_spill] sm:$0xff] %v7603_v15  ;;  %v7605_v32 = vpop.f32.mrb[219].mxu0  ;;  %v9736_v15 = vld [vmem:[#allocation21_spill] sm:$0xff] }
 0x3aa   : > { %9726 = vst [vmem:[#allocation72_spill] sm:$0xff] %v7605_v32  ;;  %v9738_v7 = vmax.f32 %v9736_v15, %v9737_v56 }
 0x3ab   : > { %2023 = vadd.xlane.f32.xlu0 %v2022_v22  ;;  %v2028_v22 = vadd.f32 %v7613_v12, %v7609_v45 }
 0x3ac   : > { %v7611_v3 = vpop.f32.mrb[220].mxu0 }
 0x3ad   : > { %9728 = vst [vmem:[#allocation111_spill] sm:$0xff] %v7611_v3  ;;  %v7615_v53 = vpop.f32.mrb[221].mxu0 }
 0x3ae   : > { %9730 = vst [vmem:[#allocation76_spill] sm:$0xff] %v7615_v53 }
 0x3af   : > { %2733 = vmax.xlane.f32.xlu0 %v9733_v10 }
 0x3b0   : > { %v7624_v54 = vpop.f32.mrb[222].mxu0 }
 0x3b1   : > { %9734 = vst [vmem:[#allocation77_spill] sm:$0xff] %v7624_v54  ;;  %v7626_v11 = vpop.f32.mrb[223].mxu0 }
 0x3b2   : > { %9735 = vst [vmem:[#allocation65_spill] sm:$0xff] %v7626_v11 }
 0x3b3   : > { %2029 = vadd.xlane.f32.xlu0 %v2028_v22 }
 0x3b7   : > { %2739 = vmax.xlane.f32.xlu0 %v9738_v7  ;;  %v1033_v0 = vpop.xlane.xlu0 %1032 }
 0x3b8   : > { %5231 = vrcp.f32 %v1033_v0 }
 0x3bb   : > { %v1036_v10 = vpop.xlane.xlu0 %1035 }
 0x3bc   : > { %5233 = vrcp.f32 %v1036_v10 }
 0x3bf   : > { %v1748_v34 = vpop.xlane.xlu0 %1747 }
 0x3c0   : > { %v1818_v53 = vsub.f32 %v9507_v27, %v1748_v34  ;;  %v1819_v3 = vsub.f32 %v9508_v43, %v1748_v34 }
 0x3c2   : > { %v1930_v45 = vmul.f32 1.442695, %v1818_v53  ;;  %v1932_v12 = vmul.f32 1.442695, %v1819_v3  ;;  %v5232_v22 = vpop.eup %5231 }
 0x3c3   : > { %v1967_v37 = vpop.xlane.xlu0 %1966  ;;  %v1130_v54 = vmul.f32 %v5232_v22, %v7022_v35  ;;  %v1129_v0 = vmul.f32 %v5232_v22, %v7020_v9 }
 0x3c4   : > { %5235 = vpow2.f32 %v1930_v45 }
 0x3c5   : > { %5237 = vpow2.f32 %v1932_v12 }
 0x3c6   : > { %v5234_v32 = vpop.eup %5233  ;;  %5239 = vrcp.f32 %v1967_v37 }
 0x3c7   : > { %v1751_v11 = vpop.xlane.xlu0 %1750  ;;  %v1132_v7 = vmul.f32 %v5234_v32, %v7024_v42  ;;  %v1131_v10 = vmul.f32 %v5234_v32, %v7012_v4  ;;  %v227_v42 = vld [vmem:[%s7316_s23] sm:$0xff] }
 0x3c8   : > { %v1820_v27 = vsub.f32 %v6456_v60, %v1751_v11  ;;  %v1821_v43 = vsub.f32 %v6462_v50, %v1751_v11 }
 0x3c9   : > { %v4686_v34 = vpack.c.bf16 %v1132_v7, %v1130_v54  ;;  %v4688_v3 = vpack.c.bf16 %v1131_v10, %v1129_v0  ;;  %v9739_v10 = vmax.f32 %v7067_v16, %v7072_v39 }
 0x3ca   : > { %v1934_v53 = vmul.f32 1.442695, %v1820_v27  ;;  %v1936_v45 = vmul.f32 1.442695, %v1821_v43 }
 0x3cb   : > { %4687 = vmatprep.subr.bf16.mxu1 %v4686_v34  ;;  %v1970_v12 = vpop.xlane.xlu0 %1969 }
 0x3cc   : > { %5241 = vpow2.f32 %v1934_v53  ;;  %4689 = vmatpush1.bf16.xpose.msra.mxu1 %v4688_v3 }
 0x3cd   : > { %5243 = vpow2.f32 %v1936_v45 }
 0x3ce   : > { %v7641_v35 = vpop.eup %5235  ;;  %5245 = vrcp.f32 %v1970_v12  ;;  %v1964_v9 = vpop.xlane.xlu1 %1963 }
 0x3cf   : > { %v7643_v4 = vpop.eup %5237  ;;  %5247 = vrcp.f32 %v1964_v9  ;;  %v1973_v60 = vpop.xlane.xlu0 %1972 }
 0x3d0   : > { %5249 = vrcp.f32 %v1973_v60  ;;  %v2034_v50 = vadd.f32 %v7643_v4, %v7641_v35  ;;  %v5240_v32 = vpop.eup %5239 }
 0x3d1   : > { %v2093_v45 = vmul.f32 %v5240_v32, %v7044_v59 }
 0x3d2   : > { %2035 = vadd.xlane.f32.xlu0 %v2034_v50 }
 0x3d3   : > { %v1754_v54 = vpop.xlane.xlu0 %1753  ;;  %1198 = vmatmul.mubr.f32.vlgmr.msra.gmra.mrb[0].mxu1 %v227_v42 }
 0x3d4   : > { %v1822_v11 = vsub.f32 %v9539_v40, %v1754_v54  ;;  %v1823_v37 = vsub.f32 %v9540_v58, %v1754_v54 }
 0x3d6   : > { %v7650_v22 = vpop.eup %5241  ;;  %v1938_v7 = vmul.f32 1.442695, %v1822_v11  ;;  %v1940_v0 = vmul.f32 1.442695, %v1823_v37  ;;  %2745 = vmax.xlane.f32.xlu0 %v9739_v10 }
 0x3d7   : > { %v7655_v27 = vpop.eup %5243  ;;  %v1757_v43 = vpop.xlane.xlu0 %1756 }
 0x3d8   : > { %v5246_v34 = vpop.eup %5245  ;;  %v1824_v3 = vsub.f32 %v9548_v8, %v1757_v43  ;;  %v1825_v53 = vsub.f32 %v9549_v41, %v1757_v43  ;;  %v2037_v40 = vadd.f32 %v7655_v27, %v7650_v22  ;;  %5251 = vpow2.f32 %v1938_v7 }
 0x3d9   : > { %v5248_v58 = vpop.eup %5247  ;;  %5253 = vpow2.f32 %v1940_v0  ;;  %v2092_v8 = vmul.f32 %v5240_v32, %v7042_v19  ;;  %v2095_v11 = vmul.f32 %v5246_v34, %v7081_v24  ;;  %v9740_v7 = vmax.f32 %v7087_v21, %v7092_v38  ;;  %v9741_v32 = vld [vmem:[#allocation61_spill] sm:$0xff] }
 0x3da   : > { %v5250_v12 = vpop.eup %5249  ;;  %v1942_v9 = vmul.f32 1.442695, %v1824_v3  ;;  %v1944_v60 = vmul.f32 1.442695, %v1825_v53  ;;  %2038 = vadd.xlane.f32.xlu1 %v2037_v40  ;;  %v2091_v50 = vmul.f32 %v5248_v58, %v7109_v55  ;;  %v2090_v54 = vmul.f32 %v5248_v58, %v7104_v47 }
 0x3db   : > { %v1976_v42 = vpop.xlane.xlu0 %1975  ;;  %v2097_v37 = vmul.f32 %v5250_v12, %v7118_v61  ;;  %v2096_v19 = vmul.f32 %v5250_v12, %v7094_v46  ;;  %v2094_v61 = vmul.f32 %v5246_v34, %v9741_v32 }
 0x3dc   : > { %5255 = vpow2.f32 %v1942_v9  ;;  %v4698_v41 = vpack.c.bf16 %v2093_v45, %v2091_v50  ;;  %v4700_v59 = vpack.c.bf16 %v2092_v8, %v2090_v54  ;;  %v9742_v54 = vld [vmem:[#allocation64_spill] sm:$0xff]  ;;  %v9743_v8 = vld [vmem:[#allocation59_spill] sm:$0xff] }
 0x3dd   : > { %5257 = vpow2.f32 %v1944_v60  ;;  %v4702_v0 = vpack.c.bf16 %v2097_v37, %v2095_v11  ;;  %v4704_v40 = vpack.c.bf16 %v2096_v19, %v2094_v61  ;;  %v9750_v61 = vld [vmem:[#allocation35_spill] sm:$0xff] }
 0x3de   : > { %2748 = vmax.xlane.f32.xlu1 %v9740_v7  ;;  %4699 = vmatprep.subr.bf16.mxu1 %v4698_v41  ;;  %5259 = vrcp.f32 %v1976_v42  ;;  %v9744_v41 = vmax.f32 %v9742_v54, %v9743_v8 }
 0x3df   : > { %4701 = vmatpush1.bf16.xpose.msra.mxu1 %v4700_v59  ;;  %v1979_v55 = vpop.xlane.xlu0 %1978  ;;  %v7691_v59 = vpop.xlane.xlu1 %2706 }
 0x3e0   : > { %4703 = vmatprep.subr.bf16.mxu1 %v4702_v0  ;;  %5261 = vrcp.f32 %v1979_v55  ;;  %v9746_v0 = vld [vmem:[#allocation63_spill] sm:$0xff]  ;;  %v9747_v55 = vld [vmem:[#allocation70_spill] sm:$0xff] }
 0x3e1   : > { %v9748_v19 = vmax.f32 %v9746_v0, %v9747_v55 }
 0x3e2   : > { %v7671_v47 = vpop.eup %5251 }
 0x3e3   : > { %v1760_v24 = vpop.xlane.xlu0 %1759  ;;  %v7674_v10 = vpop.eup %5253 }
 0x3e4   : > { %v1826_v43 = vsub.f32 %v9576_v48, %v1760_v24  ;;  %v1827_v3 = vsub.f32 %v9577_v2, %v1760_v24  ;;  %v2040_v53 = vadd.f32 %v7674_v10, %v7671_v47  ;;  %v9749_v24 = vld [vmem:[#allocation34_spill] sm:$0xff] }
 0x3e6   : > { %v7680_v58 = vpop.eup %5255  ;;  %v1946_v45 = vmul.f32 1.442695, %v1826_v43  ;;  %v1948_v46 = vmul.f32 1.442695, %v1827_v3  ;;  %2041 = vadd.xlane.f32.xlu0 %v2040_v53 }
 0x3e7   : > { %v7682_v12 = vpop.eup %5257  ;;  %4705 = vmatpush1.bf16.xpose.msra.mxu1 %v4704_v40 }
 0x3e8   : > { %v1763_v9 = vpop.xlane.xlu0 %1762  ;;  %v2043_v48 = vadd.f32 %v7682_v12, %v7680_v58  ;;  %5263 = vpow2.f32 %v1946_v45  ;;  %v5260_v2 = vpop.eup %5259 }
 0x3e9   : > { %v1828_v34 = vsub.f32 %v9587_v14, %v1763_v9  ;;  %v1829_v60 = vsub.f32 %v9588_v29, %v1763_v9  ;;  %5265 = vpow2.f32 %v1948_v46  ;;  %v9745_v29 = vld [vmem:[#allocation84_spill] sm:$0xff]  ;;  %v2098_v32 = vmul.f32 %v5260_v2, %v9749_v24  ;;  %v7700_v45 = vpop.xlane.xlu1 %2002 }
 0x3ea   : > { %2044 = vadd.xlane.f32.xlu1 %v2043_v48  ;;  %2751 = vmax.xlane.f32.xlu0 %v9744_v41  ;;  %v5262_v37 = vpop.eup %5261  ;;  %v2099_v14 = vmul.f32 %v5260_v2, %v9745_v29  ;;  %v9753_v24 = vld [vmem:[#allocation32_spill] sm:$0xff] }
 0x3eb   : > { %v1950_v50 = vmul.f32 1.442695, %v1828_v34  ;;  %v1952_v42 = vmul.f32 1.442695, %v1829_v60  ;;  %v2101_v7 = vmul.f32 %v5262_v37, %v7208_v17  ;;  %v2100_v43 = vmul.f32 %v5262_v37, %v9750_v61 }
 0x3ec   : > { %v1982_v11 = vpop.xlane.xlu0 %1981 }
 0x3ed   : > { %5267 = vpow2.f32 %v1950_v50  ;;  %v4706_v3 = vpack.c.bf16 %v2101_v7, %v2099_v14  ;;  %v4708_v40 = vpack.c.bf16 %v2100_v43, %v2098_v32  ;;  %v7714_v37 = vpop.xlane.xlu1 %2712  ;;  %v9754_v32 = vld [vmem:[#allocation33_spill] sm:$0xff] }
 0x3ee   : > { %5269 = vpow2.f32 %v1952_v42  ;;  %2754 = vmax.xlane.f32.xlu1 %v9748_v19  ;;  %v9755_v61 = vmax.f32 %v9753_v24, %v9754_v32 }
 0x3ef   : > { %5271 = vrcp.f32 %v1982_v11  ;;  %4707 = vmatprep.subr.bf16.mxu1 %v4706_v3 }
 0x3f0   : > { %v1985_v53 = vpop.xlane.xlu0 %1984  ;;  %4709 = vmatpush1.bf16.xpose.msra.mxu1 %v4708_v40 }
 0x3f1   : > { %5273 = vrcp.f32 %v1985_v53 }
 0x3f2   : > { %v7702_v46 = vpop.eup %5263 }
 0x3f3   : > { %9751 = vst [vmem:[#allocation6_spill] sm:$0xff] %v7702_v46  ;;  %v7704_v9 = vpop.eup %5265 }
 0x3f4   : > { %v1766_v17 = vpop.xlane.xlu0 %1765  ;;  %v2046_v48 = vadd.f32 %v7704_v9, %v7702_v46 }
 0x3f5   : > { %v1830_v34 = vsub.f32 %v9619_v18, %v1766_v17  ;;  %v1831_v60 = vsub.f32 %v9620_v62, %v1766_v17  ;;  %v7725_v17 = vpop.xlane.xlu1 %2008 }
 0x3f6   : > { %2047 = vadd.xlane.f32.xlu0 %v2046_v48 }
 0x3f7   : > { %v7710_v2 = vpop.eup %5267  ;;  %v1954_v50 = vmul.f32 1.442695, %v1830_v34  ;;  %v1956_v42 = vmul.f32 1.442695, %v1831_v60  ;;  %v9758_v34 = vld [vmem:[#allocation85_spill] sm:$0xff]  ;;  %v9759_v60 = vld [vmem:[#allocation86_spill] sm:$0xff] }
 0x3f8   : > { %9752 = vst [vmem:[#allocation78_spill] sm:$0xff] %v7710_v2  ;;  %v7712_v41 = vpop.eup %5269  ;;  %v1769_v11 = vpop.xlane.xlu0 %1768  ;;  %v9760_v48 = vmax.f32 %v9758_v34, %v9759_v60 }
 0x3f9   : > { %v1832_v29 = vsub.f32 %v9629_v5, %v1769_v11  ;;  %v1833_v14 = vsub.f32 %v9630_v30, %v1769_v11  ;;  %v2049_v62 = vadd.f32 %v7712_v41, %v7710_v2  ;;  %5275 = vpow2.f32 %v1954_v50  ;;  %v5272_v18 = vpop.eup %5271  ;;  %v9756_v5 = vld [vmem:[#allocation100_spill] sm:$0xff]  ;;  %v9757_v30 = vld [vmem:[#allocation91_spill] sm:$0xff]  ;;  %v9762_v11 = vld [vmem:[#allocation89_spill] sm:$0xff] }
 0x3fa   : > { %5277 = vpow2.f32 %v1956_v42  ;;  %2757 = vmax.xlane.f32.xlu0 %v9755_v61  ;;  %v2103_v53 = vmul.f32 %v5272_v18, %v9756_v5  ;;  %v9761_v50 = vld [vmem:[#allocation39_spill] sm:$0xff] }
 0x3fb   : > { %v1958_v7 = vmul.f32 1.442695, %v1832_v29  ;;  %v1960_v19 = vmul.f32 1.442695, %v1833_v14  ;;  %2050 = vadd.xlane.f32.xlu1 %v2049_v62  ;;  %v5274_v3 = vpop.eup %5273  ;;  %v2102_v42 = vmul.f32 %v5272_v18, %v9761_v50 }
 0x3fc   : > { %v1988_v43 = vpop.xlane.xlu0 %1987  ;;  %v2105_v40 = vmul.f32 %v5274_v3, %v9757_v30  ;;  %v2104_v29 = vmul.f32 %v5274_v3, %v9762_v11  ;;  %v7736_v30 = vpop.xlane.xlu1 %2718 }
 0x3fd   : > { %5279 = vpow2.f32 %v1958_v7 }
 0x3fe   : > { %5281 = vpow2.f32 %v1960_v19  ;;  %v4710_v14 = vpack.c.bf16 %v2105_v40, %v2103_v53  ;;  %v4712_v61 = vpack.c.bf16 %v2104_v29, %v2102_v42 }
 0x3ff   : > { %2760 = vmax.xlane.f32.xlu1 %v9760_v48  ;;  %5283 = vrcp.f32 %v1988_v43 }
 0x400   : > { %v1991_v62 = vpop.xlane.xlu0 %1990  ;;  %4711 = vmatprep.subr.bf16.mxu1 %v4710_v14 }
 0x401   : > { %5285 = vrcp.f32 %v1991_v62  ;;  %4713 = vmatpush1.bf16.xpose.msra.mxu1 %v4712_v61  ;;  %v7752_v61 = vpop.xlane.xlu1 %2014 }
 0x403   : > { %v7732_v7 = vpop.eup %5275 }
 0x404   : > { %9763 = vst [vmem:[#allocation79_spill] sm:$0xff] %v7732_v7  ;;  %v2698_v19 = vpop.xlane.xlu0 %2697  ;;  %v7734_v5 = vpop.eup %5277 }
 0x405   : > { %9764 = vst [vmem:[#allocation69_spill] sm:$0xff] %v7734_v5  ;;  %v2792_v48 = vsub.f32 %v9657_v31, %v2698_v19  ;;  %v2793_v18 = vsub.f32 %v9658_v25, %v2698_v19  ;;  %v2052_v43 = vadd.f32 %v7734_v5, %v7732_v7  ;;  %v9767_v25 = vld [vmem:[#allocation113_spill] sm:$0xff]  ;;  %v9770_v7 = vld [vmem:[#allocation87_spill] sm:$0xff]  ;;  %v9773_v5 = vld [vmem:[#allocation46_spill] sm:$0xff]  ;;  %v7770_v46 = vpop.xlane.xlu1 %2724 }
 0x406   : > { %v2798_v62 = vsub.f32 %v9767_v25, %v7691_v59 }
 0x407   : > { %v7742_v3 = vpop.eup %5279  ;;  %v2856_v53 = vmul.f32 1.442695, %v2792_v48  ;;  %v2858_v40 = vmul.f32 1.442695, %v2793_v18  ;;  %2053 = vadd.xlane.f32.xlu0 %v2052_v43  ;;  %v9768_v18 = vld [vmem:[#allocation114_spill] sm:$0xff] }
 0x408   : > { %9765 = vst [vmem:[#allocation80_spill] sm:$0xff] %v7742_v3  ;;  %v7744_v50 = vpop.eup %5281  ;;  %v2701_v42 = vpop.xlane.xlu0 %2700  ;;  %v2799_v43 = vsub.f32 %v9768_v18, %v7691_v59  ;;  %v9775_v18 = vld [vmem:[#allocation93_spill] sm:$0xff] }
 0x409   : > { %9766 = vst [vmem:[#allocation81_spill] sm:$0xff] %v7744_v50  ;;  %v2794_v11 = vsub.f32 %v9665_v44, %v2701_v42  ;;  %v2795_v29 = vsub.f32 %v9666_v20, %v2701_v42  ;;  %v2055_v31 = vadd.f32 %v7744_v50, %v7742_v3  ;;  %v5284_v14 = vpop.eup %5283  ;;  %5287 = vpow2.f32 %v2856_v53  ;;  %v9769_v44 = vld [vmem:[#allocation38_spill] sm:$0xff] }
 0x40a   : > { %5289 = vpow2.f32 %v2858_v40  ;;  %v9771_v20 = vmax.f32 %v9769_v44, %v9770_v7  ;;  %v9772_v53 = vld [vmem:[#allocation94_spill] sm:$0xff]  ;;  %v2106_v40 = vmul.f32 %v5284_v14, %v9773_v5  ;;  %v2870_v44 = vmul.f32 1.442695, %v2799_v43 }
 0x40b   : > { %v2860_v19 = vmul.f32 1.442695, %v2794_v11  ;;  %v2862_v48 = vmul.f32 1.442695, %v2795_v29  ;;  %2056 = vadd.xlane.f32.xlu1 %v2055_v31  ;;  %v5286_v3 = vpop.eup %5285  ;;  %v2107_v50 = vmul.f32 %v5284_v14, %v9772_v53  ;;  %v2868_v29 = vmul.f32 1.442695, %v2798_v62 }
 0x40c   : > { %2763 = vmax.xlane.f32.xlu0 %v9771_v20  ;;  %v1994_v42 = vpop.xlane.xlu0 %1993  ;;  %v2109_v25 = vmul.f32 %v5286_v3, %v7387_v52  ;;  %v2108_v11 = vmul.f32 %v5286_v3, %v7363_v26  ;;  %v9774_v31 = vld [vmem:[#allocation7_spill] sm:$0xff]  ;;  %v9776_v7 = vld [vmem:[#allocation74_spill] sm:$0xff] }
 0x40d   : > { %5291 = vpow2.f32 %v2860_v19  ;;  %v2802_v59 = vsub.f32 %v9774_v31, %v7714_v37  ;;  %v9777_v20 = vmax.f32 %v9775_v18, %v9776_v7  ;;  %v9778_v19 = vld [vmem:[#allocation8_spill] sm:$0xff] }
 0x40e   : > { %5293 = vpow2.f32 %v2862_v48  ;;  %v2803_v53 = vsub.f32 %v9778_v19, %v7714_v37  ;;  %v4714_v48 = vpack.c.bf16 %v2109_v25, %v2107_v50  ;;  %v4716_v52 = vpack.c.bf16 %v2108_v11, %v2106_v40 }
 0x40f   : > { %5295 = vrcp.f32 %v1994_v42  ;;  %2766 = vmax.xlane.f32.xlu1 %v9777_v20  ;;  %v2876_v26 = vmul.f32 1.442695, %v2802_v59  ;;  %v9781_v42 = vld [vmem:[#allocation29_spill] sm:$0xff]  ;;  %v9783_v59 = vld [vmem:[#allocation30_spill] sm:$0xff] }
 0x410   : > { %v1997_v2 = vpop.xlane.xlu0 %1996  ;;  %4715 = vmatprep.subr.bf16.mxu1 %v4714_v48  ;;  %v2878_v3 = vmul.f32 1.442695, %v2803_v53  ;;  %v2806_v25 = vsub.f32 %v9781_v42, %v7736_v30  ;;  %v2807_v20 = vsub.f32 %v9783_v59, %v7736_v30  ;;  %v9784_v53 = vld [vmem:[#allocation104_spill] sm:$0xff]  ;;  %v9792_v59 = vld [vmem:[#allocation11_spill] sm:$0xff] }
 0x411   : > { %5297 = vrcp.f32 %v1997_v2  ;;  %4717 = vmatpush1.bf16.xpose.msra.mxu1 %v4716_v52  ;;  %v9785_v48 = vld [vmem:[#allocation92_spill] sm:$0xff] }
 0x412   : > { %5299 = vpow2.f32 %v2868_v29  ;;  %v2884_v19 = vmul.f32 1.442695, %v2806_v25  ;;  %v9786_v52 = vmax.f32 %v9784_v53, %v9785_v48 }
 0x413   : > { %v7772_v5 = vpop.eup %5287  ;;  %5301 = vpow2.f32 %v2870_v44  ;;  %v7785_v44 = vpop.xlane.xlu1 %2020 }
 0x414   : > { %9779 = vst [vmem:[#allocation71_spill] sm:$0xff] %v7772_v5  ;;  %v2704_v14 = vpop.xlane.xlu0 %2703  ;;  %v7774_v62 = vpop.eup %5289  ;;  %5303 = vrcp.f32 %v7700_v45 }
 0x415   : > { %v2796_v43 = vsub.f32 %v9680_v51, %v2704_v14  ;;  %v2797_v37 = vsub.f32 %v9681_v33, %v2704_v14  ;;  %v2984_v2 = vadd.f32 %v7774_v62, %v7772_v5  ;;  %5305 = vpow2.f32 %v2876_v26  ;;  %v9803_v5 = vld [vmem:[#allocation99_spill] sm:$0xff] }
 0x416   : > { %5307 = vpow2.f32 %v2878_v3 }
 0x417   : > { %v7781_v50 = vpop.eup %5291  ;;  %v2864_v40 = vmul.f32 1.442695, %v2796_v43  ;;  %v2866_v11 = vmul.f32 1.442695, %v2797_v37  ;;  %2985 = vadd.xlane.f32.xlu0 %v2984_v2  ;;  %v7802_v42 = vpop.xlane.xlu1 %2730 }
 0x418   : > { %9780 = vst [vmem:[#allocation10_spill] sm:$0xff] %v7781_v50  ;;  %v7787_v29 = vpop.eup %5293  ;;  %v2000_v33 = vpop.xlane.xlu0 %1999 }
 0x419   : > { %9782 = vst [vmem:[#allocation21_spill] sm:$0xff] %v7787_v29  ;;  %v5296_v51 = vpop.eup %5295  ;;  %5309 = vpow2.f32 %v2864_v40  ;;  %v2987_v45 = vadd.f32 %v7787_v29, %v7781_v50 }
 0x41a   : > { %5311 = vpow2.f32 %v2866_v11  ;;  %v2111_v3 = vmul.f32 %v5296_v51, %v7436_v28  ;;  %v2110_v43 = vmul.f32 %v5296_v51, %v7431_v49  ;;  %v9790_v49 = vld [vmem:[#allocation88_spill] sm:$0xff] }
 0x41b   : > { %v5298_v31 = vpop.eup %5297  ;;  %5313 = vrcp.f32 %v2000_v33  ;;  %2988 = vadd.xlane.f32.xlu1 %v2987_v45  ;;  %2769 = vmax.xlane.f32.xlu0 %v9786_v52  ;;  %v9789_v45 = vld [vmem:[#allocation40_spill] sm:$0xff] }
 0x41c   : > { %v2710_v26 = vpop.xlane.xlu0 %2709  ;;  %v2113_v14 = vmul.f32 %v5298_v31, %v7459_v6  ;;  %v2112_v37 = vmul.f32 %v5298_v31, %v7452_v57  ;;  %v7800_v2 = vpop.eup %5299  ;;  %5315 = vrcp.f32 %v7725_v17  ;;  %v9791_v51 = vmax.f32 %v9789_v45, %v9790_v49 }
 0x41d   : > { %9787 = vst [vmem:[#allocation23_spill] sm:$0xff] %v7800_v2  ;;  %v2800_v30 = vsub.f32 %v9691_v1, %v2710_v26  ;;  %v2801_v25 = vsub.f32 %v9692_v23, %v2710_v26  ;;  %v7806_v40 = vpop.eup %5301  ;;  %5317 = vpow2.f32 %v2884_v19  ;;  %v2886_v31 = vmul.f32 1.442695, %v2807_v20  ;;  %v9796_v19 = vld [vmem:[#allocation12_spill] sm:$0xff] }
 0x41e   : > { %9788 = vst [vmem:[#allocation61_spill] sm:$0xff] %v7806_v40  ;;  %v4718_v11 = vpack.c.bf16 %v2113_v14, %v2111_v3  ;;  %v4720_v33 = vpack.c.bf16 %v2112_v37, %v2110_v43  ;;  %v5304_v57 = vpop.eup %5303  ;;  %v2810_v1 = vsub.f32 %v9792_v59, %v7770_v46  ;;  %v2993_v17 = vadd.f32 %v7806_v40, %v7800_v2  ;;  %v7824_v14 = vpop.xlane.xlu1 %2026  ;;  %v9801_v2 = vld [vmem:[#allocation52_spill] sm:$0xff] }
 0x41f   : > { %v2872_v28 = vmul.f32 1.442695, %v2800_v30  ;;  %v2874_v6 = vmul.f32 1.442695, %v2801_v25  ;;  %2772 = vmax.xlane.f32.xlu1 %v9791_v51  ;;  %v7814_v52 = vpop.eup %5305  ;;  %v2811_v20 = vsub.f32 %v9796_v19, %v7770_v46  ;;  %v9799_v51 = vld [vmem:[#allocation103_spill] sm:$0xff] }
 0x420   : > { %4719 = vmatprep.subr.bf16.mxu1 %v4718_v11  ;;  %v2006_v23 = vpop.xlane.xlu0 %2005  ;;  %9793 = vst [vmem:[#allocation64_spill] sm:$0xff] %v7814_v52  ;;  %v7818_v26 = vpop.eup %5307  ;;  %v2892_v37 = vmul.f32 1.442695, %v2810_v1  ;;  %v9800_v46 = vld [vmem:[#allocation31_spill] sm:$0xff] }
 0x421   : > { %5319 = vpow2.f32 %v2872_v28  ;;  %4721 = vmatpush1.bf16.xpose.msra.mxu1 %v4720_v33  ;;  %9794 = vst [vmem:[#allocation59_spill] sm:$0xff] %v7818_v26  ;;  %v9798_v33 = vld [vmem:[#allocation2_spill] sm:$0xff]  ;;  %v2117_v19 = vmul.f32 %v5304_v57, %v9800_v46 }
 0x422   : > { %5321 = vpow2.f32 %v2874_v6 }
 0x423   : > { %v7820_v3 = vpop.eup %5309  ;;  %5323 = vrcp.f32 %v2006_v23  ;;  %2994 = vadd.xlane.f32.xlu1 %v2993_v17  ;;  %v9802_v17 = vld [vmem:[#allocation68_spill] sm:$0xff] }
 0x424   : > { %9795 = vst [vmem:[#allocation84_spill] sm:$0xff] %v7820_v3  ;;  %v7826_v43 = vpop.eup %5311  ;;  %5325 = vpow2.f32 %v2886_v31  ;;  %v2716_v30 = vpop.xlane.xlu0 %2715  ;;  %v2116_v40 = vmul.f32 %v5304_v57, %v9802_v17  ;;  %v2894_v31 = vmul.f32 1.442695, %v2811_v20  ;;  %v9808_v20 = vld [vmem:[#allocation18_spill] sm:$0xff]  ;;  %v9814_v17 = vld [vmem:[#allocation37_spill] sm:$0xff] }
 0x425   : > { %9797 = vst [vmem:[#allocation63_spill] sm:$0xff] %v7826_v43  ;;  %v5314_v25 = vpop.eup %5313  ;;  %v2804_v11 = vsub.f32 %v9702_v63, %v2716_v30  ;;  %v2805_v28 = vsub.f32 %v9798_v33, %v2716_v30  ;;  %v2990_v6 = vadd.f32 %v7826_v43, %v7820_v3  ;;  %5327 = vrcp.f32 %v7752_v61  ;;  %v9804_v63 = vld [vmem:[#allocation9_spill] sm:$0xff] }
 0x426   : > { %v2115_v59 = vmul.f32 %v5314_v25, %v9799_v51  ;;  %v2114_v23 = vmul.f32 %v5314_v25, %v9801_v2  ;;  %v9805_v29 = vmax.f32 %v9803_v5, %v9804_v63  ;;  %5329 = vpow2.f32 %v2892_v37  ;;  %v9806_v30 = vld [vmem:[#allocation17_spill] sm:$0xff]  ;;  %v5316_v2 = vpop.eup %5315  ;;  %v7842_v25 = vpop.xlane.xlu1 %2736 }
 0x427   : > { %v2880_v1 = vmul.f32 1.442695, %v2804_v11  ;;  %v2882_v50 = vmul.f32 1.442695, %v2805_v28  ;;  %2991 = vadd.xlane.f32.xlu0 %v2990_v6  ;;  %v2814_v33 = vsub.f32 %v9806_v30, %v7802_v42  ;;  %v2999_v61 = vadd.f32 %v7818_v26, %v7814_v52  ;;  %v7846_v57 = vpop.eup %5317  ;;  %v9811_v28 = vld [vmem:[#allocation90_spill] sm:$0xff]  ;;  %v230_v52 = vld [vmem:[%s7316_s23 + $0x18] sm:$0xff] }
 0x428   : > { %2778 = vmax.xlane.f32.xlu1 %v9805_v29  ;;  %v4722_v51 = vpack.c.bf16 %v2117_v19, %v2115_v59  ;;  %v2012_v46 = vpop.xlane.xlu0 %2011  ;;  %v4724_v3 = vpack.c.bf16 %v2116_v40, %v2114_v23  ;;  %9807 = vst [vmem:[#allocation70_spill] sm:$0xff] %v7846_v57  ;;  %v2815_v29 = vsub.f32 %v9808_v20, %v7802_v42  ;;  %v9812_v6 = vld [vmem:[#allocation42_spill] sm:$0xff]  ;;  %v9818_v20 = vld [vmem:[#allocation36_spill] sm:$0xff]  ;;  %v9819_v26 = vld [vmem:[#allocation95_spill] sm:$0xff] }
 0x429   : > { %5331 = vpow2.f32 %v2880_v1  ;;  %v2900_v11 = vmul.f32 1.442695, %v2814_v33  ;;  %v9813_v59 = vmax.f32 %v9811_v28, %v9812_v6  ;;  %v2121_v1 = vmul.f32 %v5316_v2, %v9814_v17  ;;  %v9816_v33 = vld [vmem:[#allocation106_spill] sm:$0xff]  ;;  %1203 = vmatprep.mubr.f32.mxu1 %v230_v52  ;;  %v9822_v17 = vld [vmem:[#allocation117_spill] sm:$0xff]  ;;  %v9824_v52 = vld [vmem:[#allocation119_spill] sm:$0xff] }
 0x42a   : > { %5333 = vpow2.f32 %v2882_v50  ;;  %4723 = vmatprep.subr.bf16.mxu1 %v4722_v51 }
 0x42b   : > { %v7850_v37 = vpop.eup %5319  ;;  %5335 = vrcp.f32 %v2012_v46  ;;  %4725 = vmatpush1.bf16.xpose.msra.mxu1 %v4724_v3  ;;  %2775 = vmax.xlane.f32.xlu0 %v9813_v59  ;;  %v9817_v46 = vld [vmem:[#allocation56_spill] sm:$0xff]  ;;  %v2120_v59 = vmul.f32 %v5316_v2, %v9818_v20 }
 0x42c   : > { %9809 = vst [vmem:[#allocation34_spill] sm:$0xff] %v7850_v37  ;;  %3000 = vadd.xlane.f32.xlu1 %v2999_v61  ;;  %v7852_v40 = vpop.eup %5321  ;;  %5337 = vpow2.f32 %v2894_v31  ;;  %v2722_v19 = vpop.xlane.xlu0 %2721  ;;  %v2902_v31 = vmul.f32 1.442695, %v2815_v29  ;;  %v229_v29 = vld [vmem:[%s7316_s23 + $0x10] sm:$0xff] }
 0x42d   : > { %9810 = vst [vmem:[#allocation35_spill] sm:$0xff] %v7852_v40  ;;  %v5324_v23 = vpop.eup %5323  ;;  %v2808_v42 = vsub.f32 %v9713_v13, %v2722_v19  ;;  %v2809_v50 = vsub.f32 %v9714_v36, %v2722_v19  ;;  %v2996_v3 = vadd.f32 %v7852_v40, %v7850_v37  ;;  %5339 = vrcp.f32 %v7785_v44  ;;  %v7869_v13 = vpop.xlane.xlu1 %2032  ;;  %v9820_v37 = vld [vmem:[#allocation48_spill] sm:$0xff]  ;;  %1204 = vmatmul.mubr.f32.gmra.mrb[2].mxu1 %v229_v29  ;;  %v9828_v29 = vld [vmem:[#allocation5_spill] sm:$0xff] }
 0x42e   : > { %v7862_v30 = vpop.eup %5325  ;;  %v2119_v51 = vmul.f32 %v5324_v23, %v9816_v33  ;;  %v2118_v61 = vmul.f32 %v5324_v23, %v9817_v46  ;;  %v9821_v40 = vmax.f32 %v9819_v26, %v9820_v37  ;;  %5341 = vpow2.f32 %v2900_v11  ;;  %v232_v46 = vld [vmem:[%s7316_s23 + $0x28] sm:$0xff]  ;;  %v9836_v26 = vld [vmem:[#allocation96_spill] sm:$0xff] }
 0x42f   : > { %9815 = vst [vmem:[#allocation32_spill] sm:$0xff] %v7862_v30  ;;  %v2888_v36 = vmul.f32 1.442695, %v2808_v42  ;;  %v2890_v19 = vmul.f32 1.442695, %v2809_v50  ;;  %v2818_v23 = vsub.f32 %v9822_v17, %v7842_v25  ;;  %2997 = vadd.xlane.f32.xlu0 %v2996_v3  ;;  %v5328_v42 = vpop.eup %5327  ;;  %v3005_v50 = vadd.f32 %v7862_v30, %v7846_v57  ;;  %1209 = vmatprep.mubr.f32.mxu1 %v232_v46  ;;  %v9832_v30 = vld [vmem:[#allocation26_spill] sm:$0xff] }
 0x430   : > { %2784 = vmax.xlane.f32.xlu1 %v9821_v40  ;;  %v4726_v2 = vpack.c.bf16 %v2121_v1, %v2119_v51  ;;  %v2018_v33 = vpop.xlane.xlu0 %2017  ;;  %v4728_v44 = vpack.c.bf16 %v2120_v59, %v2118_v61  ;;  %v7879_v40 = vpop.eup %5329  ;;  %v2819_v11 = vsub.f32 %v9824_v52, %v7842_v25  ;;  %v231_v51 = vld [vmem:[%s7316_s23 + $0x20] sm:$0xff]  ;;  %v234_v61 = vld [vmem:[%s7316_s23 + $0x38] sm:$0xff]  ;;  %v2124_v6 = vmul.f32 %v5328_v42, %v9836_v26 }
 0x431   : > { %5343 = vpow2.f32 %v2888_v36  ;;  %9823 = vst [vmem:[#allocation33_spill] sm:$0xff] %v7879_v40  ;;  %v2908_v59 = vmul.f32 1.442695, %v2818_v23  ;;  %v9827_v36 = vld [vmem:[#allocation44_spill] sm:$0xff]  ;;  %1210 = vmatmul.mubr.f32.gmra.mrb[4].mxu1 %v231_v51 }
 0x432   : > { %5345 = vpow2.f32 %v2890_v19  ;;  %4727 = vmatprep.subr.bf16.mxu1 %v4726_v2  ;;  %v9829_v17 = vmax.f32 %v9827_v36, %v9828_v29  ;;  %v9830_v19 = vld [vmem:[#allocation75_spill] sm:$0xff]  ;;  %v9835_v36 = vld [vmem:[#allocation121_spill] sm:$0xff]  ;;  %1215 = vmatprep.mubr.f32.mxu1 %v234_v61  ;;  %v233_v51 = vld [vmem:[%s7316_s23 + $0x30] sm:$0xff] }
 0x433   : > { %v7884_v3 = vpop.eup %5331  ;;  %5347 = vrcp.f32 %v2018_v33  ;;  %4729 = vmatpush1.bf16.xpose.msra.mxu1 %v4728_v44  ;;  %v7886_v1 = vpop.f32.mrb[224].mxu0  ;;  %v2125_v2 = vmul.f32 %v5328_v42, %v9830_v19  ;;  %v2910_v19 = vmul.f32 1.442695, %v2819_v11  ;;  %v9834_v29 = vld [vmem:[#allocation51_spill] sm:$0xff]  ;;  %v9840_v11 = vld [vmem:[#allocation24_spill] sm:$0xff] }
 0x434   : > { %9825 = vst [vmem:[#allocation100_spill] sm:$0xff] %v7884_v3  ;;  %3006 = vadd.xlane.f32.xlu1 %v3005_v50  ;;  %v7890_v20 = vpop.eup %5333  ;;  %5349 = vpow2.f32 %v2902_v31  ;;  %2781 = vmax.xlane.f32.xlu0 %v9829_v17  ;;  %v2728_v25 = vpop.xlane.xlu0 %2727  ;;  %v9831_v50 = vld [vmem:[#allocation25_spill] sm:$0xff] }
 0x435   : > { %9826 = vst [vmem:[#allocation91_spill] sm:$0xff] %v7890_v20  ;;  %v7896_v52 = vpop.f32.mrb[225].mxu0  ;;  %v5336_v33 = vpop.eup %5335  ;;  %v2812_v57 = vsub.f32 %v9831_v50, %v2728_v25  ;;  %v2813_v43 = vsub.f32 %v9832_v30, %v2728_v25  ;;  %v3002_v31 = vadd.f32 %v7890_v20, %v7884_v3  ;;  %5351 = vrcp.f32 %v7824_v14  ;;  %v9837_v50 = vld [vmem:[#allocation98_spill] sm:$0xff]  ;;  %v9838_v3 = vld [vmem:[#allocation27_spill] sm:$0xff]  ;;  %1216 = vmatmul.mubr.f32.gmra.mrb[6].mxu1 %v233_v51  ;;  %v9848_v51 = vld [vmem:[#allocation97_spill] sm:$0xff] }
 0x436   : > { %v7898_v44 = vpop.xlane.xlu1 %2742  ;;  %v7906_v17 = vpop.eup %5337  ;;  %v2123_v46 = vmul.f32 %v5336_v33, %v9834_v29  ;;  %v2122_v37 = vmul.f32 %v5336_v33, %v9835_v36  ;;  %v9839_v20 = vmax.f32 %v9837_v50, %v9838_v3  ;;  %5353 = vpow2.f32 %v2908_v59  ;;  %v4437_v59 = vld [vmem:[%s7316_s23 + $0x48] sm:$0xff] }
 0x437   : > { %9833 = vst [vmem:[#allocation85_spill] sm:$0xff] %v7906_v17  ;;  %v2896_v30 = vmul.f32 1.442695, %v2812_v57  ;;  %v2898_v25 = vmul.f32 1.442695, %v2813_v43  ;;  %v7915_v23 = vpop.f32.mrb[226].mxu0  ;;  %v2822_v29 = vsub.f32 %v9840_v11, %v7898_v44  ;;  %v5340_v14 = vpop.eup %5339  ;;  %v3011_v43 = vadd.f32 %v7906_v17, %v7879_v40  ;;  %2218 = vmatprep.mubr.f32.mxu1 %v4437_v59 }
 0x438   : > { %2790 = vmax.xlane.f32.xlu1 %v9839_v20  ;;  %3003 = vadd.xlane.f32.xlu0 %v3002_v31  ;;  %v4730_v36 = vpack.c.bf16 %v2125_v2, %v2123_v46  ;;  %v2024_v26 = vpop.xlane.xlu0 %2023  ;;  %v4732_v42 = vpack.c.bf16 %v2124_v6, %v2122_v37  ;;  %v7920_v61 = vpop.f32.mrb[227].mxu0  ;;  %v9846_v2 = vld [vmem:[#allocation123_spill] sm:$0xff]  ;;  %v9857_v59 = vld [vmem:[#allocation41_spill] sm:$0xff] }
 0x439   : > { %9841 = vst [vmem:[#allocation86_spill] sm:$0xff] %v7920_v61  ;;  %5355 = vpow2.f32 %v2896_v30  ;;  %v7926_v20 = vpop.eup %5341  ;;  %v2823_v31 = vsub.f32 %v9846_v2, %v7898_v44  ;;  %v2916_v46 = vmul.f32 1.442695, %v2822_v29  ;;  %v9847_v30 = vld [vmem:[#allocation83_spill] sm:$0xff]  ;;  %v2128_v50 = vmul.f32 %v5340_v14, %v9857_v59 }
 0x43a   : > { %9842 = vst [vmem:[#allocation39_spill] sm:$0xff] %v7926_v20  ;;  %5357 = vpow2.f32 %v2898_v25  ;;  %4731 = vmatprep.subr.bf16.mxu1 %v4730_v36  ;;  %v9849_v11 = vmax.f32 %v9847_v30, %v9848_v51  ;;  %v9852_v57 = vld [vmem:[#allocation115_spill] sm:$0xff]  ;;  %v9856_v30 = vld [vmem:[#allocation22_spill] sm:$0xff] }
 0x43b   : > { %v7929_v33 = vpop.eup %5343  ;;  %5359 = vrcp.f32 %v2024_v26  ;;  %4733 = vmatpush1.bf16.xpose.msra.mxu1 %v4732_v42  ;;  %v7931_v37 = vpop.f32.mrb[228].mxu0  ;;  %v9851_v42 = vld [vmem:[#allocation28_spill] sm:$0xff]  ;;  %v9854_v2 = vld [vmem:[#allocation107_spill] sm:$0xff]  ;;  %v2918_v44 = vmul.f32 1.442695, %v2823_v31 }
 0x43c   : > { %9843 = vst [vmem:[#allocation89_spill] sm:$0xff] %v7929_v33  ;;  %3012 = vadd.xlane.f32.xlu1 %v3011_v43  ;;  %9844 = vst [vmem:[#allocation113_spill] sm:$0xff] %v7931_v37  ;;  %v7933_v6 = vpop.eup %5345  ;;  %5361 = vpow2.f32 %v2910_v19  ;;  %2787 = vmax.xlane.f32.xlu0 %v9849_v11  ;;  %v2734_v25 = vpop.xlane.xlu0 %2733  ;;  %v9855_v11 = vld [vmem:[#allocation102_spill] sm:$0xff]  ;;  %v9859_v61 = vld [vmem:[#allocation19_spill] sm:$0xff] }
 0x43d   : > { %9845 = vst [vmem:[#allocation114_spill] sm:$0xff] %v7933_v6  ;;  %v7940_v36 = vpop.f32.mrb[229].mxu0  ;;  %v5348_v26 = vpop.eup %5347  ;;  %v2816_v43 = vsub.f32 %v9851_v42, %v2734_v25  ;;  %v2817_v40 = vsub.f32 %v9852_v57, %v2734_v25  ;;  %v3008_v19 = vadd.f32 %v7933_v6, %v7929_v33  ;;  %v2129_v51 = vmul.f32 %v5340_v14, %v9855_v11  ;;  %v9858_v25 = vld [vmem:[#allocation16_spill] sm:$0xff] }
 0x43e   : > { %9850 = vst [vmem:[#allocation94_spill] sm:$0xff] %v7940_v36  ;;  %v7948_v29 = vpop.eup %5349  ;;  %v2127_v17 = vmul.f32 %v5348_v26, %v9854_v2  ;;  %v2126_v3 = vmul.f32 %v5348_v26, %v9856_v30  ;;  %5363 = vrcp.f32 %v7869_v13  ;;  %v9860_v33 = vmax.f32 %v9858_v25, %v9859_v61  ;;  %v9868_v31 = vld [vmem:[#allocation4_spill] sm:$0xff] }
 0x43f   : > { %9853 = vst [vmem:[#allocation46_spill] sm:$0xff] %v7948_v29  ;;  %v2904_v42 = vmul.f32 1.442695, %v2816_v43  ;;  %v2906_v57 = vmul.f32 1.442695, %v2817_v40  ;;  %v7958_v6 = vpop.f32.mrb[230].mxu0  ;;  %5365 = vpow2.f32 %v2916_v46  ;;  %v5352_v30 = vpop.eup %5351  ;;  %v3017_v13 = vadd.f32 %v7948_v29, %v7926_v20 }
 0x440   : > { %3722 = vmax.xlane.f32.xlu1 %v9860_v33  ;;  %9861 = vst [vmem:[#allocation7_spill] sm:$0xff] %v7958_v6  ;;  %3009 = vadd.xlane.f32.xlu0 %v3008_v19  ;;  %v4734_v2 = vpack.c.bf16 %v2129_v51, %v2127_v17  ;;  %v2030_v36 = vpop.xlane.xlu0 %2029  ;;  %v4736_v11 = vpack.c.bf16 %v2128_v50, %v2126_v3  ;;  %v7960_v37 = vpop.f32.mrb[231].mxu0  ;;  %v9867_v50 = vld [vmem:[#allocation50_spill] sm:$0xff] }
 0x441   : > { %9862 = vst [vmem:[#allocation93_spill] sm:$0xff] %v7960_v37  ;;  %5367 = vpow2.f32 %v2904_v42  ;;  %v7966_v14 = vpop.eup %5353  ;;  %v9869_v46 = vmax.f32 %v9867_v50, %v9868_v31  ;;  %v9875_v20 = vld [vmem:[#allocation14_spill] sm:$0xff]  ;;  %v9876_v50 = vld [vmem:[#allocation116_spill] sm:$0xff] }
 0x442   : > { %9863 = vst [vmem:[#allocation74_spill] sm:$0xff] %v7966_v14  ;;  %5369 = vpow2.f32 %v2906_v57  ;;  %4735 = vmatprep.subr.bf16.mxu1 %v4734_v2  ;;  %v2132_v29 = vmul.f32 %v5352_v30, %v9875_v20  ;;  %v9889_v20 = vld [vmem:[#allocation73_spill] sm:$0xff] }
 0x443   : > { %v7968_v33 = vpop.eup %5355  ;;  %5371 = vrcp.f32 %v2030_v36  ;;  %4737 = vmatpush1.bf16.xpose.msra.mxu1 %v4736_v11  ;;  %v7970_v3 = vpop.f32.mrb[232].mxu0  ;;  %v9873_v11 = vld [vmem:[#allocation3_spill] sm:$0xff] }
 0x444   : > { %9864 = vst [vmem:[#allocation8_spill] sm:$0xff] %v7968_v33  ;;  %3018 = vadd.xlane.f32.xlu1 %v3017_v13  ;;  %9865 = vst [vmem:[#allocation29_spill] sm:$0xff] %v7970_v3  ;;  %v7972_v17 = vpop.eup %5357  ;;  %5373 = vpow2.f32 %v2918_v44  ;;  %3719 = vmax.xlane.f32.xlu0 %v9869_v46  ;;  %v2740_v51 = vpop.xlane.xlu0 %2739  ;;  %v9872_v44 = vld [vmem:[#allocation110_spill] sm:$0xff]  ;;  %v2133_v13 = vmul.f32 %v5352_v30, %v9873_v11 }
 0x445   : > { %9866 = vst [vmem:[#allocation30_spill] sm:$0xff] %v7972_v17  ;;  %v7977_v26 = vpop.f32.mrb[233].mxu0  ;;  %v5360_v43 = vpop.eup %5359  ;;  %v2820_v19 = vsub.f32 %v9736_v15, %v2740_v51  ;;  %v2821_v59 = vsub.f32 %v9737_v56, %v2740_v51  ;;  %v3014_v36 = vadd.f32 %v7972_v17, %v7968_v33  ;;  %v9874_v46 = vld [vmem:[#allocation66_spill] sm:$0xff]  ;;  %v9877_v56 = vld [vmem:[#allocation53_spill] sm:$0xff] }
 0x446   : > { %9870 = vst [vmem:[#allocation104_spill] sm:$0xff] %v7977_v26  ;;  %v7985_v57 = vpop.eup %5361  ;;  %v2131_v2 = vmul.f32 %v5360_v43, %v9872_v44  ;;  %v2130_v40 = vmul.f32 %v5360_v43, %v9874_v46  ;;  %v9878_v51 = vmax.f32 %v9876_v50, %v9877_v56 }
 0x447   : > { %9871 = vst [vmem:[#allocation92_spill] sm:$0xff] %v7985_v57  ;;  %v2912_v31 = vmul.f32 1.442695, %v2820_v19  ;;  %v2914_v15 = vmul.f32 1.442695, %v2821_v59  ;;  %v7994_v33 = vpop.f32.mrb[234].mxu0  ;;  %v3023_v43 = vadd.f32 %v7985_v57, %v7966_v14 }
 0x448   : > { %3728 = vmax.xlane.f32.xlu1 %v9878_v51  ;;  %3015 = vadd.xlane.f32.xlu0 %v3014_v36  ;;  %v4738_v42 = vpack.c.bf16 %v2133_v13, %v2131_v2  ;;  %v4740_v17 = vpack.c.bf16 %v2132_v29, %v2130_v40  ;;  %v7996_v26 = vpop.f32.mrb[235].mxu0  ;;  %v5364_v44 = vpop.eup %5363  ;;  %v9882_v40 = vld [vmem:[#allocation120_spill] sm:$0xff]  ;;  %v9888_v51 = vld [vmem:[#allocation13_spill] sm:$0xff]  ;;  %v9890_v57 = vld [vmem:[#allocation82_spill] sm:$0xff] }
 0x449   : > { %5375 = vpow2.f32 %v2912_v31  ;;  %v8002_v30 = vpop.eup %5365  ;;  %v9883_v31 = vld [vmem:[#allocation15_spill] sm:$0xff] }
 0x44a   : > { %9879 = vst [vmem:[#allocation40_spill] sm:$0xff] %v8002_v30  ;;  %5377 = vpow2.f32 %v2914_v15  ;;  %4739 = vmatprep.subr.bf16.mxu1 %v4738_v42  ;;  %v9884_v36 = vmax.f32 %v9882_v40, %v9883_v31  ;;  %v2136_v31 = vmul.f32 %v5364_v44, %v9890_v57  ;;  %v9892_v40 = vld [vmem:[#allocation57_spill] sm:$0xff] }
 0x44b   : > { %v8004_v19 = vpop.eup %5367  ;;  %4741 = vmatpush1.bf16.xpose.msra.mxu1 %v4740_v17  ;;  %v8006_v59 = vpop.f32.mrb[236].mxu0  ;;  %v9887_v17 = vld [vmem:[#allocation112_spill] sm:$0xff] }
 0x44c   : > { %9880 = vst [vmem:[#allocation88_spill] sm:$0xff] %v8004_v19  ;;  %3024 = vadd.xlane.f32.xlu1 %v3023_v43  ;;  %v8008_v29 = vpop.eup %5369  ;;  %3725 = vmax.xlane.f32.xlu0 %v9884_v36  ;;  %v8013_v2 = vpop.f32.mrb[237].mxu0  ;;  %v2137_v43 = vmul.f32 %v5364_v44, %v9888_v51  ;;  %v9891_v36 = vld [vmem:[#allocation118_spill] sm:$0xff]  ;;  %v9897_v44 = vld [vmem:[#allocation101_spill] sm:$0xff] }
 0x44d   : > { %9881 = vst [vmem:[#allocation11_spill] sm:$0xff] %v8008_v29  ;;  %9885 = vst [vmem:[#allocation12_spill] sm:$0xff] %v8013_v2  ;;  %v5372_v11 = vpop.eup %5371  ;;  %v3020_v13 = vadd.f32 %v8008_v29, %v8004_v19  ;;  %v9893_v3 = vmax.f32 %v9891_v36, %v9892_v40 }
 0x44e   : > { %v8019_v46 = vpop.eup %5373  ;;  %v2135_v15 = vmul.f32 %v5372_v11, %v9887_v17  ;;  %v2134_v14 = vmul.f32 %v5372_v11, %v9889_v20  ;;  %v9898_v11 = vld [vmem:[#allocation54_spill] sm:$0xff] }
 0x44f   : > { %9886 = vst [vmem:[#allocation2_spill] sm:$0xff] %v8019_v46  ;;  %v8028_v56 = vpop.f32.mrb[238].mxu0  ;;  %v3029_v17 = vadd.f32 %v8019_v46, %v8002_v30  ;;  %v9907_v46 = vld [vmem:[#allocation105_spill] sm:$0xff] }
 0x450   : > { %3734 = vmax.xlane.f32.xlu1 %v9893_v3  ;;  %3021 = vadd.xlane.f32.xlu0 %v3020_v13  ;;  %v4742_v19 = vpack.c.bf16 %v2137_v43, %v2135_v15  ;;  %v4744_v29 = vpack.c.bf16 %v2136_v31, %v2134_v14  ;;  %v8030_v42 = vpop.f32.mrb[239].mxu0  ;;  %v9899_v14 = vmax.f32 %v9897_v44, %v9898_v11  ;;  %v9901_v15 = vld [vmem:[#allocation58_spill] sm:$0xff]  ;;  %v9902_v43 = vld [vmem:[#allocation20_spill] sm:$0xff] }
 0x451   : > { %v9908_v11 = vld [vmem:[#allocation124_spill] sm:$0xff] }
 0x452   : > { %4743 = vmatprep.subr.bf16.mxu1 %v4742_v19 }
 0x453   : > { %v8036_v20 = vpop.eup %5375  ;;  %4745 = vmatpush1.bf16.xpose.msra.mxu1 %v4744_v29  ;;  %v8038_v57 = vpop.f32.mrb[240].mxu0  ;;  %v9903_v29 = vmax.f32 %v9901_v15, %v9902_v43 }
 0x454   : > { %9894 = vst [vmem:[#allocation103_spill] sm:$0xff] %v8036_v20  ;;  %3030 = vadd.xlane.f32.xlu1 %v3029_v17  ;;  %9895 = vst [vmem:[#allocation31_spill] sm:$0xff] %v8038_v57  ;;  %v8040_v3 = vpop.eup %5377  ;;  %3731 = vmax.xlane.f32.xlu0 %v9899_v14  ;;  %v8045_v31 = vpop.f32.mrb[241].mxu0 }
 0x455   : > { %9896 = vst [vmem:[#allocation52_spill] sm:$0xff] %v8040_v3  ;;  %9900 = vst [vmem:[#allocation68_spill] sm:$0xff] %v8045_v31  ;;  %v3026_v13 = vadd.f32 %v8040_v3, %v8036_v20  ;;  %v9909_v20 = vmax.f32 %v9907_v46, %v9908_v11 }
 0x457   : > { %v8054_v17 = vpop.f32.mrb[242].mxu0 }
 0x458   : > { %3740 = vmax.xlane.f32.xlu1 %v9903_v29  ;;  %9904 = vst [vmem:[#allocation99_spill] sm:$0xff] %v8054_v17  ;;  %3027 = vadd.xlane.f32.xlu0 %v3026_v13  ;;  %v8056_v51 = vpop.f32.mrb[243].mxu0 }
 0x459   : > { %9905 = vst [vmem:[#allocation9_spill] sm:$0xff] %v8056_v51 }
 0x45b   : > { %v8060_v30 = vpop.f32.mrb[244].mxu0 }
 0x45c   : > { %9906 = vst [vmem:[#allocation17_spill] sm:$0xff] %v8060_v30  ;;  %3737 = vmax.xlane.f32.xlu0 %v9909_v20  ;;  %v8065_v3 = vpop.f32.mrb[245].mxu0 }
 0x45d   : > { %9910 = vst [vmem:[#allocation18_spill] sm:$0xff] %v8065_v3 }
 0x45f   : > { %v8069_v29 = vpop.f32.mrb[246].mxu0  ;;  %v2036_v31 = vpop.xlane.xlu0 %2035 }
 0x460   : > { %v8071_v13 = vpop.f32.mrb[247].mxu0  ;;  %5379 = vrcp.f32 %v2036_v31 }
 0x463   : > { %v8075_v14 = vpop.f32.mrb[248].mxu0  ;;  %v2746_v43 = vpop.xlane.xlu0 %2745 }
 0x464   : > { %9911 = vst [vmem:[#allocation90_spill] sm:$0xff] %v8075_v14  ;;  %v8077_v15 = vpop.f32.mrb[249].mxu0  ;;  %v2824_v20 = vsub.f32 %v7067_v16, %v2746_v43  ;;  %v2825_v11 = vsub.f32 %v7072_v39, %v2746_v43 }
 0x465   : > { %9912 = vst [vmem:[#allocation37_spill] sm:$0xff] %v8077_v15 }
 0x466   : > { %v2920_v3 = vmul.f32 1.442695, %v2824_v20  ;;  %v2922_v30 = vmul.f32 1.442695, %v2825_v11 }
 0x467   : > { %v8083_v46 = vpop.f32.mrb[250].mxu0  ;;  %v2039_v51 = vpop.xlane.xlu1 %2038 }
 0x468   : > { %v8085_v17 = vpop.f32.mrb[251].mxu0  ;;  %5381 = vpow2.f32 %v2920_v3 }
 0x469   : > { %5383 = vpow2.f32 %v2922_v30 }
 0x46a   : > { %5385 = vrcp.f32 %v2039_v51  ;;  %v5380_v51 = vpop.eup %5379 }
 0x46b   : > { %v8089_v16 = vpop.f32.mrb[252].mxu0  ;;  %v2749_v39 = vpop.xlane.xlu1 %2748 }
 0x46c   : > { %9913 = vst [vmem:[#allocation106_spill] sm:$0xff] %v8089_v16  ;;  %v8091_v43 = vpop.f32.mrb[253].mxu0  ;;  %v2826_v20 = vsub.f32 %v7087_v21, %v2749_v39  ;;  %v2827_v11 = vsub.f32 %v7092_v38, %v2749_v39 }
 0x46d   : > { %9914 = vst [vmem:[#allocation56_spill] sm:$0xff] %v8091_v43 }
 0x46e   : > { %v2924_v19 = vmul.f32 1.442695, %v2826_v20  ;;  %v2926_v15 = vmul.f32 1.442695, %v2827_v11  ;;  %v2139_v11 = vmul.f32 %v5380_v51, %v7643_v4  ;;  %v9919_v4 = vld [vmem:[#allocation122_spill] sm:$0xff] }
 0x46f   : > { %v8097_v3 = vpop.f32.mrb[254].mxu0 }
 0x470   : > { %9915 = vst [vmem:[#allocation36_spill] sm:$0xff] %v8097_v3  ;;  %v8099_v14 = vpop.f32.mrb[255].mxu0  ;;  %5387 = vpow2.f32 %v2924_v19  ;;  %v2138_v19 = vmul.f32 %v5380_v51, %v7641_v35 }
 0x471   : > { %9916 = vst [vmem:[#allocation117_spill] sm:$0xff] %v8099_v14  ;;  %5389 = vpow2.f32 %v2926_v15 }
 0x472   : > { %v8103_v57 = vpop.eup %5381 }
 0x473   : > { %9917 = vst [vmem:[#allocation119_spill] sm:$0xff] %v8103_v57  ;;  %v8105_v21 = vpop.eup %5383  ;;  %v2042_v39 = vpop.xlane.xlu0 %2041 }
 0x474   : > { %9918 = vst [vmem:[#allocation75_spill] sm:$0xff] %v8105_v21  ;;  %v5386_v38 = vpop.eup %5385  ;;  %v3032_v20 = vadd.f32 %v8105_v21, %v8103_v57  ;;  %5391 = vrcp.f32 %v2042_v39 }
 0x475   : > { %v2141_v31 = vmul.f32 %v5386_v38, %v7655_v27  ;;  %v2140_v43 = vmul.f32 %v5386_v38, %v7650_v22  ;;  %v9920_v27 = vld [vmem:[#allocation60_spill] sm:$0xff] }
 0x476   : > { %3033 = vadd.xlane.f32.xlu0 %v3032_v20  ;;  %v9921_v35 = vmax.f32 %v9919_v4, %v9920_v27  ;;  %v9922_v20 = vld [vmem:[#allocation47_spill] sm:$0xff] }
 0x477   : > { %v2045_v15 = vpop.xlane.xlu1 %2044  ;;  %v4746_v30 = vpack.c.bf16 %v2141_v31, %v2139_v11  ;;  %v4748_v16 = vpack.c.bf16 %v2140_v43, %v2138_v19  ;;  %v2752_v14 = vpop.xlane.xlu0 %2751 }
 0x478   : > { %5393 = vrcp.f32 %v2045_v15  ;;  %v2828_v3 = vsub.f32 %v9742_v54, %v2752_v14  ;;  %v2829_v57 = vsub.f32 %v9743_v8, %v2752_v14 }
 0x479   : > { %4747 = vmatprep.subr.bf16.mxu1 %v4746_v30 }
 0x47a   : > { %v8115_v21 = vpop.eup %5387  ;;  %4749 = vmatpush1.bf16.xpose.msra.mxu1 %v4748_v16  ;;  %3743 = vmax.xlane.f32.xlu0 %v9921_v35  ;;  %v2928_v51 = vmul.f32 1.442695, %v2828_v3  ;;  %v2930_v38 = vmul.f32 1.442695, %v2829_v57  ;;  %v9923_v3 = vld [vmem:[#allocation62_spill] sm:$0xff] }
 0x47b   : > { %v8120_v22 = vpop.eup %5389  ;;  %v2755_v31 = vpop.xlane.xlu1 %2754  ;;  %v9924_v57 = vmax.f32 %v9922_v20, %v9923_v3 }
 0x47c   : > { %v2830_v43 = vsub.f32 %v9746_v0, %v2755_v31  ;;  %v2831_v30 = vsub.f32 %v9747_v55, %v2755_v31  ;;  %v3035_v54 = vadd.f32 %v8120_v22, %v8115_v21  ;;  %5395 = vpow2.f32 %v2928_v51 }
 0x47d   : > { %5397 = vpow2.f32 %v2930_v38 }
 0x47e   : > { %v2932_v8 = vmul.f32 1.442695, %v2830_v43  ;;  %v2934_v14 = vmul.f32 1.442695, %v2831_v30  ;;  %3036 = vadd.xlane.f32.xlu1 %v3035_v54  ;;  %v5392_v16 = vpop.eup %5391 }
 0x47f   : > { %v2143_v0 = vmul.f32 %v5392_v16, %v7674_v10  ;;  %v2142_v11 = vmul.f32 %v5392_v16, %v7671_v47 }
 0x480   : > { %5399 = vpow2.f32 %v2932_v8 }
 0x481   : > { %5401 = vpow2.f32 %v2934_v14 }
 0x482   : > { %v5394_v39 = vpop.eup %5393  ;;  %3746 = vmax.xlane.f32.xlu1 %v9924_v57 }
 0x483   : > { %v2145_v55 = vmul.f32 %v5394_v39, %v7682_v12  ;;  %v2144_v19 = vmul.f32 %v5394_v39, %v7680_v58  ;;  %v2048_v15 = vpop.xlane.xlu0 %2047 }
 0x484   : > { %5403 = vrcp.f32 %v2048_v15 }
 0x485   : > { %v4750_v35 = vpack.c.bf16 %v2145_v55, %v2143_v0  ;;  %v4752_v51 = vpack.c.bf16 %v2144_v19, %v2142_v11  ;;  %v9925_v55 = vld [vmem:[#allocation49_spill] sm:$0xff]  ;;  %v9926_v11 = vld [vmem:[#allocation108_spill] sm:$0xff] }
 0x486   : > { %v8133_v38 = vpop.eup %5395  ;;  %v9927_v19 = vmax.f32 %v9925_v55, %v9926_v11 }
 0x487   : > { %4751 = vmatprep.subr.bf16.mxu1 %v4750_v35  ;;  %v8135_v43 = vpop.eup %5397  ;;  %v2758_v30 = vpop.xlane.xlu0 %2757 }
 0x488   : > { %v2051_v31 = vpop.xlane.xlu1 %2050  ;;  %4753 = vmatpush1.bf16.xpose.msra.mxu1 %v4752_v51  ;;  %v2832_v10 = vsub.f32 %v9753_v24, %v2758_v30  ;;  %v2833_v12 = vsub.f32 %v9754_v32, %v2758_v30  ;;  %v3038_v47 = vadd.f32 %v8135_v43, %v8133_v38  ;;  %v9928_v51 = vld [vmem:[#allocation43_spill] sm:$0xff] }
 0x489   : > { %5405 = vrcp.f32 %v2051_v31 }
 0x48a   : > { %v8141_v58 = vpop.eup %5399  ;;  %v2936_v8 = vmul.f32 1.442695, %v2832_v10  ;;  %v2938_v14 = vmul.f32 1.442695, %v2833_v12  ;;  %3039 = vadd.xlane.f32.xlu0 %v3038_v47  ;;  %v9931_v10 = vld [vmem:[#allocation6_spill] sm:$0xff] }
 0x48b   : > { %v8143_v54 = vpop.eup %5401  ;;  %v9932_v47 = vld [vmem:[#allocation78_spill] sm:$0xff] }
 0x48c   : > { %v2761_v16 = vpop.xlane.xlu1 %2760  ;;  %v3041_v24 = vadd.f32 %v8143_v54, %v8141_v58  ;;  %5407 = vpow2.f32 %v2936_v8 }
 0x48d   : > { %v2834_v39 = vsub.f32 %v9758_v34, %v2761_v16  ;;  %v2835_v57 = vsub.f32 %v9759_v60, %v2761_v16  ;;  %5409 = vpow2.f32 %v2938_v14  ;;  %v9929_v34 = vld [vmem:[#allocation55_spill] sm:$0xff] }
 0x48e   : > { %3042 = vadd.xlane.f32.xlu1 %v3041_v24  ;;  %3749 = vmax.xlane.f32.xlu0 %v9927_v19  ;;  %v5404_v15 = vpop.eup %5403  ;;  %v9930_v31 = vmax.f32 %v9928_v51, %v9929_v34 }
 0x48f   : > { %v2940_v32 = vmul.f32 1.442695, %v2834_v39  ;;  %v2942_v0 = vmul.f32 1.442695, %v2835_v57  ;;  %v2147_v60 = vmul.f32 %v5404_v15, %v7704_v9  ;;  %v2146_v12 = vmul.f32 %v5404_v15, %v9931_v10  ;;  %v9935_v9 = vld [vmem:[#allocation38_spill] sm:$0xff] }
 0x491   : > { %5411 = vpow2.f32 %v2940_v32 }
 0x492   : > { %5413 = vpow2.f32 %v2942_v0  ;;  %3752 = vmax.xlane.f32.xlu1 %v9930_v31 }
 0x493   : > { %v5406_v35 = vpop.eup %5405 }
 0x494   : > { %v2149_v30 = vmul.f32 %v5406_v35, %v7712_v41  ;;  %v2148_v8 = vmul.f32 %v5406_v35, %v9932_v47  ;;  %v2054_v14 = vpop.xlane.xlu0 %2053  ;;  %v9936_v41 = vld [vmem:[#allocation87_spill] sm:$0xff] }
 0x495   : > { %5415 = vrcp.f32 %v2054_v14 }
 0x496   : > { %v4754_v16 = vpack.c.bf16 %v2149_v30, %v2147_v60  ;;  %v4756_v39 = vpack.c.bf16 %v2148_v8, %v2146_v12  ;;  %v8159_v57 = vpop.eup %5407 }
 0x497   : > { %9933 = vst [vmem:[#allocation25_spill] sm:$0xff] %v8159_v57  ;;  %v8161_v32 = vpop.eup %5409 }
 0x498   : > { %v2057_v24 = vpop.xlane.xlu1 %2056  ;;  %4755 = vmatprep.subr.bf16.mxu1 %v4754_v16  ;;  %9934 = vst [vmem:[#allocation26_spill] sm:$0xff] %v8161_v32  ;;  %v3044_v15 = vadd.f32 %v8161_v32, %v8159_v57 }
 0x499   : > { %5417 = vrcp.f32 %v2057_v24  ;;  %v2764_v0 = vpop.xlane.xlu0 %2763  ;;  %4757 = vmatpush1.bf16.xpose.msra.mxu1 %v4756_v39  ;;  %v9939_v24 = vld [vmem:[#allocation109_spill] sm:$0xff] }
 0x49a   : > { %v2836_v19 = vsub.f32 %v9935_v9, %v2764_v0  ;;  %v2837_v31 = vsub.f32 %v9936_v41, %v2764_v0  ;;  %3045 = vadd.xlane.f32.xlu0 %v3044_v15  ;;  %v9940_v0 = vld [vmem:[#allocation67_spill] sm:$0xff] }
 0x49b   : > { %v8167_v35 = vpop.eup %5411  ;;  %v9941_v9 = vmax.f32 %v9939_v24, %v9940_v0 }
 0x49c   : > { %9937 = vst [vmem:[#allocation51_spill] sm:$0xff] %v8167_v35  ;;  %v8169_v60 = vpop.eup %5413  ;;  %v2944_v30 = vmul.f32 1.442695, %v2836_v19  ;;  %v2946_v10 = vmul.f32 1.442695, %v2837_v31  ;;  %v2767_v12 = vpop.xlane.xlu1 %2766  ;;  %v9942_v31 = vld [vmem:[#allocation45_spill] sm:$0xff] }
 0x49d   : > { %9938 = vst [vmem:[#allocation121_spill] sm:$0xff] %v8169_v60  ;;  %v2838_v47 = vsub.f32 %v9775_v18, %v2767_v12  ;;  %v2839_v8 = vsub.f32 %v9776_v7, %v2767_v12  ;;  %v3047_v14 = vadd.f32 %v8169_v60, %v8167_v35  ;;  %v9943_v18 = vld [vmem:[#allocation72_spill] sm:$0xff]  ;;  %v9945_v7 = vld [vmem:[#allocation69_spill] sm:$0xff] }
 0x49e   : > { %5419 = vpow2.f32 %v2944_v30  ;;  %3755 = vmax.xlane.f32.xlu0 %v9941_v9  ;;  %v9944_v15 = vmax.f32 %v9942_v31, %v9943_v18  ;;  %v9946_v35 = vld [vmem:[#allocation81_spill] sm:$0xff] }
 0x49f   : > { %5421 = vpow2.f32 %v2946_v10  ;;  %v2948_v16 = vmul.f32 1.442695, %v2838_v47  ;;  %v2950_v39 = vmul.f32 1.442695, %v2839_v8  ;;  %3048 = vadd.xlane.f32.xlu1 %v3047_v14  ;;  %v5416_v19 = vpop.eup %5415  ;;  %v9947_v10 = vld [vmem:[#allocation79_spill] sm:$0xff]  ;;  %v9948_v8 = vld [vmem:[#allocation80_spill] sm:$0xff] }
 0x4a0   : > { %v2151_v12 = vmul.f32 %v5416_v19, %v9945_v7  ;;  %v2150_v47 = vmul.f32 %v5416_v19, %v9947_v10 }
 0x4a1   : > { %5423 = vpow2.f32 %v2948_v16 }
 0x4a2   : > { %5425 = vpow2.f32 %v2950_v39 }
 0x4a3   : > { %v5418_v41 = vpop.eup %5417  ;;  %3758 = vmax.xlane.f32.xlu1 %v9944_v15 }
 0x4a4   : > { %v2153_v30 = vmul.f32 %v5418_v41, %v9946_v35  ;;  %v2152_v14 = vmul.f32 %v5418_v41, %v9948_v8  ;;  %v2986_v57 = vpop.xlane.xlu0 %2985 }
 0x4a5   : > { %5427 = vrcp.f32 %v2986_v57 }
 0x4a6   : > { %v4758_v60 = vpack.c.bf16 %v2153_v30, %v2151_v12  ;;  %v4760_v32 = vpack.c.bf16 %v2152_v14, %v2150_v47  ;;  %v9953_v14 = vld [vmem:[#allocation111_spill] sm:$0xff] }
 0x4a8   : > { %v8185_v9 = vpop.eup %5419  ;;  %v2989_v16 = vpop.xlane.xlu1 %2988  ;;  %4759 = vmatprep.subr.bf16.mxu1 %v4758_v60 }
 0x4a9   : > { %9949 = vst [vmem:[#allocation96_spill] sm:$0xff] %v8185_v9  ;;  %v8187_v39 = vpop.eup %5421  ;;  %5429 = vrcp.f32 %v2989_v16  ;;  %v2770_v15 = vpop.xlane.xlu0 %2769  ;;  %4761 = vmatpush1.bf16.xpose.msra.mxu1 %v4760_v32  ;;  %v4436_v32 = vld [vmem:[%s7316_s23 + $0x40] sm:$0xff]  ;;  %v9954_v16 = vld [vmem:[#allocation76_spill] sm:$0xff] }
 0x4aa   : > { %9950 = vst [vmem:[#allocation24_spill] sm:$0xff] %v8187_v39  ;;  %v2840_v35 = vsub.f32 %v9784_v53, %v2770_v15  ;;  %v2841_v19 = vsub.f32 %v9785_v48, %v2770_v15  ;;  %v3050_v41 = vadd.f32 %v8187_v39, %v8185_v9  ;;  %v9955_v15 = vmax.f32 %v9953_v14, %v9954_v16 }
 0x4ab   : > { %v8193_v7 = vpop.eup %5423 }
 0x4ac   : > { %9951 = vst [vmem:[#allocation123_spill] sm:$0xff] %v8193_v7  ;;  %v8195_v57 = vpop.eup %5425  ;;  %v2952_v12 = vmul.f32 1.442695, %v2840_v35  ;;  %v2954_v30 = vmul.f32 1.442695, %v2841_v19  ;;  %3051 = vadd.xlane.f32.xlu0 %v3050_v41  ;;  %v2773_v60 = vpop.xlane.xlu1 %2772  ;;  %v9957_v41 = vld [vmem:[#allocation65_spill] sm:$0xff] }
 0x4ad   : > { %9952 = vst [vmem:[#allocation28_spill] sm:$0xff] %v8195_v57  ;;  %v2842_v10 = vsub.f32 %v9789_v45, %v2773_v60  ;;  %v2843_v47 = vsub.f32 %v9790_v49, %v2773_v60  ;;  %v3053_v53 = vadd.f32 %v8195_v57, %v8193_v7  ;;  %v9956_v49 = vld [vmem:[#allocation77_spill] sm:$0xff]  ;;  %v9960_v7 = vld [vmem:[#allocation71_spill] sm:$0xff] }
 0x4ae   : > { %5431 = vpow2.f32 %v2952_v12  ;;  %v9958_v60 = vmax.f32 %v9956_v49, %v9957_v41 }
 0x4af   : > { %5433 = vpow2.f32 %v2954_v30  ;;  %v2956_v48 = vmul.f32 1.442695, %v2842_v10  ;;  %v2958_v8 = vmul.f32 1.442695, %v2843_v47  ;;  %3054 = vadd.xlane.f32.xlu1 %v3053_v53  ;;  %v5428_v19 = vpop.eup %5427  ;;  %v9959_v47 = vld [vmem:[#allocation21_spill] sm:$0xff] }
 0x4b0   : > { %3761 = vmax.xlane.f32.xlu0 %v9955_v15  ;;  %v2995_v35 = vpop.xlane.xlu1 %2994  ;;  %2219 = vmatmul.mubr.f32.vlgmr.msra.gmra.mrb[8].mxu1 %v4436_v32  ;;  %v3113_v10 = vmul.f32 %v5428_v19, %v7774_v62  ;;  %v3112_v9 = vmul.f32 %v5428_v19, %v9960_v7  ;;  %v9961_v15 = vld [vmem:[#allocation10_spill] sm:$0xff] }
 0x4b1   : > { %5435 = vpow2.f32 %v2956_v48 }
 0x4b2   : > { %5437 = vpow2.f32 %v2958_v8 }
 0x4b3   : > { %v5430_v45 = vpop.eup %5429  ;;  %5439 = vrcp.f32 %v2995_v35  ;;  %3764 = vmax.xlane.f32.xlu1 %v9958_v60 }
 0x4b4   : > { %v2992_v30 = vpop.xlane.xlu0 %2991  ;;  %v3115_v53 = vmul.f32 %v5430_v45, %v9959_v47  ;;  %v3114_v57 = vmul.f32 %v5430_v45, %v9961_v15 }
 0x4b5   : > { %v2779_v12 = vpop.xlane.xlu1 %2778  ;;  %5441 = vrcp.f32 %v2992_v30 }
 0x4b6   : > { %v2846_v32 = vsub.f32 %v9803_v5, %v2779_v12  ;;  %v2847_v48 = vsub.f32 %v9804_v63, %v2779_v12  ;;  %v4770_v8 = vpack.c.bf16 %v3115_v53, %v3113_v10  ;;  %v4772_v35 = vpack.c.bf16 %v3114_v57, %v3112_v9  ;;  %v9963_v5 = vld [vmem:[#allocation42_spill] sm:$0xff] }
 0x4b8   : > { %v2964_v39 = vmul.f32 1.442695, %v2846_v32  ;;  %v2966_v41 = vmul.f32 1.442695, %v2847_v48  ;;  %v8214_v60 = vpop.eup %5431  ;;  %4771 = vmatprep.subr.bf16.mxu1 %v4770_v8  ;;  %v2776_v47 = vpop.xlane.xlu0 %2775 }
 0x4b9   : > { %9962 = vst [vmem:[#allocation115_spill] sm:$0xff] %v8214_v60  ;;  %v3001_v49 = vpop.xlane.xlu1 %3000  ;;  %v8216_v62 = vpop.eup %5433  ;;  %4773 = vmatpush1.bf16.xpose.msra.mxu1 %v4772_v35  ;;  %v2844_v7 = vsub.f32 %v9811_v28, %v2776_v47  ;;  %v2845_v19 = vsub.f32 %v9963_v5, %v2776_v47  ;;  %v9968_v47 = vmax.f32 %v7886_v1, %v7896_v52 }
 0x4ba   : > { %5443 = vpow2.f32 %v2964_v39  ;;  %v3056_v63 = vadd.f32 %v8216_v62, %v8214_v60  ;;  %v9966_v39 = vld [vmem:[#allocation95_spill] sm:$0xff] }
 0x4bb   : > { %5445 = vpow2.f32 %v2966_v41  ;;  %v8222_v9 = vpop.eup %5435  ;;  %v2960_v45 = vmul.f32 1.442695, %v2844_v7  ;;  %v2962_v12 = vmul.f32 1.442695, %v2845_v19  ;;  %v9967_v41 = vld [vmem:[#allocation48_spill] sm:$0xff]  ;;  %v9969_v7 = vld [vmem:[#allocation63_spill] sm:$0xff] }
 0x4bc   : > { %9964 = vst [vmem:[#allocation107_spill] sm:$0xff] %v8222_v9  ;;  %v8224_v57 = vpop.eup %5437  ;;  %3057 = vadd.xlane.f32.xlu0 %v3056_v63  ;;  %5447 = vrcp.f32 %v3001_v49  ;;  %v2998_v28 = vpop.xlane.xlu0 %2997  ;;  %v9970_v19 = vld [vmem:[#allocation61_spill] sm:$0xff] }
 0x4bd   : > { %9965 = vst [vmem:[#allocation102_spill] sm:$0xff] %v8224_v57  ;;  %v2785_v30 = vpop.xlane.xlu1 %2784  ;;  %v5440_v10 = vpop.eup %5439  ;;  %v3059_v32 = vadd.f32 %v8224_v57, %v8222_v9  ;;  %5449 = vpow2.f32 %v2960_v45  ;;  %v9972_v45 = vld [vmem:[#allocation23_spill] sm:$0xff] }
 0x4be   : > { %v2850_v53 = vsub.f32 %v9966_v39, %v2785_v30  ;;  %v2851_v15 = vsub.f32 %v9967_v41, %v2785_v30  ;;  %5451 = vpow2.f32 %v2962_v12  ;;  %v3119_v63 = vmul.f32 %v5440_v10, %v9970_v19  ;;  %v9971_v30 = vld [vmem:[#allocation84_spill] sm:$0xff] }
 0x4bf   : > { %v5442_v48 = vpop.eup %5441  ;;  %3060 = vadd.xlane.f32.xlu1 %v3059_v32  ;;  %5453 = vrcp.f32 %v2998_v28  ;;  %v3118_v9 = vmul.f32 %v5440_v10, %v9972_v45  ;;  %v9973_v12 = vld [vmem:[#allocation44_spill] sm:$0xff]  ;;  %v9979_v10 = vld [vmem:[#allocation98_spill] sm:$0xff]  ;;  %v9980_v45 = vld [vmem:[#allocation27_spill] sm:$0xff] }
 0x4c0   : > { %v2972_v8 = vmul.f32 1.442695, %v2850_v53  ;;  %v2974_v35 = vmul.f32 1.442695, %v2851_v15  ;;  %3767 = vmax.xlane.f32.xlu0 %v9968_v47  ;;  %v3117_v5 = vmul.f32 %v5442_v48, %v9969_v7  ;;  %v3116_v39 = vmul.f32 %v5442_v48, %v9971_v30  ;;  %v9974_v15 = vld [vmem:[#allocation5_spill] sm:$0xff]  ;;  %v9976_v47 = vld [vmem:[#allocation86_spill] sm:$0xff] }
 0x4c1   : > { %v3007_v49 = vpop.xlane.xlu1 %3006  ;;  %v2782_v41 = vpop.xlane.xlu0 %2781  ;;  %v9977_v57 = vmax.f32 %v7915_v23, %v9976_v47 }
 0x4c2   : > { %5455 = vpow2.f32 %v2972_v8  ;;  %v2848_v53 = vsub.f32 %v9973_v12, %v2782_v41  ;;  %v2849_v28 = vsub.f32 %v9974_v15, %v2782_v41  ;;  %v4774_v32 = vpack.c.bf16 %v3119_v63, %v3117_v5 }
 0x4c3   : > { %5457 = vpow2.f32 %v2974_v35  ;;  %3770 = vmax.xlane.f32.xlu1 %v9977_v57  ;;  %v4776_v7 = vpack.c.bf16 %v3118_v9, %v3116_v39 }
 0x4c4   : > { %v8239_v60 = vpop.eup %5443  ;;  %v2968_v48 = vmul.f32 1.442695, %v2848_v53  ;;  %v2970_v8 = vmul.f32 1.442695, %v2849_v28  ;;  %4775 = vmatprep.subr.bf16.mxu1 %v4774_v32  ;;  %5459 = vrcp.f32 %v3007_v49  ;;  %v9983_v32 = vld [vmem:[#allocation83_spill] sm:$0xff] }
 0x4c5   : > { %9975 = vst [vmem:[#allocation22_spill] sm:$0xff] %v8239_v60  ;;  %v8244_v19 = vpop.eup %5445  ;;  %v2791_v30 = vpop.xlane.xlu1 %2790  ;;  %4777 = vmatpush1.bf16.xpose.msra.mxu1 %v4776_v7 }
 0x4c6   : > { %9978 = vst [vmem:[#allocation41_spill] sm:$0xff] %v8244_v19  ;;  %v2854_v35 = vsub.f32 %v9979_v10, %v2791_v30  ;;  %v2855_v12 = vsub.f32 %v9980_v45, %v2791_v30  ;;  %v3004_v41 = vpop.xlane.xlu0 %3003  ;;  %v3065_v5 = vadd.f32 %v8244_v19, %v8239_v60  ;;  %5461 = vpow2.f32 %v2968_v48  ;;  %v5448_v63 = vpop.eup %5447  ;;  %v9984_v30 = vld [vmem:[#allocation97_spill] sm:$0xff]  ;;  %v9987_v45 = vld [vmem:[#allocation35_spill] sm:$0xff] }
 0x4c7   : > { %5463 = vpow2.f32 %v2970_v8  ;;  %v8250_v39 = vpop.eup %5449 }
 0x4c8   : > { %v2980_v9 = vmul.f32 1.442695, %v2854_v35  ;;  %v2982_v57 = vmul.f32 1.442695, %v2855_v12  ;;  %3066 = vadd.xlane.f32.xlu1 %v3065_v5  ;;  %9981 = vst [vmem:[#allocation16_spill] sm:$0xff] %v8250_v39  ;;  %5465 = vrcp.f32 %v3004_v41  ;;  %v8252_v49 = vpop.eup %5451  ;;  %v9986_v35 = vmax.f32 %v7958_v6, %v7960_v37  ;;  %v9988_v41 = vld [vmem:[#allocation59_spill] sm:$0xff] }
 0x4c9   : > { %v3013_v53 = vpop.xlane.xlu1 %3012  ;;  %9982 = vst [vmem:[#allocation19_spill] sm:$0xff] %v8252_v49  ;;  %v5454_v28 = vpop.eup %5453  ;;  %v3062_v48 = vadd.f32 %v8252_v49, %v8250_v39  ;;  %v3123_v5 = vmul.f32 %v5448_v63, %v9988_v41 }
 0x4ca   : > { %5467 = vpow2.f32 %v2980_v9  ;;  %v2788_v15 = vpop.xlane.xlu0 %2787  ;;  %v3121_v12 = vmul.f32 %v5454_v28, %v9987_v45  ;;  %v9989_v9 = vld [vmem:[#allocation34_spill] sm:$0xff] }
 0x4cb   : > { %5469 = vpow2.f32 %v2982_v57  ;;  %v2852_v7 = vsub.f32 %v9983_v32, %v2788_v15  ;;  %v2853_v10 = vsub.f32 %v9984_v30, %v2788_v15  ;;  %v3120_v60 = vmul.f32 %v5454_v28, %v9989_v9  ;;  %v9990_v57 = vld [vmem:[#allocation64_spill] sm:$0xff]  ;;  %3063 = vadd.xlane.f32.xlu0 %v3062_v48  ;;  %v9997_v48 = vld [vmem:[#allocation50_spill] sm:$0xff] }
 0x4cc   : > { %v8258_v8 = vpop.eup %5455  ;;  %3776 = vmax.xlane.f32.xlu1 %v9986_v35  ;;  %v3122_v19 = vmul.f32 %v5448_v63, %v9990_v57  ;;  %5471 = vrcp.f32 %v3013_v53  ;;  %v4778_v35 = vpack.c.bf16 %v3123_v5, %v3121_v12  ;;  %v10000_v57 = vld [vmem:[#allocation91_spill] sm:$0xff] }
 0x4cd   : > { %9985 = vst [vmem:[#allocation110_spill] sm:$0xff] %v8258_v8  ;;  %v8267_v32 = vpop.eup %5457  ;;  %v2976_v15 = vmul.f32 1.442695, %v2852_v7  ;;  %v2978_v30 = vmul.f32 1.442695, %v2853_v10  ;;  %v3723_v39 = vpop.xlane.xlu1 %3722 }
 0x4ce   : > { %9991 = vst [vmem:[#allocation3_spill] sm:$0xff] %v8267_v32  ;;  %v3816_v49 = vsub.f32 %v9858_v25, %v3723_v39  ;;  %v3817_v37 = vsub.f32 %v9859_v61, %v3723_v39  ;;  %v3010_v6 = vpop.xlane.xlu0 %3009  ;;  %v4780_v45 = vpack.c.bf16 %v3122_v19, %v3120_v60  ;;  %v3071_v28 = vadd.f32 %v8267_v32, %v8258_v8  ;;  %v5460_v41 = vpop.eup %5459  ;;  %v9994_v61 = vld [vmem:[#allocation113_spill] sm:$0xff]  ;;  %v9995_v60 = vld [vmem:[#allocation94_spill] sm:$0xff] }
 0x4cf   : > { %5473 = vpow2.f32 %v2976_v15  ;;  %4779 = vmatprep.subr.bf16.mxu1 %v4778_v35  ;;  %v9996_v19 = vmax.f32 %v9994_v61, %v9995_v60 }
 0x4d0   : > { %5475 = vpow2.f32 %v2978_v30  ;;  %v3882_v63 = vmul.f32 1.442695, %v3816_v49  ;;  %v3884_v9 = vmul.f32 1.442695, %v3817_v37  ;;  %v8273_v53 = vpop.eup %5461  ;;  %4781 = vmatpush1.bf16.xpose.msra.mxu1 %v4780_v45  ;;  %3072 = vadd.xlane.f32.xlu1 %v3071_v28  ;;  %v9998_v37 = vld [vmem:[#allocation4_spill] sm:$0xff] }
 0x4d1   : > { %9992 = vst [vmem:[#allocation66_spill] sm:$0xff] %v8273_v53  ;;  %5477 = vrcp.f32 %v3010_v6  ;;  %v3019_v25 = vpop.xlane.xlu1 %3018  ;;  %v8275_v7 = vpop.eup %5463  ;;  %3773 = vmax.xlane.f32.xlu0 %v9996_v19  ;;  %v10001_v30 = vld [vmem:[#allocation32_spill] sm:$0xff] }
 0x4d2   : > { %9993 = vst [vmem:[#allocation14_spill] sm:$0xff] %v8275_v7  ;;  %5479 = vpow2.f32 %v3882_v63  ;;  %v3720_v39 = vpop.xlane.xlu0 %3719  ;;  %v5466_v10 = vpop.eup %5465  ;;  %v3068_v6 = vadd.f32 %v8275_v7, %v8273_v53  ;;  %v3127_v35 = vmul.f32 %v5460_v41, %v10001_v30  ;;  %v10002_v45 = vld [vmem:[#allocation100_spill] sm:$0xff]  ;;  %v10003_v63 = vld [vmem:[#allocation70_spill] sm:$0xff] }
 0x4d3   : > { %5481 = vpow2.f32 %v3884_v9  ;;  %v3814_v49 = vsub.f32 %v9997_v48, %v3720_v39  ;;  %v3815_v12 = vsub.f32 %v9998_v37, %v3720_v39  ;;  %v3125_v15 = vmul.f32 %v5466_v10, %v10000_v57  ;;  %v10006_v57 = vld [vmem:[#allocation53_spill] sm:$0xff] }
 0x4d4   : > { %v8284_v5 = vpop.eup %5467  ;;  %v3124_v28 = vmul.f32 %v5466_v10, %v10002_v45  ;;  %v3126_v19 = vmul.f32 %v5460_v41, %v10003_v63  ;;  %5483 = vrcp.f32 %v3019_v25  ;;  %v10005_v39 = vmax.f32 %v7994_v33, %v7996_v26 }
 0x4d5   : > { %9999 = vst [vmem:[#allocation116_spill] sm:$0xff] %v8284_v5  ;;  %v8290_v8 = vpop.eup %5469  ;;  %v3878_v9 = vmul.f32 1.442695, %v3814_v49  ;;  %v3880_v48 = vmul.f32 1.442695, %v3815_v12  ;;  %v3729_v37 = vpop.xlane.xlu1 %3728  ;;  %3069 = vadd.xlane.f32.xlu0 %v3068_v6  ;;  %v4782_v30 = vpack.c.bf16 %v3127_v35, %v3125_v15  ;;  %v10009_v15 = vld [vmem:[#allocation29_spill] sm:$0xff] }
 0x4d6   : > { %10004 = vst [vmem:[#allocation112_spill] sm:$0xff] %v8290_v8  ;;  %3782 = vmax.xlane.f32.xlu1 %v10005_v39  ;;  %v3820_v53 = vsub.f32 %v9876_v50, %v3729_v37  ;;  %v3821_v32 = vsub.f32 %v10006_v57, %v3729_v37  ;;  %v3016_v7 = vpop.xlane.xlu0 %3015  ;;  %v4784_v10 = vpack.c.bf16 %v3126_v19, %v3124_v28  ;;  %v5472_v45 = vpop.eup %5471  ;;  %v10010_v35 = vld [vmem:[#allocation104_spill] sm:$0xff]  ;;  %v10015_v37 = vld [vmem:[#allocation114_spill] sm:$0xff] }
 0x4d7   : > { %5485 = vpow2.f32 %v3878_v9  ;;  %v3077_v41 = vadd.f32 %v8290_v8, %v8284_v5  ;;  %4783 = vmatprep.subr.bf16.mxu1 %v4782_v30  ;;  %v10011_v28 = vmax.f32 %v10009_v15, %v10010_v35  ;;  %v10012_v9 = vld [vmem:[#allocation120_spill] sm:$0xff]  ;;  %v10016_v30 = vld [vmem:[#allocation85_spill] sm:$0xff] }
 0x4d8   : > { %5487 = vpow2.f32 %v3880_v48  ;;  %v3890_v25 = vmul.f32 1.442695, %v3820_v53  ;;  %v3892_v49 = vmul.f32 1.442695, %v3821_v32  ;;  %4785 = vmatpush1.bf16.xpose.msra.mxu1 %v4784_v10  ;;  %v10013_v32 = vld [vmem:[#allocation15_spill] sm:$0xff]  ;;  %v3131_v10 = vmul.f32 %v5472_v45, %v10016_v30  ;;  %v10018_v5 = vld [vmem:[#allocation33_spill] sm:$0xff] }
 0x4d9   : > { %v8299_v12 = vpop.eup %5473  ;;  %5489 = vrcp.f32 %v3016_v7  ;;  %v3025_v50 = vpop.xlane.xlu1 %3024  ;;  %3779 = vmax.xlane.f32.xlu0 %v10011_v28  ;;  %v3130_v28 = vmul.f32 %v5472_v45, %v10018_v5 }
 0x4da   : > { %10007 = vst [vmem:[#allocation13_spill] sm:$0xff] %v8299_v12  ;;  %3078 = vadd.xlane.f32.xlu1 %v3077_v41  ;;  %v8301_v6 = vpop.eup %5475  ;;  %5491 = vpow2.f32 %v3890_v25  ;;  %v3726_v63 = vpop.xlane.xlu0 %3725  ;;  %v10017_v41 = vld [vmem:[#allocation89_spill] sm:$0xff] }
 0x4db   : > { %10008 = vst [vmem:[#allocation73_spill] sm:$0xff] %v8301_v6  ;;  %v5478_v19 = vpop.eup %5477  ;;  %5493 = vpow2.f32 %v3892_v49  ;;  %v3818_v53 = vsub.f32 %v10012_v9, %v3726_v63  ;;  %v3819_v48 = vsub.f32 %v10013_v32, %v3726_v63  ;;  %v3074_v7 = vadd.f32 %v8301_v6, %v8299_v12 }
 0x4dc   : > { %v8310_v39 = vpop.eup %5479  ;;  %v3129_v57 = vmul.f32 %v5478_v19, %v10015_v37  ;;  %v3128_v25 = vmul.f32 %v5478_v19, %v10017_v41  ;;  %5495 = vrcp.f32 %v3025_v50  ;;  %v10020_v63 = vmax.f32 %v8028_v56, %v8030_v42 }
 0x4dd   : > { %10014 = vst [vmem:[#allocation82_spill] sm:$0xff] %v8310_v39  ;;  %v8316_v8 = vpop.eup %5481  ;;  %v3886_v49 = vmul.f32 1.442695, %v3818_v53  ;;  %v3888_v9 = vmul.f32 1.442695, %v3819_v48  ;;  %v3735_v32 = vpop.xlane.xlu1 %3734  ;;  %3075 = vadd.xlane.f32.xlu0 %v3074_v7 }
 0x4de   : > { %10019 = vst [vmem:[#allocation118_spill] sm:$0xff] %v8316_v8  ;;  %3788 = vmax.xlane.f32.xlu1 %v10020_v63  ;;  %v3824_v12 = vsub.f32 %v9891_v36, %v3735_v32  ;;  %v3825_v37 = vsub.f32 %v9892_v40, %v3735_v32  ;;  %v4786_v30 = vpack.c.bf16 %v3131_v10, %v3129_v57  ;;  %v3022_v6 = vpop.xlane.xlu0 %3021  ;;  %v5484_v41 = vpop.eup %5483  ;;  %v10024_v10 = vld [vmem:[#allocation54_spill] sm:$0xff] }
 0x4df   : > { %v4788_v19 = vpack.c.bf16 %v3130_v28, %v3128_v25  ;;  %5497 = vpow2.f32 %v3886_v49  ;;  %v4009_v5 = vadd.f32 %v8316_v8, %v8310_v39  ;;  %v10023_v40 = vmax.f32 %v8006_v59, %v8013_v2  ;;  %v10026_v49 = vld [vmem:[#allocation30_spill] sm:$0xff] }
 0x4e0   : > { %5499 = vpow2.f32 %v3888_v9  ;;  %v3898_v45 = vmul.f32 1.442695, %v3824_v12  ;;  %v3900_v50 = vmul.f32 1.442695, %v3825_v37  ;;  %4787 = vmatprep.subr.bf16.mxu1 %v4786_v30  ;;  %v10027_v63 = vld [vmem:[#allocation46_spill] sm:$0xff]  ;;  %v10028_v37 = vld [vmem:[#allocation8_spill] sm:$0xff] }
 0x4e1   : > { %v8325_v53 = vpop.eup %5485  ;;  %5501 = vrcp.f32 %v3022_v6  ;;  %4789 = vmatpush1.bf16.xpose.msra.mxu1 %v4788_v19  ;;  %v3031_v36 = vpop.xlane.xlu1 %3030  ;;  %3785 = vmax.xlane.f32.xlu0 %v10023_v40  ;;  %v3135_v32 = vmul.f32 %v5484_v41, %v10027_v63  ;;  %v10029_v19 = vld [vmem:[#allocation39_spill] sm:$0xff] }
 0x4e2   : > { %10021 = vst [vmem:[#allocation57_spill] sm:$0xff] %v8325_v53  ;;  %4010 = vadd.xlane.f32.xlu1 %v4009_v5  ;;  %v8327_v48 = vpop.eup %5487  ;;  %5503 = vpow2.f32 %v3898_v45  ;;  %v3732_v7 = vpop.xlane.xlu0 %3731  ;;  %v3134_v5 = vmul.f32 %v5484_v41, %v10029_v19  ;;  %v10031_v40 = vld [vmem:[#allocation99_spill] sm:$0xff]  ;;  %v10040_v19 = vld [vmem:[#allocation105_spill] sm:$0xff] }
 0x4e3   : > { %10022 = vst [vmem:[#allocation101_spill] sm:$0xff] %v8327_v48  ;;  %v5490_v57 = vpop.eup %5489  ;;  %5505 = vpow2.f32 %v3900_v50  ;;  %v3822_v12 = vsub.f32 %v9897_v44, %v3732_v7  ;;  %v3823_v25 = vsub.f32 %v10024_v10, %v3732_v7  ;;  %v4006_v6 = vadd.f32 %v8327_v48, %v8325_v53  ;;  %v10032_v7 = vld [vmem:[#allocation9_spill] sm:$0xff]  ;;  %v10034_v53 = vld [vmem:[#allocation58_spill] sm:$0xff] }
 0x4e4   : > { %v8336_v28 = vpop.eup %5491  ;;  %v3133_v9 = vmul.f32 %v5490_v57, %v10026_v49  ;;  %v3132_v30 = vmul.f32 %v5490_v57, %v10028_v37  ;;  %5507 = vrcp.f32 %v3031_v36  ;;  %v10033_v10 = vmax.f32 %v10031_v40, %v10032_v7  ;;  %v10035_v49 = vld [vmem:[#allocation20_spill] sm:$0xff] }
 0x4e5   : > { %10025 = vst [vmem:[#allocation122_spill] sm:$0xff] %v8336_v28  ;;  %v8342_v45 = vpop.eup %5493  ;;  %v3894_v50 = vmul.f32 1.442695, %v3822_v12  ;;  %v3896_v44 = vmul.f32 1.442695, %v3823_v25  ;;  %v3741_v39 = vpop.xlane.xlu1 %3740  ;;  %4007 = vadd.xlane.f32.xlu0 %v4006_v6  ;;  %v10038_v6 = vld [vmem:[#allocation68_spill] sm:$0xff] }
 0x4e6   : > { %10030 = vst [vmem:[#allocation60_spill] sm:$0xff] %v8342_v45  ;;  %3794 = vmax.xlane.f32.xlu1 %v10033_v10  ;;  %v3828_v8 = vsub.f32 %v10034_v53, %v3741_v39  ;;  %v3829_v48 = vsub.f32 %v10035_v49, %v3741_v39  ;;  %v4790_v63 = vpack.c.bf16 %v3135_v32, %v3133_v9  ;;  %v3028_v2 = vpop.xlane.xlu0 %3027  ;;  %v5496_v37 = vpop.eup %5495  ;;  %v10037_v39 = vld [vmem:[#allocation31_spill] sm:$0xff]  ;;  %v10044_v49 = vld [vmem:[#allocation92_spill] sm:$0xff] }
 0x4e7   : > { %v4792_v57 = vpack.c.bf16 %v3134_v5, %v3132_v30  ;;  %5509 = vpow2.f32 %v3894_v50  ;;  %v4015_v41 = vadd.f32 %v8342_v45, %v8336_v28  ;;  %v10039_v9 = vmax.f32 %v10037_v39, %v10038_v6 }
 0x4e8   : > { %5511 = vpow2.f32 %v3896_v44  ;;  %v3906_v36 = vmul.f32 1.442695, %v3828_v8  ;;  %v3908_v12 = vmul.f32 1.442695, %v3829_v48  ;;  %4791 = vmatprep.subr.bf16.mxu1 %v4790_v63  ;;  %v10041_v8 = vld [vmem:[#allocation124_spill] sm:$0xff]  ;;  %v10043_v44 = vld [vmem:[#allocation11_spill] sm:$0xff]  ;;  %v3139_v63 = vmul.f32 %v5496_v37, %v10044_v49 }
 0x4e9   : > { %v8351_v25 = vpop.eup %5497  ;;  %5513 = vrcp.f32 %v3028_v2  ;;  %4793 = vmatpush1.bf16.xpose.msra.mxu1 %v4792_v57  ;;  %3791 = vmax.xlane.f32.xlu0 %v10039_v9  ;;  %v10045_v57 = vld [vmem:[#allocation88_spill] sm:$0xff] }
 0x4ea   : > { %10036 = vst [vmem:[#allocation47_spill] sm:$0xff] %v8351_v25  ;;  %4016 = vadd.xlane.f32.xlu1 %v4015_v41  ;;  %v8353_v53 = vpop.eup %5499  ;;  %5515 = vpow2.f32 %v3906_v36  ;;  %v3738_v32 = vpop.xlane.xlu0 %3737  ;;  %v10046_v36 = vld [vmem:[#allocation74_spill] sm:$0xff] }
 0x4eb   : > { %v5502_v30 = vpop.eup %5501  ;;  %5517 = vpow2.f32 %v3908_v12  ;;  %v3826_v5 = vsub.f32 %v10040_v19, %v3738_v32  ;;  %v3827_v48 = vsub.f32 %v10041_v8, %v3738_v32  ;;  %v4012_v50 = vadd.f32 %v8353_v53, %v8351_v25 }
 0x4ec   : > { %v8362_v2 = vpop.eup %5503  ;;  %v3137_v10 = vmul.f32 %v5502_v30, %v10043_v44  ;;  %v3136_v41 = vmul.f32 %v5502_v30, %v10045_v57  ;;  %v3138_v9 = vmul.f32 %v5496_v37, %v10046_v36  ;;  %v10048_v32 = vmax.f32 %v8069_v29, %v8071_v13  ;;  %v10055_v57 = vld [vmem:[#allocation52_spill] sm:$0xff] }
 0x4ed   : > { %10042 = vst [vmem:[#allocation62_spill] sm:$0xff] %v8362_v2  ;;  %v8368_v28 = vpop.eup %5505  ;;  %v3902_v12 = vmul.f32 1.442695, %v3826_v5  ;;  %v3904_v45 = vmul.f32 1.442695, %v3827_v48  ;;  %4013 = vadd.xlane.f32.xlu0 %v4012_v50  ;;  %v10051_v5 = vld [vmem:[#allocation17_spill] sm:$0xff] }
 0x4ee   : > { %10047 = vst [vmem:[#allocation49_spill] sm:$0xff] %v8368_v28  ;;  %3800 = vmax.xlane.f32.xlu1 %v10048_v32  ;;  %v4794_v19 = vpack.c.bf16 %v3139_v63, %v3137_v10  ;;  %v4796_v8 = vpack.c.bf16 %v3138_v9, %v3136_v41  ;;  %v4021_v44 = vadd.f32 %v8368_v28, %v8362_v2  ;;  %v5508_v25 = vpop.eup %5507  ;;  %v10052_v48 = vld [vmem:[#allocation18_spill] sm:$0xff]  ;;  %v10057_v9 = vld [vmem:[#allocation103_spill] sm:$0xff]  ;;  %v10058_v32 = vld [vmem:[#allocation40_spill] sm:$0xff] }
 0x4ef   : > { %5519 = vpow2.f32 %v3902_v12  ;;  %v10053_v49 = vmax.f32 %v10051_v5, %v10052_v48  ;;  %v10056_v41 = vld [vmem:[#allocation2_spill] sm:$0xff] }
 0x4f0   : > { %5521 = vpow2.f32 %v3904_v45  ;;  %4795 = vmatprep.subr.bf16.mxu1 %v4794_v19  ;;  %v3143_v36 = vmul.f32 %v5508_v25, %v10056_v41  ;;  %v3142_v19 = vmul.f32 %v5508_v25, %v10058_v32  ;;  %v4439_v41 = vld [vmem:[%s7316_s23 + $0x58] sm:$0xff]  ;;  %v4438_v25 = vld [vmem:[%s7316_s23 + $0x50] sm:$0xff]  ;;  %v10063_v32 = vld [vmem:[#allocation90_spill] sm:$0xff] }
 0x4f1   : > { %v8375_v30 = vpop.eup %5509  ;;  %4797 = vmatpush1.bf16.xpose.msra.mxu1 %v4796_v8  ;;  %3797 = vmax.xlane.f32.xlu0 %v10053_v49 }
 0x4f2   : > { %10049 = vst [vmem:[#allocation108_spill] sm:$0xff] %v8375_v30  ;;  %4022 = vadd.xlane.f32.xlu1 %v4021_v44  ;;  %v8377_v37 = vpop.eup %5511  ;;  %v10060_v44 = vmax.f32 %v8083_v46, %v8085_v17  ;;  %2224 = vmatprep.mubr.f32.mxu1 %v4439_v41  ;;  %v4501_v41 = vld [vmem:[%s7316_s23 + $0x88] sm:$0xff] }
 0x4f3   : > { %10050 = vst [vmem:[#allocation43_spill] sm:$0xff] %v8377_v37  ;;  %v5514_v50 = vpop.eup %5513  ;;  %v4018_v10 = vadd.f32 %v8377_v37, %v8375_v30  ;;  %2225 = vmatmul.mubr.f32.gmra.mrb[10].mxu1 %v4438_v25  ;;  %v10070_v30 = vld [vmem:[#allocation56_spill] sm:$0xff] }
 0x4f4   : > { %v8384_v63 = vpop.eup %5515  ;;  %v3141_v45 = vmul.f32 %v5514_v50, %v10055_v57  ;;  %v3140_v12 = vmul.f32 %v5514_v50, %v10057_v9 }
 0x4f5   : > { %10054 = vst [vmem:[#allocation55_spill] sm:$0xff] %v8384_v63  ;;  %v8390_v8 = vpop.eup %5517  ;;  %4019 = vadd.xlane.f32.xlu0 %v4018_v10 }
 0x4f6   : > { %10059 = vst [vmem:[#allocation6_spill] sm:$0xff] %v8390_v8  ;;  %3806 = vmax.xlane.f32.xlu1 %v10060_v44  ;;  %v4798_v49 = vpack.c.bf16 %v3143_v36, %v3141_v45  ;;  %v4800_v2 = vpack.c.bf16 %v3142_v19, %v3140_v12  ;;  %v4027_v57 = vadd.f32 %v8390_v8, %v8384_v63  ;;  %v10064_v44 = vld [vmem:[#allocation37_spill] sm:$0xff]  ;;  %v4441_v36 = vld [vmem:[%s7316_s23 + $0x68] sm:$0xff]  ;;  %v10066_v12 = vld [vmem:[#allocation36_spill] sm:$0xff] }
 0x4f7   : > { %v10065_v10 = vmax.f32 %v10063_v32, %v10064_v44  ;;  %v10067_v19 = vld [vmem:[#allocation117_spill] sm:$0xff]  ;;  %2230 = vmatprep.mubr.f32.mxu1 %v4441_v36  ;;  %v4442_v63 = vld [vmem:[%s7316_s23 + $0x70] sm:$0xff]  ;;  %v10069_v8 = vld [vmem:[#allocation106_spill] sm:$0xff] }
 0x4f8   : > { %4799 = vmatprep.subr.bf16.mxu1 %v4798_v49  ;;  %v10068_v49 = vmax.f32 %v10066_v12, %v10067_v19 }
 0x4f9   : > { %v8398_v50 = vpop.eup %5519  ;;  %4801 = vmatpush1.bf16.xpose.msra.mxu1 %v4800_v2  ;;  %3803 = vmax.xlane.f32.xlu0 %v10065_v10  ;;  %v4440_v2 = vld [vmem:[%s7316_s23 + $0x60] sm:$0xff]  ;;  %v10071_v10 = vmax.f32 %v10069_v8, %v10070_v30 }
 0x4fa   : > { %10061 = vst [vmem:[#allocation78_spill] sm:$0xff] %v8398_v50  ;;  %4028 = vadd.xlane.f32.xlu1 %v4027_v57  ;;  %v8401_v9 = vpop.eup %5521  ;;  %2231 = vmatmul.mubr.f32.gmra.mrb[12].mxu1 %v4440_v2  ;;  %v4443_v57 = vld [vmem:[%s7316_s23 + $0x78] sm:$0xff] }
 0x4fb   : > { %10062 = vst [vmem:[#allocation38_spill] sm:$0xff] %v8401_v9  ;;  %v4024_v45 = vadd.f32 %v8401_v9, %v8398_v50  ;;  %2236 = vmatprep.mubr.f32.mxu1 %v4443_v57 }
 0x4fd   : > { %4025 = vadd.xlane.f32.xlu0 %v4024_v45 }
 0x4fe   : > { %3812 = vmax.xlane.f32.xlu1 %v10068_v49  ;;  %2237 = vmatmul.mubr.f32.gmra.mrb[14].mxu1 %v4442_v63 }
 0x4ff   : > { %3240 = vmatprep.mubr.f32.mxu1 %v4501_v41 }
 0x501   : > { %3809 = vmax.xlane.f32.xlu0 %v10071_v10 }
 0x503   : > { %v3034_v50 = vpop.xlane.xlu0 %3033 }
 0x504   : > { %5523 = vrcp.f32 %v3034_v50 }
 0x507   : > { %v3744_v25 = vpop.xlane.xlu0 %3743 }
 0x508   : > { %v3830_v9 = vsub.f32 %v9919_v4, %v3744_v25  ;;  %v3831_v49 = vsub.f32 %v9920_v27, %v3744_v25  ;;  %v1199_v4 = vpop.f32.mrb[0].mxu1  ;;  %v10074_v25 = vld [vmem:[#allocation75_spill] sm:$0xff] }
 0x509   : > { %1222 = vst [vmem:[%s8427_s26] sm:$0xff] %v1199_v4 }
 0x50a   : > { %v3910_v36 = vmul.f32 1.442695, %v3830_v9  ;;  %v3912_v45 = vmul.f32 1.442695, %v3831_v49  ;;  %v1201_v9 = vpop.f32.mrb[1].mxu1 }
 0x50b   : > { %v3037_v2 = vpop.xlane.xlu1 %3036  ;;  %1223 = vst [vmem:[%s8427_s26 + $0x8] sm:$0xff] %v1201_v9 }
 0x50c   : > { %5525 = vpow2.f32 %v3910_v36 }
 0x50d   : > { %5527 = vpow2.f32 %v3912_v45  ;;  %v10075_v45 = vld [vmem:[#allocation119_spill] sm:$0xff] }
 0x50e   : > { %5529 = vrcp.f32 %v3037_v2  ;;  %v5524_v37 = vpop.eup %5523 }
 0x50f   : > { %v3747_v57 = vpop.xlane.xlu1 %3746  ;;  %v3145_v49 = vmul.f32 %v5524_v37, %v10074_v25  ;;  %v3144_v2 = vmul.f32 %v5524_v37, %v10075_v45 }
 0x510   : > { %v3832_v10 = vsub.f32 %v9922_v20, %v3747_v57  ;;  %v3833_v63 = vsub.f32 %v9923_v3, %v3747_v57 }
 0x512   : > { %v3914_v28 = vmul.f32 1.442695, %v3832_v10  ;;  %v3916_v41 = vmul.f32 1.442695, %v3833_v63 }
 0x514   : > { %5531 = vpow2.f32 %v3914_v28 }
 0x515   : > { %5533 = vpow2.f32 %v3916_v41 }
 0x516   : > { %v8429_v27 = vpop.eup %5525 }
 0x517   : > { %10072 = vst [vmem:[#allocation87_spill] sm:$0xff] %v8429_v27  ;;  %v8432_v50 = vpop.eup %5527  ;;  %v3040_v3 = vpop.xlane.xlu0 %3039 }
 0x518   : > { %10073 = vst [vmem:[#allocation109_spill] sm:$0xff] %v8432_v50  ;;  %v5530_v20 = vpop.eup %5529  ;;  %v4030_v28 = vadd.f32 %v8432_v50, %v8429_v27  ;;  %5535 = vrcp.f32 %v3040_v3 }
 0x519   : > { %v3147_v36 = vmul.f32 %v5530_v20, %v8120_v22  ;;  %v3146_v57 = vmul.f32 %v5530_v20, %v8115_v21 }
 0x51a   : > { %4031 = vadd.xlane.f32.xlu0 %v4030_v28 }
 0x51b   : > { %v3043_v10 = vpop.xlane.xlu1 %3042  ;;  %v4802_v63 = vpack.c.bf16 %v3147_v36, %v3145_v49  ;;  %v4804_v41 = vpack.c.bf16 %v3146_v57, %v3144_v2  ;;  %v3750_v4 = vpop.xlane.xlu0 %3749 }
 0x51c   : > { %5537 = vrcp.f32 %v3043_v10  ;;  %v3834_v27 = vsub.f32 %v9925_v55, %v3750_v4  ;;  %v3835_v50 = vsub.f32 %v9926_v11, %v3750_v4 }
 0x51d   : > { %4803 = vmatprep.subr.bf16.mxu1 %v4802_v63 }
 0x51e   : > { %v8443_v25 = vpop.eup %5531  ;;  %4805 = vmatpush1.bf16.xpose.msra.mxu1 %v4804_v41  ;;  %v3918_v37 = vmul.f32 1.442695, %v3834_v27  ;;  %v3920_v21 = vmul.f32 1.442695, %v3835_v50 }
 0x51f   : > { %v8445_v22 = vpop.eup %5533  ;;  %v3753_v20 = vpop.xlane.xlu1 %3752 }
 0x520   : > { %v3836_v3 = vsub.f32 %v9928_v51, %v3753_v20  ;;  %v3837_v28 = vsub.f32 %v9929_v34, %v3753_v20  ;;  %v4033_v9 = vadd.f32 %v8445_v22, %v8443_v25  ;;  %5539 = vpow2.f32 %v3918_v37 }
 0x521   : > { %5541 = vpow2.f32 %v3920_v21 }
 0x522   : > { %v3922_v55 = vmul.f32 1.442695, %v3836_v3  ;;  %v3924_v49 = vmul.f32 1.442695, %v3837_v28  ;;  %4034 = vadd.xlane.f32.xlu1 %v4033_v9  ;;  %v5536_v11 = vpop.eup %5535 }
 0x523   : > { %v3149_v27 = vmul.f32 %v5536_v11, %v8135_v43  ;;  %v3148_v51 = vmul.f32 %v5536_v11, %v8133_v38 }
 0x524   : > { %5543 = vpow2.f32 %v3922_v55 }
 0x525   : > { %5545 = vpow2.f32 %v3924_v49 }
 0x526   : > { %v5538_v36 = vpop.eup %5537 }
 0x527   : > { %v3151_v50 = vmul.f32 %v5538_v36, %v8143_v54  ;;  %v3150_v34 = vmul.f32 %v5538_v36, %v8141_v58  ;;  %v3046_v45 = vpop.xlane.xlu0 %3045  ;;  %v10076_v36 = vld [vmem:[#allocation26_spill] sm:$0xff] }
 0x528   : > { %5547 = vrcp.f32 %v3046_v45  ;;  %v10079_v45 = vld [vmem:[#allocation51_spill] sm:$0xff] }
 0x529   : > { %v4806_v2 = vpack.c.bf16 %v3151_v50, %v3149_v27  ;;  %v4808_v57 = vpack.c.bf16 %v3150_v34, %v3148_v51  ;;  %v10077_v50 = vld [vmem:[#allocation121_spill] sm:$0xff] }
 0x52a   : > { %v8455_v10 = vpop.eup %5539  ;;  %v10078_v34 = vld [vmem:[#allocation25_spill] sm:$0xff] }
 0x52b   : > { %4807 = vmatprep.subr.bf16.mxu1 %v4806_v2  ;;  %v8457_v41 = vpop.eup %5541  ;;  %v3756_v4 = vpop.xlane.xlu0 %3755 }
 0x52c   : > { %v3049_v63 = vpop.xlane.xlu1 %3048  ;;  %4809 = vmatpush1.bf16.xpose.msra.mxu1 %v4808_v57  ;;  %v3838_v43 = vsub.f32 %v9939_v24, %v3756_v4  ;;  %v3839_v54 = vsub.f32 %v9940_v0, %v3756_v4  ;;  %v4036_v38 = vadd.f32 %v8457_v41, %v8455_v10 }
 0x52d   : > { %5549 = vrcp.f32 %v3049_v63 }
 0x52e   : > { %v8463_v58 = vpop.eup %5543  ;;  %v3926_v21 = vmul.f32 1.442695, %v3838_v43  ;;  %v3928_v20 = vmul.f32 1.442695, %v3839_v54  ;;  %4037 = vadd.xlane.f32.xlu0 %v4036_v38 }
 0x52f   : > { %v8465_v37 = vpop.eup %5545 }
 0x530   : > { %v3759_v3 = vpop.xlane.xlu1 %3758  ;;  %v4039_v24 = vadd.f32 %v8465_v37, %v8463_v58  ;;  %5551 = vpow2.f32 %v3926_v21 }
 0x531   : > { %v3840_v28 = vsub.f32 %v9942_v31, %v3759_v3  ;;  %v3841_v9 = vsub.f32 %v9943_v18, %v3759_v3  ;;  %5553 = vpow2.f32 %v3928_v20 }
 0x532   : > { %4040 = vadd.xlane.f32.xlu1 %v4039_v24  ;;  %v5548_v49 = vpop.eup %5547 }
 0x533   : > { %v3930_v0 = vmul.f32 1.442695, %v3840_v28  ;;  %v3932_v55 = vmul.f32 1.442695, %v3841_v9  ;;  %v3153_v27 = vmul.f32 %v5548_v49, %v10076_v36  ;;  %v3152_v31 = vmul.f32 %v5548_v49, %v10078_v34  ;;  %v10080_v49 = vld [vmem:[#allocation77_spill] sm:$0xff] }
 0x534   : > { %v10081_v36 = vld [vmem:[#allocation65_spill] sm:$0xff] }
 0x535   : > { %5555 = vpow2.f32 %v3930_v0 }
 0x536   : > { %5557 = vpow2.f32 %v3932_v55 }
 0x537   : > { %v5550_v11 = vpop.eup %5549 }
 0x538   : > { %v3155_v51 = vmul.f32 %v5550_v11, %v10077_v50  ;;  %v3154_v18 = vmul.f32 %v5550_v11, %v10079_v45 }
 0x539   : > { %v3052_v2 = vpop.xlane.xlu0 %3051 }
 0x53a   : > { %v4810_v57 = vpack.c.bf16 %v3155_v51, %v3153_v27  ;;  %v4812_v63 = vpack.c.bf16 %v3154_v18, %v3152_v31  ;;  %5559 = vrcp.f32 %v3052_v2  ;;  %v8475_v4 = vpop.eup %5551  ;;  %v10082_v31 = vld [vmem:[#allocation24_spill] sm:$0xff] }
 0x53b   : > { %v8477_v54 = vpop.eup %5553  ;;  %v10083_v18 = vld [vmem:[#allocation28_spill] sm:$0xff] }
 0x53c   : > { %v3055_v43 = vpop.xlane.xlu1 %3054  ;;  %4811 = vmatprep.subr.bf16.mxu1 %v4810_v57  ;;  %v4042_v3 = vadd.f32 %v8477_v54, %v8475_v4  ;;  %v10084_v57 = vld [vmem:[#allocation96_spill] sm:$0xff] }
 0x53d   : > { %5561 = vrcp.f32 %v3055_v43  ;;  %v3762_v38 = vpop.xlane.xlu0 %3761  ;;  %4813 = vmatpush1.bf16.xpose.msra.mxu1 %v4812_v63  ;;  %v10085_v43 = vld [vmem:[#allocation123_spill] sm:$0xff] }
 0x53e   : > { %v3842_v21 = vsub.f32 %v9953_v14, %v3762_v38  ;;  %v3843_v20 = vsub.f32 %v9954_v16, %v3762_v38  ;;  %4043 = vadd.xlane.f32.xlu0 %v4042_v3 }
 0x53f   : > { %v8483_v28 = vpop.eup %5555 }
 0x540   : > { %v8485_v9 = vpop.eup %5557  ;;  %v3934_v24 = vmul.f32 1.442695, %v3842_v21  ;;  %v3936_v0 = vmul.f32 1.442695, %v3843_v20  ;;  %v3765_v55 = vpop.xlane.xlu1 %3764 }
 0x541   : > { %v3844_v11 = vsub.f32 %v10080_v49, %v3765_v55  ;;  %v3845_v27 = vsub.f32 %v10081_v36, %v3765_v55  ;;  %v4045_v14 = vadd.f32 %v8485_v9, %v8483_v28 }
 0x542   : > { %5563 = vpow2.f32 %v3934_v24 }
 0x543   : > { %5565 = vpow2.f32 %v3936_v0  ;;  %v3938_v16 = vmul.f32 1.442695, %v3844_v11  ;;  %v3940_v50 = vmul.f32 1.442695, %v3845_v27  ;;  %4046 = vadd.xlane.f32.xlu1 %v4045_v14 }
 0x544   : > { %v5560_v51 = vpop.eup %5559 }
 0x545   : > { %5567 = vpow2.f32 %v3938_v16  ;;  %v3157_v45 = vmul.f32 %v5560_v51, %v10082_v31  ;;  %v3156_v63 = vmul.f32 %v5560_v51, %v10084_v57 }
 0x546   : > { %5569 = vpow2.f32 %v3940_v50 }
 0x547   : > { %v5562_v34 = vpop.eup %5561 }
 0x548   : > { %v3159_v2 = vmul.f32 %v5562_v34, %v10083_v18  ;;  %v3158_v38 = vmul.f32 %v5562_v34, %v10085_v43 }
 0x549   : > { %v3058_v21 = vpop.xlane.xlu0 %3057 }
 0x54a   : > { %5571 = vrcp.f32 %v3058_v21  ;;  %v4814_v20 = vpack.c.bf16 %v3159_v2, %v3157_v45  ;;  %v4816_v3 = vpack.c.bf16 %v3158_v38, %v3156_v63 }
 0x54c   : > { %v8495_v24 = vpop.eup %5563  ;;  %v3061_v0 = vpop.xlane.xlu1 %3060  ;;  %4815 = vmatprep.subr.bf16.mxu1 %v4814_v20 }
 0x54d   : > { %v8497_v55 = vpop.eup %5565  ;;  %5573 = vrcp.f32 %v3061_v0  ;;  %v3768_v49 = vpop.xlane.xlu0 %3767  ;;  %4817 = vmatpush1.bf16.xpose.msra.mxu1 %v4816_v3  ;;  %v10088_v3 = vld [vmem:[#allocation107_spill] sm:$0xff] }
 0x54e   : > { %v3846_v11 = vsub.f32 %v7886_v1, %v3768_v49  ;;  %v3847_v36 = vsub.f32 %v7896_v52, %v3768_v49  ;;  %v4048_v27 = vadd.f32 %v8497_v55, %v8495_v24  ;;  %v10089_v49 = vld [vmem:[#allocation7_spill] sm:$0xff] }
 0x54f   : > { %v8503_v14 = vpop.eup %5567 }
 0x550   : > { %v8505_v16 = vpop.eup %5569  ;;  %v3942_v50 = vmul.f32 1.442695, %v3846_v11  ;;  %v3944_v51 = vmul.f32 1.442695, %v3847_v36  ;;  %4049 = vadd.xlane.f32.xlu0 %v4048_v27  ;;  %v3771_v34 = vpop.xlane.xlu1 %3770  ;;  %v10090_v36 = vld [vmem:[#allocation93_spill] sm:$0xff] }
 0x551   : > { %v3848_v31 = vsub.f32 %v7915_v23, %v3771_v34  ;;  %v3849_v45 = vsub.f32 %v9976_v47, %v3771_v34  ;;  %v4051_v1 = vadd.f32 %v8505_v16, %v8503_v14  ;;  %v10086_v23 = vld [vmem:[#allocation102_spill] sm:$0xff]  ;;  %v10087_v47 = vld [vmem:[#allocation115_spill] sm:$0xff] }
 0x552   : > { %5575 = vpow2.f32 %v3942_v50 }
 0x553   : > { %5577 = vpow2.f32 %v3944_v51  ;;  %v3946_v52 = vmul.f32 1.442695, %v3848_v31  ;;  %v3948_v18 = vmul.f32 1.442695, %v3849_v45  ;;  %4052 = vadd.xlane.f32.xlu1 %v4051_v1 }
 0x554   : > { %v5572_v2 = vpop.eup %5571 }
 0x555   : > { %v3067_v57 = vpop.xlane.xlu1 %3066  ;;  %5579 = vpow2.f32 %v3946_v52  ;;  %v3161_v43 = vmul.f32 %v5572_v2, %v8216_v62  ;;  %v3160_v20 = vmul.f32 %v5572_v2, %v10087_v47 }
 0x556   : > { %5581 = vpow2.f32 %v3948_v18 }
 0x557   : > { %v5574_v63 = vpop.eup %5573  ;;  %5583 = vrcp.f32 %v3067_v57 }
 0x558   : > { %v3163_v21 = vmul.f32 %v5574_v63, %v10086_v23  ;;  %v3162_v0 = vmul.f32 %v5574_v63, %v10088_v3  ;;  %v3064_v50 = vpop.xlane.xlu0 %3063 }
 0x559   : > { %v3777_v38 = vpop.xlane.xlu1 %3776  ;;  %5585 = vrcp.f32 %v3064_v50  ;;  %v10091_v50 = vld [vmem:[#allocation19_spill] sm:$0xff] }
 0x55a   : > { %v3852_v11 = vsub.f32 %v10089_v49, %v3777_v38  ;;  %v3853_v27 = vsub.f32 %v10090_v36, %v3777_v38  ;;  %v4818_v51 = vpack.c.bf16 %v3163_v21, %v3161_v43  ;;  %v4820_v34 = vpack.c.bf16 %v3162_v0, %v3160_v20 }
 0x55c   : > { %v3954_v31 = vmul.f32 1.442695, %v3852_v11  ;;  %v3956_v45 = vmul.f32 1.442695, %v3853_v27  ;;  %v8517_v1 = vpop.eup %5575  ;;  %4819 = vmatprep.subr.bf16.mxu1 %v4818_v51 }
 0x55d   : > { %v8519_v62 = vpop.eup %5577  ;;  %v3073_v52 = vpop.xlane.xlu1 %3072  ;;  %4821 = vmatpush1.bf16.xpose.msra.mxu1 %v4820_v34  ;;  %v10092_v34 = vld [vmem:[#allocation41_spill] sm:$0xff] }
 0x55e   : > { %5587 = vpow2.f32 %v3954_v31  ;;  %v3774_v18 = vpop.xlane.xlu0 %3773  ;;  %v4054_v2 = vadd.f32 %v8519_v62, %v8517_v1 }
 0x55f   : > { %5589 = vpow2.f32 %v3956_v45  ;;  %v8523_v57 = vpop.eup %5579  ;;  %v3850_v63 = vsub.f32 %v9994_v61, %v3774_v18  ;;  %v3851_v43 = vsub.f32 %v9995_v60, %v3774_v18  ;;  %v10093_v45 = vld [vmem:[#allocation16_spill] sm:$0xff] }
 0x560   : > { %v8527_v38 = vpop.eup %5581  ;;  %4055 = vadd.xlane.f32.xlu0 %v4054_v2  ;;  %5591 = vrcp.f32 %v3073_v52 }
 0x561   : > { %v3950_v23 = vmul.f32 1.442695, %v3850_v63  ;;  %v3952_v21 = vmul.f32 1.442695, %v3851_v43  ;;  %v4057_v20 = vadd.f32 %v8527_v38, %v8523_v57  ;;  %v5584_v3 = vpop.eup %5583 }
 0x562   : > { %v3070_v11 = vpop.xlane.xlu0 %3069  ;;  %v3167_v31 = vmul.f32 %v5584_v3, %v10092_v34 }
 0x563   : > { %v3783_v47 = vpop.xlane.xlu1 %3782  ;;  %5593 = vpow2.f32 %v3950_v23  ;;  %4058 = vadd.xlane.f32.xlu1 %v4057_v20  ;;  %v5586_v61 = vpop.eup %5585 }
 0x564   : > { %v3856_v0 = vsub.f32 %v7994_v33, %v3783_v47  ;;  %v3857_v49 = vsub.f32 %v7996_v26, %v3783_v47  ;;  %5595 = vpow2.f32 %v3952_v21  ;;  %v3165_v51 = vmul.f32 %v5586_v61, %v10091_v50  ;;  %v10094_v33 = vld [vmem:[#allocation22_spill] sm:$0xff] }
 0x565   : > { %5597 = vrcp.f32 %v3070_v11  ;;  %v3164_v18 = vmul.f32 %v5586_v61, %v10093_v45  ;;  %v3166_v2 = vmul.f32 %v5584_v3, %v10094_v33  ;;  %v10096_v33 = vld [vmem:[#allocation14_spill] sm:$0xff] }
 0x566   : > { %v3962_v60 = vmul.f32 1.442695, %v3856_v0  ;;  %v3964_v36 = vmul.f32 1.442695, %v3857_v49  ;;  %v3780_v52 = vpop.xlane.xlu0 %3779  ;;  %v4822_v23 = vpack.c.bf16 %v3167_v31, %v3165_v51 }
 0x567   : > { %v3079_v27 = vpop.xlane.xlu1 %3078  ;;  %v3854_v63 = vsub.f32 %v10009_v15, %v3780_v52  ;;  %v3855_v43 = vsub.f32 %v10010_v35, %v3780_v52  ;;  %v4824_v47 = vpack.c.bf16 %v3166_v2, %v3164_v18 }
 0x568   : > { %5599 = vpow2.f32 %v3962_v60  ;;  %v8537_v26 = vpop.eup %5587  ;;  %4823 = vmatprep.subr.bf16.mxu1 %v4822_v23  ;;  %v10098_v23 = vld [vmem:[#allocation66_spill] sm:$0xff] }
 0x569   : > { %5601 = vpow2.f32 %v3964_v36  ;;  %v8541_v21 = vpop.eup %5589  ;;  %v3958_v20 = vmul.f32 1.442695, %v3854_v63  ;;  %v3960_v0 = vmul.f32 1.442695, %v3855_v43  ;;  %4825 = vmatpush1.bf16.xpose.msra.mxu1 %v4824_v47  ;;  %v10097_v63 = vld [vmem:[#allocation3_spill] sm:$0xff] }
 0x56a   : > { %v4063_v11 = vadd.f32 %v8541_v21, %v8537_v26  ;;  %5603 = vrcp.f32 %v3079_v27  ;;  %v3076_v60 = vpop.xlane.xlu0 %3075  ;;  %v5592_v15 = vpop.eup %5591 }
 0x56b   : > { %v3789_v49 = vpop.xlane.xlu1 %3788  ;;  %5605 = vpow2.f32 %v3958_v20  ;;  %v3171_v43 = vmul.f32 %v5592_v15, %v10097_v63  ;;  %v10099_v20 = vld [vmem:[#allocation110_spill] sm:$0xff] }
 0x56c   : > { %v3860_v3 = vsub.f32 %v8028_v56, %v3789_v49  ;;  %v3861_v61 = vsub.f32 %v8030_v42, %v3789_v49  ;;  %4064 = vadd.xlane.f32.xlu1 %v4063_v11  ;;  %5607 = vpow2.f32 %v3960_v0  ;;  %v10095_v42 = vld [vmem:[#allocation12_spill] sm:$0xff]  ;;  %v3170_v0 = vmul.f32 %v5592_v15, %v10099_v20 }
 0x56d   : > { %v8547_v50 = vpop.eup %5593  ;;  %5609 = vrcp.f32 %v3076_v60  ;;  %v10101_v20 = vld [vmem:[#allocation112_spill] sm:$0xff] }
 0x56e   : > { %v3970_v35 = vmul.f32 1.442695, %v3860_v3  ;;  %v3972_v36 = vmul.f32 1.442695, %v3861_v61  ;;  %v8549_v34 = vpop.eup %5595  ;;  %v3786_v27 = vpop.xlane.xlu0 %3785 }
 0x56f   : > { %v4011_v51 = vpop.xlane.xlu1 %4010  ;;  %v5598_v31 = vpop.eup %5597  ;;  %v3858_v56 = vsub.f32 %v8006_v59, %v3786_v27  ;;  %v3859_v45 = vsub.f32 %v10095_v42, %v3786_v27  ;;  %v4060_v18 = vadd.f32 %v8549_v34, %v8547_v50 }
 0x570   : > { %5611 = vpow2.f32 %v3970_v35  ;;  %v3169_v2 = vmul.f32 %v5598_v31, %v10096_v33  ;;  %v3168_v47 = vmul.f32 %v5598_v31, %v10098_v23  ;;  %v10100_v23 = vld [vmem:[#allocation73_spill] sm:$0xff] }
 0x571   : > { %5613 = vpow2.f32 %v3972_v36  ;;  %v3966_v11 = vmul.f32 1.442695, %v3858_v56  ;;  %v3968_v59 = vmul.f32 1.442695, %v3859_v45  ;;  %4061 = vadd.xlane.f32.xlu0 %v4060_v18 }
 0x572   : > { %v8555_v52 = vpop.eup %5599  ;;  %5615 = vrcp.f32 %v4011_v51  ;;  %v4826_v35 = vpack.c.bf16 %v3171_v43, %v3169_v2  ;;  %v4008_v36 = vpop.xlane.xlu0 %4007  ;;  %v4828_v27 = vpack.c.bf16 %v3170_v0, %v3168_v47 }
 0x573   : > { %v8561_v49 = vpop.eup %5601  ;;  %v3795_v3 = vpop.xlane.xlu1 %3794  ;;  %5617 = vpow2.f32 %v3966_v11  ;;  %v10102_v11 = vld [vmem:[#allocation13_spill] sm:$0xff] }
 0x574   : > { %v3864_v61 = vsub.f32 %v10031_v40, %v3795_v3  ;;  %v3865_v60 = vsub.f32 %v10032_v7, %v3795_v3  ;;  %v4069_v31 = vadd.f32 %v8561_v49, %v8555_v52  ;;  %v5604_v42 = vpop.eup %5603  ;;  %5619 = vpow2.f32 %v3968_v59  ;;  %4827 = vmatprep.subr.bf16.mxu1 %v4826_v35  ;;  %v10103_v3 = vld [vmem:[#allocation116_spill] sm:$0xff] }
 0x575   : > { %v8567_v51 = vpop.eup %5605  ;;  %5621 = vrcp.f32 %v4008_v36  ;;  %4829 = vmatpush1.bf16.xpose.msra.mxu1 %v4828_v27  ;;  %v3175_v0 = vmul.f32 %v5604_v42, %v10101_v20 }
 0x576   : > { %v3978_v15 = vmul.f32 1.442695, %v3864_v61  ;;  %v3980_v33 = vmul.f32 1.442695, %v3865_v60  ;;  %4070 = vadd.xlane.f32.xlu1 %v4069_v31  ;;  %v8569_v56 = vpop.eup %5607  ;;  %v3792_v7 = vpop.xlane.xlu0 %3791  ;;  %v3174_v61 = vmul.f32 %v5604_v42, %v10103_v3  ;;  %v10105_v3 = vld [vmem:[#allocation118_spill] sm:$0xff] }
 0x577   : > { %v4017_v40 = vpop.xlane.xlu1 %4016  ;;  %v5610_v45 = vpop.eup %5609  ;;  %v3862_v18 = vsub.f32 %v10037_v39, %v3792_v7  ;;  %v3863_v2 = vsub.f32 %v10038_v6, %v3792_v7  ;;  %v4066_v63 = vadd.f32 %v8569_v56, %v8567_v51 }
 0x578   : > { %5623 = vpow2.f32 %v3978_v15  ;;  %v3173_v47 = vmul.f32 %v5610_v45, %v10100_v23  ;;  %v3172_v59 = vmul.f32 %v5610_v45, %v10102_v11  ;;  %v10104_v11 = vld [vmem:[#allocation101_spill] sm:$0xff] }
 0x579   : > { %5625 = vpow2.f32 %v3980_v33  ;;  %v3974_v35 = vmul.f32 1.442695, %v3862_v18  ;;  %v3976_v39 = vmul.f32 1.442695, %v3863_v2  ;;  %4067 = vadd.xlane.f32.xlu0 %v4066_v63 }
 0x57a   : > { %v8575_v43 = vpop.eup %5611  ;;  %5627 = vrcp.f32 %v4017_v40  ;;  %v4830_v31 = vpack.c.bf16 %v3175_v0, %v3173_v47  ;;  %v4014_v15 = vpop.xlane.xlu0 %4013  ;;  %v4832_v33 = vpack.c.bf16 %v3174_v61, %v3172_v59 }
 0x57b   : > { %v8581_v60 = vpop.eup %5613  ;;  %v3801_v6 = vpop.xlane.xlu1 %3800  ;;  %5629 = vpow2.f32 %v3974_v35  ;;  %v10106_v35 = vld [vmem:[#allocation57_spill] sm:$0xff] }
 0x57c   : > { %v3868_v36 = vsub.f32 %v8069_v29, %v3801_v6  ;;  %v3869_v27 = vsub.f32 %v8071_v13, %v3801_v6  ;;  %v5616_v7 = vpop.eup %5615  ;;  %v4075_v45 = vadd.f32 %v8581_v60, %v8575_v43  ;;  %5631 = vpow2.f32 %v3976_v39  ;;  %4831 = vmatprep.subr.bf16.mxu1 %v4830_v31  ;;  %v10107_v6 = vld [vmem:[#allocation82_spill] sm:$0xff] }
 0x57d   : > { %v8587_v40 = vpop.eup %5617  ;;  %5633 = vrcp.f32 %v4014_v15  ;;  %4833 = vmatpush1.bf16.xpose.msra.mxu1 %v4832_v33  ;;  %v4137_v61 = vmul.f32 %v5616_v7, %v10105_v3 }
 0x57e   : > { %v3986_v42 = vmul.f32 1.442695, %v3868_v36  ;;  %v3988_v23 = vmul.f32 1.442695, %v3869_v27  ;;  %4076 = vadd.xlane.f32.xlu1 %v4075_v45  ;;  %v8589_v18 = vpop.eup %5619  ;;  %v3798_v13 = vpop.xlane.xlu0 %3797  ;;  %v4136_v36 = vmul.f32 %v5616_v7, %v10107_v6  ;;  %v10108_v6 = vld [vmem:[#allocation60_spill] sm:$0xff] }
 0x57f   : > { %v4023_v29 = vpop.xlane.xlu1 %4022  ;;  %v5622_v2 = vpop.eup %5621  ;;  %v3866_v63 = vsub.f32 %v10051_v5, %v3798_v13  ;;  %v3867_v47 = vsub.f32 %v10052_v48, %v3798_v13  ;;  %v4072_v20 = vadd.f32 %v8589_v18, %v8587_v40 }
 0x580   : > { %5635 = vpow2.f32 %v3986_v42  ;;  %v4135_v59 = vmul.f32 %v5622_v2, %v10104_v11  ;;  %v4134_v39 = vmul.f32 %v5622_v2, %v10106_v35 }
 0x581   : > { %5637 = vpow2.f32 %v3988_v23  ;;  %v3982_v5 = vmul.f32 1.442695, %v3866_v63  ;;  %v3984_v31 = vmul.f32 1.442695, %v3867_v47  ;;  %4073 = vadd.xlane.f32.xlu0 %v4072_v20  ;;  %v4500_v23 = vld [vmem:[%s7316_s23 + $0x80] sm:$0xff] }
 0x582   : > { %v8595_v0 = vpop.eup %5623  ;;  %5639 = vrcp.f32 %v4023_v29  ;;  %v4842_v45 = vpack.c.bf16 %v4137_v61, %v4135_v59  ;;  %v4020_v42 = vpop.xlane.xlu0 %4019  ;;  %v4844_v13 = vpack.c.bf16 %v4136_v36, %v4134_v39 }
 0x583   : > { %v8601_v27 = vpop.eup %5625  ;;  %v3807_v48 = vpop.xlane.xlu1 %3806  ;;  %5641 = vpow2.f32 %v3982_v5  ;;  %v10109_v5 = vld [vmem:[#allocation47_spill] sm:$0xff] }
 0x584   : > { %v3872_v15 = vsub.f32 %v8083_v46, %v3807_v48  ;;  %v3873_v33 = vsub.f32 %v8085_v17, %v3807_v48  ;;  %v5628_v11 = vpop.eup %5627  ;;  %v4081_v7 = vadd.f32 %v8601_v27, %v8595_v0  ;;  %5643 = vpow2.f32 %v3984_v31  ;;  %4843 = vmatprep.subr.bf16.mxu0 %v4842_v45  ;;  %4906 = vmatprep.subr.bf16.mxu1 %v4842_v45  ;;  %v10110_v48 = vld [vmem:[#allocation122_spill] sm:$0xff] }
 0x585   : > { %v8608_v63 = vpop.eup %5629  ;;  %5645 = vrcp.f32 %v4020_v42  ;;  %3241 = vmatmul.mubr.f32.vlgmr.msra.gmra.mrb[16].mxu1 %v4500_v23  ;;  %4845 = vmatpush1.bf16.xpose.msra.mxu0 %v4844_v13  ;;  %v4141_v36 = vmul.f32 %v5628_v11, %v10108_v6 }
 0x586   : > { %v3994_v2 = vmul.f32 1.442695, %v3872_v15  ;;  %v3996_v29 = vmul.f32 1.442695, %v3873_v33  ;;  %v8610_v17 = vpop.eup %5631  ;;  %4922 = vmatpush1.bf16.xpose.msra.mxu1 %v4844_v13  ;;  %4082 = vadd.xlane.f32.xlu1 %v4081_v7  ;;  %v3804_v47 = vpop.xlane.xlu0 %3803  ;;  %v4140_v15 = vmul.f32 %v5628_v11, %v10110_v48 }
 0x587   : > { %v4029_v46 = vpop.xlane.xlu1 %4028  ;;  %v5634_v20 = vpop.eup %5633  ;;  %v3870_v59 = vsub.f32 %v10063_v32, %v3804_v47  ;;  %v3871_v3 = vsub.f32 %v10064_v44, %v3804_v47  ;;  %v4078_v61 = vadd.f32 %v8610_v17, %v8608_v63 }
 0x588   : > { %5647 = vpow2.f32 %v3994_v2  ;;  %v4139_v39 = vmul.f32 %v5634_v20, %v8353_v53  ;;  %v4138_v31 = vmul.f32 %v5634_v20, %v10109_v5 }
 0x589   : > { %5649 = vpow2.f32 %v3996_v29  ;;  %v3990_v45 = vmul.f32 1.442695, %v3870_v59  ;;  %v3992_v32 = vmul.f32 1.442695, %v3871_v3  ;;  %4079 = vadd.xlane.f32.xlu0 %v4078_v61  ;;  %v1205_v29 = vpop.f32.mrb[2].mxu1 }
 0x58a   : > { %v8616_v35 = vpop.eup %5635  ;;  %5651 = vrcp.f32 %v4029_v46  ;;  %v4846_v13 = vpack.c.bf16 %v4141_v36, %v4139_v39  ;;  %v4026_v53 = vpop.xlane.xlu0 %4025  ;;  %v4848_v7 = vpack.c.bf16 %v4140_v15, %v4138_v31  ;;  %1224 = vst [vmem:[%s8427_s26 + $0x10] sm:$0xff] %v1205_v29  ;;  %v10111_v31 = vld [vmem:[#allocation43_spill] sm:$0xff]  ;;  %v10112_v15 = vld [vmem:[#allocation49_spill] sm:$0xff] }
 0x58b   : > { %v8622_v33 = vpop.eup %5637  ;;  %v3813_v44 = vpop.xlane.xlu1 %3812  ;;  %5653 = vpow2.f32 %v3990_v45 }
 0x58c   : > { %v3876_v42 = vsub.f32 %v10066_v12, %v3813_v44  ;;  %v3877_v23 = vsub.f32 %v10067_v19, %v3813_v44  ;;  %v5640_v2 = vpop.eup %5639  ;;  %v4087_v11 = vadd.f32 %v8622_v33, %v8616_v35  ;;  %5655 = vpow2.f32 %v3992_v32  ;;  %4847 = vmatprep.subr.bf16.mxu0 %v4846_v13  ;;  %4907 = vmatprep.subr.bf16.mxu1 %v4846_v13  ;;  %v1207_v20 = vpop.f32.mrb[3].mxu1  ;;  %v10113_v32 = vld [vmem:[#allocation108_spill] sm:$0xff] }
 0x58d   : > { %v8629_v12 = vpop.eup %5641  ;;  %5657 = vrcp.f32 %v4026_v53  ;;  %4849 = vmatpush1.bf16.xpose.msra.mxu0 %v4848_v7  ;;  %1225 = vst [vmem:[%s8427_s26 + $0x18] sm:$0xff] %v1207_v20  ;;  %v1211_v36 = vpop.f32.mrb[4].mxu1  ;;  %v4145_v45 = vmul.f32 %v5640_v2, %v10112_v15 }
 0x58e   : > { %v4002_v46 = vmul.f32 1.442695, %v3876_v42  ;;  %v4004_v47 = vmul.f32 1.442695, %v3877_v23  ;;  %4088 = vadd.xlane.f32.xlu1 %v4087_v11  ;;  %v8632_v19 = vpop.eup %5643  ;;  %4923 = vmatpush1.bf16.xpose.msra.mxu1 %v4848_v7  ;;  %v3810_v59 = vpop.xlane.xlu0 %3809  ;;  %v10114_v42 = vld [vmem:[#allocation62_spill] sm:$0xff]  ;;  %1226 = vst [vmem:[%s8427_s26 + $0x20] sm:$0xff] %v1211_v36 }
 0x58f   : > { %v5646_v3 = vpop.eup %5645  ;;  %v3874_v61 = vsub.f32 %v10069_v8, %v3810_v59  ;;  %v3875_v39 = vsub.f32 %v10070_v30, %v3810_v59  ;;  %v4084_v6 = vadd.f32 %v8632_v19, %v8629_v12  ;;  %v4144_v23 = vmul.f32 %v5640_v2, %v10114_v42  ;;  %v1213_v13 = vpop.f32.mrb[5].mxu1  ;;  %v10115_v36 = vld [vmem:[#allocation38_spill] sm:$0xff] }
 0x590   : > { %5659 = vpow2.f32 %v4002_v46  ;;  %v4143_v48 = vmul.f32 %v5646_v3, %v10111_v31  ;;  %v4142_v44 = vmul.f32 %v5646_v3, %v10113_v32  ;;  %1227 = vst [vmem:[%s8427_s26 + $0x28] sm:$0xff] %v1213_v13  ;;  %v1217_v2 = vpop.f32.mrb[6].mxu1 }
 0x591   : > { %5661 = vpow2.f32 %v4004_v47  ;;  %v3998_v8 = vmul.f32 1.442695, %v3874_v61  ;;  %v4000_v30 = vmul.f32 1.442695, %v3875_v39  ;;  %4085 = vadd.xlane.f32.xlu0 %v4084_v6  ;;  %1228 = vst [vmem:[%s8427_s26 + $0x30] sm:$0xff] %v1217_v2  ;;  %v1219_v20 = vpop.f32.mrb[7].mxu1 }
 0x592   : > { %v8638_v5 = vpop.eup %5647  ;;  %v4850_v7 = vpack.c.bf16 %v4145_v45, %v4143_v48  ;;  %v4852_v11 = vpack.c.bf16 %v4144_v23, %v4142_v44  ;;  %1229 = vst [vmem:[%s8427_s26 + $0x38] sm:$0xff] %v1219_v20  ;;  %v2220_v39 = vpop.f32.mrb[8].mxu1  ;;  %v10116_v48 = vld [vmem:[#allocation6_spill] sm:$0xff]  ;;  %v10118_v44 = vld [vmem:[#allocation55_spill] sm:$0xff] }
 0x593   : > { %v8645_v53 = vpop.eup %5649  ;;  %5663 = vpow2.f32 %v3998_v8  ;;  %v10117_v45 = vld [vmem:[#allocation78_spill] sm:$0xff]  ;;  %4476 = vst [vmem:[%s8427_s26 + $0x40] sm:$0xff] %v2220_v39  ;;  %v4505_v39 = vld [vmem:[%s7316_s23 + $0xa8] sm:$0xff] }
 0x594   : > { %v4093_v29 = vadd.f32 %v8645_v53, %v8638_v5  ;;  %v5652_v46 = vpop.eup %5651  ;;  %5665 = vpow2.f32 %v4000_v30  ;;  %4851 = vmatprep.subr.bf16.mxu0 %v4850_v7  ;;  %4908 = vmatprep.subr.bf16.mxu1 %v4850_v7  ;;  %v2222_v7 = vpop.f32.mrb[9].mxu1 }
 0x595   : > { %v8650_v47 = vpop.eup %5653  ;;  %4853 = vmatpush1.bf16.xpose.msra.mxu0 %v4852_v11  ;;  %v4149_v15 = vmul.f32 %v5652_v46, %v10116_v48  ;;  %v4148_v42 = vmul.f32 %v5652_v46, %v10118_v44  ;;  %4477 = vst [vmem:[%s8427_s26 + $0x48] sm:$0xff] %v2222_v7  ;;  %v10120_v44 = vld [vmem:[#allocation87_spill] sm:$0xff] }
 0x596   : > { %4094 = vadd.xlane.f32.xlu1 %v4093_v29  ;;  %v8653_v59 = vpop.eup %5655  ;;  %4924 = vmatpush1.bf16.xpose.msra.mxu1 %v4852_v11 }
 0x597   : > { %v5658_v3 = vpop.eup %5657  ;;  %v4090_v61 = vadd.f32 %v8653_v59, %v8650_v47 }
 0x598   : > { %v4147_v31 = vmul.f32 %v5658_v3, %v10115_v36  ;;  %v4146_v32 = vmul.f32 %v5658_v3, %v10117_v45  ;;  %v4503_v3 = vld [vmem:[%s7316_s23 + $0x98] sm:$0xff] }
 0x599   : > { %4091 = vadd.xlane.f32.xlu0 %v4090_v61  ;;  %v4502_v61 = vld [vmem:[%s7316_s23 + $0x90] sm:$0xff]  ;;  %3246 = vmatprep.mubr.f32.mxu1 %v4503_v3  ;;  %v4565_v3 = vld [vmem:[%s7316_s23 + $0xc8] sm:$0xff] }
 0x59a   : > { %v8658_v6 = vpop.eup %5659  ;;  %v4854_v13 = vpack.c.bf16 %v4149_v15, %v4147_v31  ;;  %v4856_v8 = vpack.c.bf16 %v4148_v42, %v4146_v32  ;;  %3247 = vmatmul.mubr.f32.gmra.mrb[18].mxu1 %v4502_v61  ;;  %v4504_v31 = vld [vmem:[%s7316_s23 + $0xa0] sm:$0xff]  ;;  %v10119_v15 = vld [vmem:[#allocation109_spill] sm:$0xff]  ;;  %4262 = vmatprep.mubr.f32.mxu0 %v4565_v3 }
 0x59b   : > { %v8665_v23 = vpop.eup %5661  ;;  %3252 = vmatprep.mubr.f32.mxu1 %v4505_v39 }
 0x59c   : > { %v4099_v30 = vadd.f32 %v8665_v23, %v8658_v6  ;;  %4855 = vmatprep.subr.bf16.mxu0 %v4854_v13  ;;  %4909 = vmatprep.subr.bf16.mxu1 %v4854_v13 }
 0x59d   : > { %v8670_v11 = vpop.eup %5663  ;;  %4857 = vmatpush1.bf16.xpose.msra.mxu0 %v4856_v8 }
 0x59e   : > { %4100 = vadd.xlane.f32.xlu1 %v4099_v30  ;;  %v8672_v29 = vpop.eup %5665  ;;  %4925 = vmatpush1.bf16.xpose.msra.mxu1 %v4856_v8 }
 0x59f   : > { %v4096_v46 = vadd.f32 %v8672_v29, %v8670_v11  ;;  %3253 = vmatmul.mubr.f32.gmra.mrb[20].mxu1 %v4504_v31 }
 0x5a1   : > { %4097 = vadd.xlane.f32.xlu0 %v4096_v46  ;;  %v4507_v46 = vld [vmem:[%s7316_s23 + $0xb8] sm:$0xff] }
 0x5a2   : > { %3258 = vmatprep.mubr.f32.mxu1 %v4507_v46 }
 0x5a7   : > { %v4032_v2 = vpop.xlane.xlu0 %4031 }
 0x5a8   : > { %5667 = vrcp.f32 %v4032_v2 }
 0x5af   : > { %v4035_v20 = vpop.xlane.xlu1 %4034 }
 0x5b0   : > { %5669 = vrcp.f32 %v4035_v20  ;;  %v4506_v20 = vld [vmem:[%s7316_s23 + $0xb0] sm:$0xff] }
 0x5b1   : > { %3259 = vmatmul.mubr.f32.gmra.mrb[22].mxu1 %v4506_v20 }
 0x5b2   : > { %v5668_v36 = vpop.eup %5667 }
 0x5b3   : > { %v4151_v45 = vmul.f32 %v5668_v36, %v10119_v15  ;;  %v4150_v42 = vmul.f32 %v5668_v36, %v10120_v44 }
 0x5ba   : > { %v5670_v48 = vpop.eup %5669 }
 0x5bb   : > { %v4153_v32 = vmul.f32 %v5670_v48, %v8445_v22  ;;  %v4152_v13 = vmul.f32 %v5670_v48, %v8443_v25  ;;  %v4038_v8 = vpop.xlane.xlu0 %4037  ;;  %v4567_v22 = vld [vmem:[%s7316_s23 + $0xd8] sm:$0xff] }
 0x5bc   : > { %5671 = vrcp.f32 %v4038_v8  ;;  %4268 = vmatprep.mubr.f32.mxu1 %v4567_v22 }
 0x5bd   : > { %v4858_v30 = vpack.c.bf16 %v4153_v32, %v4151_v45  ;;  %v4860_v7 = vpack.c.bf16 %v4152_v13, %v4150_v42 }
 0x5bf   : > { %v4041_v2 = vpop.xlane.xlu1 %4040  ;;  %4859 = vmatprep.subr.bf16.mxu0 %v4858_v30  ;;  %4910 = vmatprep.subr.bf16.mxu1 %v4858_v30 }
 0x5c0   : > { %5673 = vrcp.f32 %v4041_v2  ;;  %4861 = vmatpush1.bf16.xpose.msra.mxu0 %v4860_v7  ;;  %4926 = vmatpush1.bf16.xpose.msra.mxu1 %v4860_v7 }
 0x5c6   : > { %v5672_v25 = vpop.eup %5671  ;;  %v2226_v44 = vpop.f32.mrb[10].mxu1 }
 0x5c7   : > { %v4155_v39 = vmul.f32 %v5672_v25, %v8457_v41  ;;  %v4154_v31 = vmul.f32 %v5672_v25, %v8455_v10  ;;  %4478 = vst [vmem:[%s8427_s26 + $0x50] sm:$0xff] %v2226_v44  ;;  %v2228_v42 = vpop.f32.mrb[11].mxu1 }
 0x5c8   : > { %4479 = vst [vmem:[%s8427_s26 + $0x58] sm:$0xff] %v2228_v42 }
 0x5ca   : > { %v5674_v61 = vpop.eup %5673 }
 0x5cb   : > { %v4157_v36 = vmul.f32 %v5674_v61, %v8465_v37  ;;  %v4156_v48 = vmul.f32 %v5674_v61, %v8463_v58  ;;  %v4044_v15 = vpop.xlane.xlu0 %4043 }
 0x5cc   : > { %5675 = vrcp.f32 %v4044_v15 }
 0x5cd   : > { %v4862_v45 = vpack.c.bf16 %v4157_v36, %v4155_v39  ;;  %v4864_v32 = vpack.c.bf16 %v4156_v48, %v4154_v31  ;;  %v2232_v10 = vpop.f32.mrb[12].mxu1 }
 0x5ce   : > { %4480 = vst [vmem:[%s8427_s26 + $0x60] sm:$0xff] %v2232_v10  ;;  %v2234_v41 = vpop.f32.mrb[13].mxu1 }
 0x5cf   : > { %4863 = vmatprep.subr.bf16.mxu0 %v4862_v45  ;;  %4911 = vmatprep.subr.bf16.mxu1 %v4862_v45  ;;  %4481 = vst [vmem:[%s8427_s26 + $0x68] sm:$0xff] %v2234_v41 }
 0x5d0   : > { %v4047_v13 = vpop.xlane.xlu1 %4046  ;;  %4865 = vmatpush1.bf16.xpose.msra.mxu0 %v4864_v32  ;;  %4927 = vmatpush1.bf16.xpose.msra.mxu1 %v4864_v32 }
 0x5d1   : > { %5677 = vrcp.f32 %v4047_v13  ;;  %v2238_v58 = vpop.f32.mrb[14].mxu1 }
 0x5d2   : > { %4482 = vst [vmem:[%s8427_s26 + $0x70] sm:$0xff] %v2238_v58  ;;  %v2240_v37 = vpop.f32.mrb[15].mxu1 }
 0x5d3   : > { %4483 = vst [vmem:[%s8427_s26 + $0x78] sm:$0xff] %v2240_v37 }
 0x5d6   : > { %v5676_v8 = vpop.eup %5675 }
 0x5d7   : > { %v4159_v7 = vmul.f32 %v5676_v8, %v8477_v54  ;;  %v4158_v2 = vmul.f32 %v5676_v8, %v8475_v4 }
 0x5db   : > { %v5678_v30 = vpop.eup %5677 }
 0x5dc   : > { %v4161_v46 = vmul.f32 %v5678_v30, %v8485_v9  ;;  %v4160_v20 = vmul.f32 %v5678_v30, %v8483_v28 }
 0x5dd   : > { %v4050_v22 = vpop.xlane.xlu0 %4049 }
 0x5de   : > { %v4866_v25 = vpack.c.bf16 %v4161_v46, %v4159_v7  ;;  %v4868_v3 = vpack.c.bf16 %v4160_v20, %v4158_v2  ;;  %5679 = vrcp.f32 %v4050_v22 }
 0x5e0   : > { %v4053_v61 = vpop.xlane.xlu1 %4052  ;;  %4867 = vmatprep.subr.bf16.mxu0 %v4866_v25  ;;  %4912 = vmatprep.subr.bf16.mxu1 %v4866_v25 }
 0x5e1   : > { %5681 = vrcp.f32 %v4053_v61  ;;  %4869 = vmatpush1.bf16.xpose.msra.mxu0 %v4868_v3  ;;  %4928 = vmatpush1.bf16.xpose.msra.mxu1 %v4868_v3 }
 0x5e8   : > { %v5680_v39 = vpop.eup %5679 }
 0x5e9   : > { %v4163_v54 = vmul.f32 %v5680_v39, %v8497_v55  ;;  %v4162_v4 = vmul.f32 %v5680_v39, %v8495_v24 }
 0x5eb   : > { %v5682_v36 = vpop.eup %5681 }
 0x5ec   : > { %v4165_v9 = vmul.f32 %v5682_v36, %v8505_v16  ;;  %v4164_v28 = vmul.f32 %v5682_v36, %v8503_v14 }
 0x5ed   : > { %v4056_v31 = vpop.xlane.xlu0 %4055 }
 0x5ee   : > { %v4870_v48 = vpack.c.bf16 %v4165_v9, %v4163_v54  ;;  %v4872_v15 = vpack.c.bf16 %v4164_v28, %v4162_v4  ;;  %5683 = vrcp.f32 %v4056_v31 }
 0x5f0   : > { %v4059_v45 = vpop.xlane.xlu1 %4058  ;;  %4871 = vmatprep.subr.bf16.mxu0 %v4870_v48  ;;  %4913 = vmatprep.subr.bf16.mxu1 %v4870_v48 }
 0x5f1   : > { %5685 = vrcp.f32 %v4059_v45  ;;  %4873 = vmatpush1.bf16.xpose.msra.mxu0 %v4872_v15  ;;  %4929 = vmatpush1.bf16.xpose.msra.mxu1 %v4872_v15 }
 0x5f8   : > { %v5684_v32 = vpop.eup %5683 }
 0x5f9   : > { %v4065_v44 = vpop.xlane.xlu1 %4064  ;;  %v4167_v55 = vmul.f32 %v5684_v32, %v8519_v62  ;;  %v4166_v24 = vmul.f32 %v5684_v32, %v8517_v1 }
 0x5fa   : > { %5687 = vrcp.f32 %v4065_v44 }
 0x5fb   : > { %v5686_v42 = vpop.eup %5685 }
 0x5fc   : > { %v4169_v16 = vmul.f32 %v5686_v42, %v8527_v38  ;;  %v4168_v14 = vmul.f32 %v5686_v42, %v8523_v57 }
 0x5fe   : > { %v4062_v13 = vpop.xlane.xlu0 %4061  ;;  %v4874_v10 = vpack.c.bf16 %v4169_v16, %v4167_v55  ;;  %v4876_v41 = vpack.c.bf16 %v4168_v14, %v4166_v24 }
 0x5ff   : > { %5689 = vrcp.f32 %v4062_v13 }
 0x600   : > { %4875 = vmatprep.subr.bf16.mxu0 %v4874_v10  ;;  %4914 = vmatprep.subr.bf16.mxu1 %v4874_v10 }
 0x601   : > { %4877 = vmatpush1.bf16.xpose.msra.mxu0 %v4876_v41  ;;  %4930 = vmatpush1.bf16.xpose.msra.mxu1 %v4876_v41 }
 0x603   : > { %v4071_v58 = vpop.xlane.xlu1 %4070 }
 0x604   : > { %5691 = vrcp.f32 %v4071_v58  ;;  %v5688_v8 = vpop.eup %5687 }
 0x605   : > { %v4173_v57 = vmul.f32 %v5688_v8, %v8541_v21  ;;  %v4172_v7 = vmul.f32 %v5688_v8, %v8537_v26 }
 0x606   : > { %v4068_v37 = vpop.xlane.xlu0 %4067 }
 0x607   : > { %5693 = vrcp.f32 %v4068_v37 }
 0x609   : > { %v5690_v62 = vpop.eup %5689 }
 0x60a   : > { %v4171_v1 = vmul.f32 %v5690_v62, %v8549_v34  ;;  %v4170_v30 = vmul.f32 %v5690_v62, %v8547_v50 }
 0x60b   : > { %v4077_v38 = vpop.xlane.xlu1 %4076 }
 0x60c   : > { %v4878_v46 = vpack.c.bf16 %v4173_v57, %v4171_v1  ;;  %v4880_v2 = vpack.c.bf16 %v4172_v7, %v4170_v30  ;;  %5695 = vrcp.f32 %v4077_v38  ;;  %v4566_v7 = vld [vmem:[%s7316_s23 + $0xd0] sm:$0xff] }
 0x60e   : > { %4879 = vmatprep.subr.bf16.mxu0 %v4878_v46  ;;  %4915 = vmatprep.subr.bf16.mxu1 %v4878_v46  ;;  %v4074_v20 = vpop.xlane.xlu0 %4073  ;;  %v5692_v22 = vpop.eup %5691  ;;  %v4564_v46 = vld [vmem:[%s7316_s23 + $0xc0] sm:$0xff] }
 0x60f   : > { %5697 = vrcp.f32 %v4074_v20  ;;  %4881 = vmatpush1.bf16.xpose.msra.mxu0 %v4880_v2  ;;  %4931 = vmatpush1.bf16.xpose.msra.mxu1 %v4880_v2  ;;  %v4177_v34 = vmul.f32 %v5692_v22, %v8561_v49  ;;  %v4176_v50 = vmul.f32 %v5692_v22, %v8555_v52 }
 0x611   : > { %v5694_v25 = vpop.eup %5693 }
 0x612   : > { %v4175_v3 = vmul.f32 %v5694_v25, %v8569_v56  ;;  %v4174_v21 = vmul.f32 %v5694_v25, %v8567_v51 }
 0x613   : > { %v4083_v26 = vpop.xlane.xlu1 %4082 }
 0x614   : > { %v4882_v61 = vpack.c.bf16 %v4177_v34, %v4175_v3  ;;  %v4884_v39 = vpack.c.bf16 %v4176_v50, %v4174_v21  ;;  %5699 = vrcp.f32 %v4083_v26 }
 0x616   : > { %4883 = vmatprep.subr.bf16.mxu0 %v4882_v61  ;;  %4916 = vmatprep.subr.bf16.mxu1 %v4882_v61  ;;  %v4080_v36 = vpop.xlane.xlu0 %4079  ;;  %v5696_v54 = vpop.eup %5695 }
 0x617   : > { %5701 = vrcp.f32 %v4080_v36  ;;  %4885 = vmatpush1.bf16.xpose.msra.mxu0 %v4884_v39  ;;  %4932 = vmatpush1.bf16.xpose.msra.mxu1 %v4884_v39  ;;  %v4181_v49 = vmul.f32 %v5696_v54, %v8581_v60  ;;  %v4180_v52 = vmul.f32 %v5696_v54, %v8575_v43 }
 0x619   : > { %v5698_v9 = vpop.eup %5697 }
 0x61a   : > { %v4179_v56 = vmul.f32 %v5698_v9, %v8589_v18  ;;  %v4178_v51 = vmul.f32 %v5698_v9, %v8587_v40 }
 0x61b   : > { %v4089_v4 = vpop.xlane.xlu1 %4088 }
 0x61c   : > { %v4886_v28 = vpack.c.bf16 %v4181_v49, %v4179_v56  ;;  %v4888_v31 = vpack.c.bf16 %v4180_v52, %v4178_v51  ;;  %5703 = vrcp.f32 %v4089_v4 }
 0x61e   : > { %4887 = vmatprep.subr.bf16.mxu0 %v4886_v28  ;;  %4917 = vmatprep.subr.bf16.mxu1 %v4886_v28  ;;  %v4086_v48 = vpop.xlane.xlu0 %4085  ;;  %v5700_v15 = vpop.eup %5699 }
 0x61f   : > { %5705 = vrcp.f32 %v4086_v48  ;;  %4889 = vmatpush1.bf16.xpose.msra.mxu0 %v4888_v31  ;;  %4933 = vmatpush1.bf16.xpose.msra.mxu1 %v4888_v31  ;;  %v4185_v60 = vmul.f32 %v5700_v15, %v8601_v27  ;;  %v4184_v43 = vmul.f32 %v5700_v15, %v8595_v0 }
 0x621   : > { %v5702_v45 = vpop.eup %5701 }
 0x622   : > { %v4183_v18 = vmul.f32 %v5702_v45, %v8610_v17  ;;  %v4182_v40 = vmul.f32 %v5702_v45, %v8608_v63 }
 0x623   : > { %v4095_v32 = vpop.xlane.xlu1 %4094 }
 0x624   : > { %v4890_v44 = vpack.c.bf16 %v4185_v60, %v4183_v18  ;;  %v4892_v42 = vpack.c.bf16 %v4184_v43, %v4182_v40  ;;  %5707 = vrcp.f32 %v4095_v32 }
 0x626   : > { %4891 = vmatprep.subr.bf16.mxu0 %v4890_v44  ;;  %4918 = vmatprep.subr.bf16.mxu1 %v4890_v44  ;;  %v4092_v55 = vpop.xlane.xlu0 %4091  ;;  %v5704_v16 = vpop.eup %5703 }
 0x627   : > { %5709 = vrcp.f32 %v4092_v55  ;;  %4893 = vmatpush1.bf16.xpose.msra.mxu0 %v4892_v42  ;;  %4934 = vmatpush1.bf16.xpose.msra.mxu1 %v4892_v42  ;;  %v4189_v27 = vmul.f32 %v5704_v16, %v8622_v33  ;;  %v4188_v0 = vmul.f32 %v5704_v16, %v8616_v35 }
 0x629   : > { %v5706_v24 = vpop.eup %5705 }
 0x62a   : > { %v4187_v17 = vmul.f32 %v5706_v24, %v8632_v19  ;;  %v4186_v63 = vmul.f32 %v5706_v24, %v8629_v12 }
 0x62b   : > { %v4101_v14 = vpop.xlane.xlu1 %4100 }
 0x62c   : > { %v4894_v13 = vpack.c.bf16 %v4189_v27, %v4187_v17  ;;  %v4896_v10 = vpack.c.bf16 %v4188_v0, %v4186_v63  ;;  %5711 = vrcp.f32 %v4101_v14 }
 0x62e   : > { %4895 = vmatprep.subr.bf16.mxu0 %v4894_v13  ;;  %4919 = vmatprep.subr.bf16.mxu1 %v4894_v13  ;;  %v4098_v41 = vpop.xlane.xlu0 %4097  ;;  %v5708_v58 = vpop.eup %5707 }
 0x62f   : > { %5713 = vrcp.f32 %v4098_v41  ;;  %4897 = vmatpush1.bf16.xpose.msra.mxu0 %v4896_v10  ;;  %4935 = vmatpush1.bf16.xpose.msra.mxu1 %v4896_v10  ;;  %v4193_v19 = vmul.f32 %v5708_v58, %v8645_v53  ;;  %v4192_v12 = vmul.f32 %v5708_v58, %v8638_v5 }
 0x631   : > { %v5710_v37 = vpop.eup %5709 }
 0x632   : > { %v4191_v8 = vmul.f32 %v5710_v37, %v8653_v59  ;;  %v4190_v33 = vmul.f32 %v5710_v37, %v8650_v47 }
 0x634   : > { %v4898_v35 = vpack.c.bf16 %v4193_v19, %v4191_v8  ;;  %v4900_v62 = vpack.c.bf16 %v4192_v12, %v4190_v33 }
 0x636   : > { %4899 = vmatprep.subr.bf16.mxu0 %v4898_v35  ;;  %4920 = vmatprep.subr.bf16.mxu1 %v4898_v35  ;;  %v5712_v38 = vpop.eup %5711 }
 0x637   : > { %4901 = vmatpush1.bf16.xpose.msra.mxu0 %v4900_v62  ;;  %4936 = vmatpush1.bf16.xpose.msra.mxu1 %v4900_v62  ;;  %v4197_v53 = vmul.f32 %v5712_v38, %v8665_v23  ;;  %v4196_v5 = vmul.f32 %v5712_v38, %v8658_v6  ;;  %v4568_v23 = vld [vmem:[%s7316_s23 + $0xe0] sm:$0xff]  ;;  %v4571_v6 = vld [vmem:[%s7316_s23 + $0xf8] sm:$0xff] }
 0x639   : > { %v5714_v1 = vpop.eup %5713 }
 0x63a   : > { %v4195_v57 = vmul.f32 %v5714_v1, %v8672_v29  ;;  %v4194_v47 = vmul.f32 %v5714_v1, %v8670_v11  ;;  %v4569_v29 = vld [vmem:[%s7316_s23 + $0xe8] sm:$0xff]  ;;  %v4570_v11 = vld [vmem:[%s7316_s23 + $0xf0] sm:$0xff] }
 0x63c   : > { %v4902_v59 = vpack.c.bf16 %v4197_v53, %v4195_v57  ;;  %v4904_v30 = vpack.c.bf16 %v4196_v5, %v4194_v47 }
 0x63e   : > { %4903 = vmatprep.subr.bf16.mxu0 %v4902_v59  ;;  %4921 = vmatprep.subr.bf16.mxu1 %v4902_v59 }
 0x63f   : > { %4905 = vmatpush1.bf16.xpose.msra.mxu0 %v4904_v30  ;;  %4937 = vmatpush1.bf16.xpose.msra.mxu1 %v4904_v30 }
 0x646   : > { %4269 = vmatmul.mubr.f32.vlgmr.msra.gmra.mrb[24].mxu1 %v4566_v7  ;;  %4263 = vmatmul.mubr.f32.vlgmr.msra.gmra.mrb[0].mxu0 %v4564_v46 }
 0x647   : > { %4274 = vmatprep.mubr.f32.mxu1 %v4569_v29 }
 0x64a   : > { %4275 = vmatmul.mubr.f32.gmra.mrb[26].mxu1 %v4568_v23 }
 0x64b   : > { %4280 = vmatprep.mubr.f32.mxu1 %v4571_v6 }
 0x64e   : > { %4281 = vmatmul.mubr.f32.gmra.mrb[28].mxu1 %v4570_v11 }
 0x658   : > { %v3242_v2 = vpop.f32.mrb[16].mxu1 }
 0x659   : > { %4540 = vst [vmem:[%s8427_s26 + $0x80] sm:$0xff] %v3242_v2  ;;  %v3244_v20 = vpop.f32.mrb[17].mxu1 }
 0x65a   : > { %4541 = vst [vmem:[%s8427_s26 + $0x88] sm:$0xff] %v3244_v20 }
 0x66d   : > { %v3248_v22 = vpop.f32.mrb[18].mxu1 }
 0x66e   : > { %4542 = vst [vmem:[%s8427_s26 + $0x90] sm:$0xff] %v3248_v22  ;;  %v3250_v25 = vpop.f32.mrb[19].mxu1 }
 0x66f   : > { %4543 = vst [vmem:[%s8427_s26 + $0x98] sm:$0xff] %v3250_v25 }
 0x672   : > { %v3254_v3 = vpop.f32.mrb[20].mxu1 }
 0x673   : > { %4544 = vst [vmem:[%s8427_s26 + $0xa0] sm:$0xff] %v3254_v3  ;;  %v3256_v34 = vpop.f32.mrb[21].mxu1 }
 0x674   : > { %4545 = vst [vmem:[%s8427_s26 + $0xa8] sm:$0xff] %v3256_v34 }
 0x684   : > { %v3260_v21 = vpop.f32.mrb[22].mxu1 }
 0x685   : > { %4546 = vst [vmem:[%s8427_s26 + $0xb0] sm:$0xff] %v3260_v21  ;;  %v3262_v50 = vpop.f32.mrb[23].mxu1 }
 0x686   : > { %4547 = vst [vmem:[%s8427_s26 + $0xb8] sm:$0xff] %v3262_v50 }
 0x719   : > { %v4270_v26 = vpop.f32.mrb[24].mxu1  ;;  %v4264_v61 = vpop.f32.mrb[0].mxu0 }
 0x71a   : > { %4606 = vst [vmem:[%s8427_s26 + $0xd0] sm:$0xff] %v4270_v26  ;;  %v4272_v39 = vpop.f32.mrb[25].mxu1  ;;  %4604 = vst [vmem:[%s8427_s26 + $0xc0] sm:$0xff] %v4264_v61  ;;  %v4266_v36 = vpop.f32.mrb[1].mxu0 }
 0x71b   : > { %4607 = vst [vmem:[%s8427_s26 + $0xd8] sm:$0xff] %v4272_v39  ;;  %4605 = vst [vmem:[%s8427_s26 + $0xc8] sm:$0xff] %v4266_v36 }
 0x71d   : > { %v4276_v54 = vpop.f32.mrb[26].mxu1 }
 0x71e   : > { %4608 = vst [vmem:[%s8427_s26 + $0xe0] sm:$0xff] %v4276_v54  ;;  %v4278_v9 = vpop.f32.mrb[27].mxu1 }
 0x71f   : > { %4609 = vst [vmem:[%s8427_s26 + $0xe8] sm:$0xff] %v4278_v9 }
 0x721   : > { %v4282_v4 = vpop.f32.mrb[28].mxu1 }
 0x722   : > { %4610 = vst [vmem:[%s8427_s26 + $0xf0] sm:$0xff] %v4282_v4  ;;  %v4284_v56 = vpop.f32.mrb[29].mxu1 }
 0x723   : > { %4611 = vst [vmem:[%s8427_s26 + $0xf8] sm:$0xff] %v4284_v56 }
 0x724 PF: > { %s13_s12 = sadd.s32 1, %s5721_s12  }
 0x725   : > { %p10_p4 = scmp.ge.s32.totalorder %s13_s12, 4  }
 0x727   :  { %12 = sbr.rel (!%p10_p4) target bundleno = 1 (0x1), region = 80 }

</bundles_post_ra>
